<compile_context>
chip_gen: v5e
topology: v5e:2x2
jax: 0.10.0
libtpu: 0.0.40
codegen_flags: <defaults>
</compile_context>

<pallas_src>
import functools

import jax
import jax.numpy as jnp
from jax.experimental import pallas as pl
from jax.experimental.pallas import tpu as pltpu


# ---------------------------------------------------------------------------
# Kernel
# ---------------------------------------------------------------------------
def _aux_kernel(x_ref, weff_ref, bias_ref, o_ref, *, b0, tn, bp):
    """One batch tile: out[r] = x[r] @ w_eff[:, r % B0] + bias_eff[r % B0].

    x_ref    : (TN, D)  f32  -- pipelined over the grid (dominant HBM stream)
    weff_ref : (D, BP)  f32  -- w @ prediction.T, zero-padded to BP=128 lanes
    bias_ref : (TN, 1)  f32  -- per-row bias_eff[r % B0], tiny pipelined stream
    o_ref    : (TN, 1)  f32
    """
    x = x_ref[...].astype(jnp.float32)          # no-op for f32 inputs
    acc = jnp.dot(x, weff_ref[...], preferred_element_type=jnp.float32)

    # Selection mask generated in-kernel from the GLOBAL row index:
    # row r of the whole batch picks folded column r % B0.
    row0 = pl.program_id(0) * tn
    rows = jax.lax.broadcasted_iota(jnp.int32, (tn, bp), 0) + row0
    cols = jax.lax.broadcasted_iota(jnp.int32, (tn, bp), 1)
    mask = (rows % b0) == cols

    picked = jnp.where(mask, acc, 0.0)
    o_ref[...] = jnp.sum(picked, axis=-1, keepdims=True) + bias_ref[...]


# ---------------------------------------------------------------------------
# Wrappers
# ---------------------------------------------------------------------------
def black_box_linear(x_nchw, w_dk, b_k):
    """black_box(x): flatten NCHW -> (N, D), then linear -> (N, K) in f32.

    Only called once on the tiny base_features batch (module __init__), so a
    plain jnp matmul beats a dedicated pallas_call on launch overhead.
    """
    n = x_nchw.shape[0]
    d = w_dk.shape[0]
    x_flat = x_nchw.reshape(n, d).astype(jnp.float32)
    return x_flat @ w_dk.astype(jnp.float32) + b_k.astype(jnp.float32)


def auxiliary_function_forward(input_features, prediction, w_dk, b_k, tile_n=1024):
    """Semantics of AuxiliaryFunction.forward for a linear black box.

    input_features : (N, C, H, W)
    prediction     : (B0, K)  -- black_box(base_features), precomputed
    returns        : (N,) float32
    """
    n = input_features.shape[0]
    b0, _ = prediction.shape
    d = w_dk.shape[0]

    if n != b0 and n % b0 != 0:
        raise ValueError(
            "The internal batch size should be a multiple of input_features.shape[0]"
        )

    # ---- Algebraic refold (valid because this black box is linear):
    # out[n] = sum_k pred[n % B0, k] * (x[n] @ w + b)[k]
    #        = x[n] @ (w @ pred[n % B0]) + pred[n % B0] @ b
    pred32 = prediction.astype(jnp.float32)
    w_eff = w_dk.astype(jnp.float32) @ pred32.T            # (D, B0)
    bias_eff = pred32 @ b_k.astype(jnp.float32)            # (B0,)

    # Zero-pad the folded dim to a full lane tile (BP multiple of 128); keep f32.
    bp = max(128, ((b0 + 127) // 128) * 128)
    w_eff_p = jnp.zeros((d, bp), jnp.float32).at[:, :b0].set(w_eff)

    # Tiny per-row bias stream: bias_rows[r] = bias_eff[r % B0].
    bias_rows = bias_eff[jnp.arange(n, dtype=jnp.int32) % b0].reshape(n, 1)

    # Batch tile: multiple of 8 sublanes.  Cap at ceil(N/2) (rounded to 8) so
    # the grid always has >= 2 blocks -> both v7x TensorCores get work.
    tn = max(8, (tile_n // 8) * 8)
    half = (((n + 1) // 2) + 7) // 8 * 8
    tn = min(tn, max(8, half))
    grid = pl.cdiv(n, tn)

    # Metadata-only reshape; x is streamed in its native dtype (no cast/pad
    # pass in the wrapper).  Ragged last block: OOB input rows are undefined
    # but only feed OOB output rows, which Pallas drops.
    x_flat = input_features.reshape(n, d)

    kernel = functools.partial(_aux_kernel, b0=b0, tn=tn, bp=bp)

    out = pl.pallas_call(
        kernel,
        out_shape=jax.ShapeDtypeStruct((n, 1), jnp.float32),
        grid=(grid,),
        in_specs=[
            pl.BlockSpec((tn, d), lambda i: (i, 0)),       # x: tiled over batch
            pl.BlockSpec((d, bp), lambda i: (0, 0)),       # w_eff: resident
            pl.BlockSpec((tn, 1), lambda i: (i, 0)),       # per-row bias
        ],
        out_specs=pl.BlockSpec((tn, 1), lambda i: (i, 0)),
        compiler_params=pltpu.CompilerParams(
            dimension_semantics=("parallel",),
            vmem_limit_bytes=32 * 1024 * 1024,
        ),
    )(x_flat, w_eff_p, bias_rows)
    return out[:, 0]


# ---------------------------------------------------------------------------
# Main
# ---------------------------------------------------------------------------
if __name__ == "__main__":
    key = jax.random.PRNGKey(0)
    k_base, k_in, k_w, k_b = jax.random.split(key, 4)

    # Small shapes consistent with the module's image-classifier use-case.
    B0, C, H, W = 2, 4, 16, 16          # base_features batch
    N = 500                             # input batch (multiple of B0 -> repeat branch)
    D = C * H * W                       # 1024
    K = 16                              # number of classes / logits

    base_features = jax.random.normal(k_base, (B0, C, H, W), dtype=jnp.float32)
    input_features = jax.random.normal(k_in, (N, C, H, W), dtype=jnp.float32)

    # Deterministic black-box parameters (linear classifier on flattened image).
    # TODO(synk): an arbitrary nn.Module black_box has no generic Pallas
    # equivalent; this implementation specializes it to flatten + linear.
    w_dk = jax.random.normal(k_w, (D, K), dtype=jnp.float32) * 0.02
    b_k = jax.random.normal(k_b, (K,), dtype=jnp.float32) * 0.1

    # __init__: prediction = black_box(base_features)
    prediction = black_box_linear(base_features, w_dk, b_k)

    # forward
    out = auxiliary_function_forward(input_features, prediction, w_dk, b_k)
    out = jax.block_until_ready(out)

    # Reference: the original (un-refolded) formulation in plain JAX.
    logits_ref = input_features.reshape(N, D) @ w_dk + b_k
    pred_rep = jnp.tile(prediction, (N // B0, 1))
    ref = jnp.sum(pred_rep * logits_ref, axis=-1)

    assert out.shape == (N,)
    assert jnp.allclose(out, ref, rtol=2e-2, atol=2e-2), float(
        jnp.max(jnp.abs(out - ref))
    )

    print("KERNEL_OK")
</pallas_src>

<mosaic_0001>
module attributes {stable_mosaic.version = 11 : i64} {
  func.func @_aux_kernel(%arg0: i32, %arg1: memref<256x1024xf32, #tpu.memory_space<vmem>>, %arg2: memref<1024x128xf32, #tpu.memory_space<vmem>>, %arg3: memref<256x1xf32, #tpu.memory_space<vmem>>, %arg4: memref<256x1xf32, #tpu.memory_space<vmem>>) attributes {dimension_semantics = [#tpu.dimension_semantics<parallel>], iteration_bounds = array<i64: 2>, scalar_prefetch = 0 : i64, scratch_operands = 0 : i64, tpu.core_type = #tpu.core_type<tc>, window_params = [{transform_indices = @transform_0, window_bounds = array<i64: 256, 1024>}, {pipeline_mode = #tpu.pipeline_mode<synchronous>, transform_indices = @transform_1, window_bounds = array<i64: 1024, 128>}, {transform_indices = @transform_2, window_bounds = array<i64: 256, 1>}, {transform_indices = @transform_3, window_bounds = array<i64: 256, 1>}]} {
    %c0 = arith.constant 0 : index
    %c0_0 = arith.constant 0 : index
    %0 = vector.load %arg1[%c0, %c0_0] : memref<256x1024xf32, #tpu.memory_space<vmem>>, vector<256x1024xf32>
    %c0_1 = arith.constant 0 : index
    %c0_2 = arith.constant 0 : index
    %1 = vector.load %arg2[%c0_1, %c0_2] : memref<1024x128xf32, #tpu.memory_space<vmem>>, vector<1024x128xf32>
    %cst = arith.constant dense<0.000000e+00> : vector<256x128xf32>
    %2 = tpu.matmul %0, %1, %cst {dimension_numbers = #tpu.dot_dimension_numbers<[1], [0], [0], [1], [0, 0, 1, 1], [], []>} : vector<256x1024xf32>, vector<1024x128xf32>, vector<256x128xf32> -> vector<256x128xf32>
    %c256_i32 = arith.constant 256 : i32
    %3 = arith.muli %arg0, %c256_i32 : i32
    %4 = tpu.iota {dimensions = array<i32: 0>} : vector<256x128xi32>
    %5 = vector.broadcast %3 : i32 to vector<256x128xi32>
    %6 = arith.addi %4, %5 : vector<256x128xi32>
    %7 = tpu.iota {dimensions = array<i32: 1>} : vector<256x128xi32>
    %c2_i32 = arith.constant 2 : i32
    %c0_i32 = arith.constant 0 : i32
    %8 = arith.cmpi eq, %c2_i32, %c0_i32 : i32
    %c1_i32 = arith.constant 1 : i32
    %9 = arith.select %8, %c1_i32, %c2_i32 : i32
    %10 = vector.broadcast %9 : i32 to vector<256x128xi32>
    %11 = arith.remsi %6, %10 : vector<256x128xi32>
    %c0_i32_3 = arith.constant 0 : i32
    %12 = vector.broadcast %c0_i32_3 : i32 to vector<256x128xi32>
    %13 = arith.cmpi ne, %11, %12 : vector<256x128xi32>
    %c0_i32_4 = arith.constant 0 : i32
    %14 = vector.broadcast %c0_i32_4 : i32 to vector<256x128xi32>
    %15 = arith.cmpi slt, %11, %14 : vector<256x128xi32>
    %c0_i32_5 = arith.constant 0 : i32
    %16 = arith.cmpi slt, %9, %c0_i32_5 : i32
    %17 = vector.broadcast %16 : i1 to vector<256x128xi1>
    %18 = vector.broadcast %17 : vector<256x128xi1> to vector<256x128xi1>
    %19 = arith.xori %15, %18 : vector<256x128xi1>
    %20 = arith.andi %19, %13 : vector<256x128xi1>
    %21 = vector.broadcast %9 : i32 to vector<256x128xi32>
    %22 = arith.addi %11, %21 : vector<256x128xi32>
    %23 = arith.select %20, %22, %11 : vector<256x128xi1>, vector<256x128xi32>
    %24 = arith.cmpi eq, %23, %7 : vector<256x128xi32>
    %cst_6 = arith.constant 0.000000e+00 : f32
    %25 = vector.broadcast %cst_6 : f32 to vector<256x128xf32>
    %26 = arith.select %24, %2, %25 : vector<256x128xi1>, vector<256x128xf32>
    %cst_7 = arith.constant dense<0.000000e+00> : vector<256xf32>
    %27 = vector.multi_reduction <add>, %26, %cst_7 [1] : vector<256x128xf32> to vector<256xf32>
    %28 = vector.shape_cast %27 : vector<256xf32> to vector<256x1xf32>
    %c0_8 = arith.constant 0 : index
    %c0_9 = arith.constant 0 : index
    %29 = vector.load %arg3[%c0_8, %c0_9] : memref<256x1xf32, #tpu.memory_space<vmem>>, vector<256x1xf32>
    %30 = arith.addf %28, %29 : vector<256x1xf32>
    %c0_10 = arith.constant 0 : index
    %c0_11 = arith.constant 0 : index
    %31 = vector.load %arg4[%c0_10, %c0_11] : memref<256x1xf32, #tpu.memory_space<vmem>>, vector<256x1xf32>
    tpu.vector_store %arg4[%c0_10, %c0_11], %30 {strides = array<i32>} : memref<256x1xf32, #tpu.memory_space<vmem>>, vector<256x1xf32>,
    return
  }
  func.func @transform_0(%arg0: i32) -> (i32, i32) {
    %c0_i32 = arith.constant 0 : i32
    %c0_i32_0 = arith.constant 0 : i32
    return %arg0, %c0_i32 : i32, i32
  }
  func.func @transform_1(%arg0: i32) -> (i32, i32) {
    %c0_i32 = arith.constant 0 : i32
    %c0_i32_0 = arith.constant 0 : i32
    %c0_i32_1 = arith.constant 0 : i32
    return %c0_i32, %c0_i32_0 : i32, i32
  }
  func.func @transform_2(%arg0: i32) -> (i32, i32) {
    %c0_i32 = arith.constant 0 : i32
    %c0_i32_0 = arith.constant 0 : i32
    return %arg0, %c0_i32 : i32, i32
  }
  func.func @transform_3(%arg0: i32) -> (i32, i32) {
    %c0_i32 = arith.constant 0 : i32
    %c0_i32_0 = arith.constant 0 : i32
    return %arg0, %c0_i32 : i32, i32
  }
}

</mosaic_0001>

<bundles_post_ra>
// kernel: tpu_custom_call.1
= control target key start
LH: loop header
LB: loop body
LE: loop exit
PB: predicated region body
PF: predicated region fallthrough
CT: control target
= control target key end

     0   :  { %8 = vsyncpa [#allocation3], 0  ;;  %s4269_s0 = inlined_call_operand.hbm [shape: f32[500,1024], index: 0, kind: input, shape index: {}]   ;;  %s4270_s1 = inlined_call_operand.hbm [shape: f32[1024,128], index: 1, kind: input, shape index: {}]   ;;  %s4271_s2 = inlined_call_operand.vmem [shape: f32[500,1], index: 2, kind: input, shape index: {}]   ;;  %s4272_s3 = inlined_call_operand.vmem [shape: f32[500,1], index: 3, kind: output, shape index: {}]  }
   0x1   :  { %10 = vsyncpa [#allocation3 + $0x1], 0 }
   0x2   :  { %11 = vsyncpa [#allocation5], 0  ;;  %s2959_s12 = smov 0   ;;  %s2961_s13 = smov 0  }
   0x3   :  { %s2963_s14 = smov 0   ;;  %s2965_s15 = smov 0  }
   0x4 LB: > { %s2978_s16 = sadd.s32 4294967295, %s2899_s15   ;;  %s2981_s17 = sadd.s32 1, %s2899_s15   ;;  %s2899_s15 = sphi %s2965_s15, %s4351_s15   ;;  %s2895_s14 = sphi %s2963_s14, %s4350_s14   ;;  %s2891_s13 = sphi %s2961_s13, %s4349_s13   ;;  %s2887_s12 = sphi %s2959_s12, %s4348_s12  }
   0x5   : > { %s21_s18 = ssub.s32 %s2899_s15, %s2981_s17  ;;  %s24_s19 = sadd.s32 1, %s2895_s14 }
   0x6   : > { %p22_p0 = scmp.eq.s32.totalorder %s21_s18, 0  ;;  %p31_p1 = scmp.ne.s32.totalorder %s2895_s14, %s2891_s13 }
   0x7   : > { %p32_p2 = scmp.eq.s32.totalorder %s2899_s15, 0  ;;  %p37_p3 = scmp.ne.s32.totalorder %s2891_s13, %s2887_s12 }
   0x8   : > { %s2991_s20 = scalar_select %p22_p0, %s2895_s14, %s24_s19  }
   0x9   : > { %p2993_p4 = por %p32_p2, %p31_p1  ;;  %p4273_p5 = scmp.eq.s32.totalorder %s2978_s16, 0 }
   0xa   : > { %p108_p6 = scmp.eq.s32.totalorder %s2978_s16, 1  ;;  %p2606_p7 = scmp.ge.s32.totalorder %s2899_s15, 1 }
   0xb   : > { %p3002_p8 = por %p4273_p5, %p37_p3  ;;  %p121_p9 = scmp.lt.s32.totalorder %s2899_s15, 3 }
   0xc   : > { %p3007_p10 = por %p108_p6, %p31_p1  ;;  %s132_s27 = sshll.u32 %s4270_s1, 4  ;;  %s133_s27 = int_to_ptr.hbm [resolvable:$true] %s132_s27 }
   0xd   : > { %p3011_p11 = pnand %p2606_p7, %p121_p9  ;;  %s2933_s28 = smov [#allocation4]  }
   0xe   : > { %s134_s29 = sshll.u32 %s2933_s28, 4  ;;  %s2934_s30 = smov 128   ;;  %s135_s29 = int_to_ptr.vmem [resolvable:$true] %s134_s29 }
   0xf   : > { %p2653_p12 = pneg %p3011_p11  ;;  %s2935_s4 = smov 8  }
  0x10   : > { %p2608_p0 = scmp.ge.s32.totalorder %s2899_s15, 2 }
  0x11   : > { %p2654_p13 = pnand %p2653_p12, %p4273_p5 }
  0x12   : > { %144 = sbr.rel (%p2608_p0) target bundleno = 59 (0x3b), region = 20 }
  0x13   : > { %2656 = dma.hbm_to_vmem [thread:$0]  (!%p2654_p13), %s133_s27, 16384, %s135_s29, [#allocation5], %s2934_s30, %s2934_s30, %s2935_s4  }
  0x17   : > { %147 = sbr.rel (!%p2993_p4) target bundleno = 59 (0x3b), region = 24  ;;  %s148_s5 = sand.u32 (%p2993_p4), 1, %s2895_s14  }
  0x18   : > { %s2610_s6 = sshll.u32 (%p2993_p4), %s2899_s15, 5  ;;  %s2609_s7 = sshll.u32 (%p2993_p4), %s148_s5, 11 }
  0x19   : > { %s154_s8 = ssub.s32 (%p2993_p4), 63, %s2610_s6  ;;  %s3030_s12 = scalar_lea.sflag (%p2993_p4), [#allocation3], %s148_s5 }
  0x1a   : > { %p155_p1 = scmp.lt.s32.totalorder (%p2993_p4), %s154_s8, 32  ;;  %s152_s18 = scalar_lea.vmem (%p2993_p4), [#allocation2], %s2609_s7 }
  0x1c   : > { %s4353_s8 = smov (!%p155_p1, %s154_s8), 32 }
  0x1d   : > { %s2642_s9 = sshll.u32 %s4353_s8, 6 }
  0x1e   : > { %s159_s10 = ssub.s32 2048, %s2642_s9 }
  0x1f   : > { %s160_s11 = sshll.u32 %s159_s10, 4 }
  0x20   : > { %161 = vsyncadd %s3030_s12, %s160_s11  ;;  %p3033_p2 = scmp.ne.s32.totalorder %s2642_s9, 0  ;;  %s2644_s21 = sshll.u32 %s2899_s15, 11 }
  0x21   : > { %s165_s27 = scalar_lea.hbm %s4269_s0, %s2644_s21  ;;  %s3041_s28 = sshll.u32 %s152_s18, 4  ;;  %s170_s28 = int_to_ptr.vmem [resolvable:$true] %s3041_s28 }
  0x22   : > { %s167_s29 = sshll.u32 %s165_s27, 4  ;;  %s2617_s30 = sshll.u32 %s4353_s8, 10  ;;  %s3044_s29 = int_to_ptr.hbm [resolvable:$true] %s167_s29 }
  0x23   : > { %s2790_s4 = sshra.s32 %s3044_s29, 4  ;;  %s2792_s5 = sshrl.u32 %s2617_s30, 4  ;;  %s2791_s4 = int_to_ptr.hbm [resolvable:$true] %s2790_s4 }
  0x24   : > { %s2797_s6 = scalar_lea.hbm %s2791_s4, %s2792_s5  ;;  %s2801_s9 = scalar_lea.hbm %s4269_s0, 4032 }
  0x25   : > { %p2798_p3 = scmp.ne.s32.totalorder %s2791_s4, %s2797_s6  ;;  %p2802_p7 = scmp.lt.s32.totalorder %s2791_s4, %s4269_s0 }
  0x26   : > { %p2803_p9 = scmp.lt.s32.totalorder %s2801_s9, %s2797_s6 }
  0x27   : > { %p2799_p4 = pnand %p2798_p3, %p3033_p2 }
  0x28   : > { %p2804_p12 = por %p2803_p9, %p2802_p7 }
  0x29   : > { %p2800_p6 = pneg %p2799_p4 }
  0x2b   : > { %p2805_p13 = pnand %p2804_p12, %p2800_p6 }
  0x2d   : > { %2808 = shalt.err (!%p2805_p13)
}
  0x2e   : > { %s2809_s18 = sshra.s32 %s170_s28, 4  ;;  %s2936_s25 = smov [#allocation2]   ;;  %s2810_s18 = int_to_ptr.vmem [resolvable:$true] %s2809_s18 }
  0x2f   : > { %s2816_s21 = scalar_lea.vmem %s2810_s18, %s2792_s5  ;;  %s2820_s26 = scalar_lea.vmem %s2936_s25, 4096 }
  0x30   : > { %p2817_p0 = scmp.ne.s32.totalorder %s2810_s18, %s2816_s21  ;;  %p2822_p4 = scmp.lt.s32.totalorder %s2820_s26, %s2816_s21 }
  0x32   : > { %p2818_p1 = pnand %p2817_p0, %p3033_p2 }
  0x34   : > { %p2819_p3 = pneg %p2818_p1 }
  0x36   : > { %p2824_p5 = pnand %p2822_p4, %p2819_p3 }
  0x38   : > { %2827 = shalt.err (!%p2824_p5)
}
  0x39   : > { %s2937_s27 = smov 1024   ;;  %s2938_s4 = smov 64  }
  0x3a   : > { %175 = dma.hbm_to_vmem [thread:$0]  (%p3033_p2), %s3044_s29, %s2617_s30, %s170_s28, %s3030_s12, %s2937_s27, %s2937_s27, %s2938_s4  }
  0x3b PF: > { %198 = sbr.rel (%p3011_p11) target bundleno = 926 (0x39e), region = 32  ;;  %s3073_s5 = sand.u32 (!%p3011_p11), 1, %s2891_s13  }
  0x3c   : > { %s2619_s6 = sshll.u32 (!%p3011_p11), %s3073_s5, 11  ;;  %s201_s15 = scalar_lea.sflag (!%p3011_p11), [#allocation3], %s3073_s5 }
  0x3d   : > { %s3077_s7 = scalar_lea.vmem (!%p3011_p11), [#allocation2], %s2619_s6 }
  0x40   : > { %2878 = dma.done.wait (%p3002_p8), %s201_s15, 32768  }
  0x41   : > { %2880 = vsyncadd (%p3002_p8), %s201_s15, 4294934528  ;;  %p4279_p5 = scmp.eq.s32.totalorder %s2978_s16, 0 }
  0x43   : > { %2882 = dma.done.wait (%p4279_p5), [#allocation5], 16384   ;;  %p4280_p11 = pmov %p4279_p5 }
  0x44   : > { %v537_v0 = vld [vmem:[#allocation4 + $0x78] sm:$0xff]  ;;  %v536_v2 = vld [vmem:[#allocation4 + $0x70] sm:$0xff]  ;;  %v535_v6 = vld [vmem:[#allocation4 + $0x68] sm:$0xff]  ;;  %s2624_s22 = sshll.u32 %s2978_s16, 8  ;;  %s3697_s24 = sshll.u32 %s2978_s16, 5 }
  0x45   : > { %2884 = vsyncadd (%p4280_p11), [#allocation5], 4294950912  ;;  %v569_v1 = vld [vmem:[#allocation4 + $0x178] sm:$0xff]  ;;  %650 = vmatpush.msra.mxu0 %v537_v0  ;;  %v568_v4 = vld [vmem:[#allocation4 + $0x170] sm:$0xff]  ;;  %p252_p8 = scmp.lt.s32.totalorder %s3697_s24, 62  ;;  %s2621_s30 = sshll.u32 %s3073_s5, 8 }
  0x46   : > { %876 = vmatpush.msra.mxu2 %v569_v1  ;;  %v553_v3 = vld [vmem:[#allocation4 + $0xf8] sm:$0xff]  ;;  %v552_v7 = vld [vmem:[#allocation4 + $0xf0] sm:$0xff]  ;;  %v567_v8 = vld [vmem:[#allocation4 + $0x168] sm:$0xff]  ;;  %s3776_s9 = scalar_lea.vmem [#allocation6], %s2621_s30   ;;  %s2240_s10 = ssub.s32 (%p3007_p10), 63, %s3697_s24 }
  0x47   : > { %v585_v5 = vld [vmem:[#allocation4 + $0x1f8] sm:$0xff]  ;;  %763 = vmatpush.msra.mxu1 %v553_v3  ;;  %651 = vmatpush.msra.mxu0 %v536_v2  ;;  %v584_v9 = vld [vmem:[#allocation4 + $0x1f0] sm:$0xff]  ;;  %v551_v10 = vld [vmem:[#allocation4 + $0xe8] sm:$0xff]  ;;  %s3726_s8 = scalar_select %p252_p8, %s3697_s24, 62 }
  0x48   : > { %989 = vmatpush.msra.mxu3 %v585_v5  ;;  %877 = vmatpush.msra.mxu2 %v568_v4  ;;  %v534_v11 = vld [vmem:[#allocation4 + $0x60] sm:$0xff]  ;;  %v583_v13 = vld [vmem:[#allocation4 + $0x1e8] sm:$0xff]  ;;  %v533_v16 = vld [vmem:[#allocation4 + $0x58] sm:$0xff]  ;;  %s4131_s21 = scalar_lea.vmem (%p3007_p10), %s4272_s3, %s2624_s22   ;;  %p2241_p2 = scmp.lt.s32.totalorder (%p3007_p10), %s2240_s10, 32 }
  0x49   : > { %764 = vmatpush.msra.mxu1 %v552_v7  ;;  %v566_v12 = vld [vmem:[#allocation4 + $0x160] sm:$0xff]  ;;  %652 = vmatpush.msra.mxu0 %v535_v6  ;;  %v565_v17 = vld [vmem:[#allocation4 + $0x158] sm:$0xff]  ;;  %v532_v20 = vld [vmem:[#allocation4 + $0x50] sm:$0xff]  ;;  %s2623_s12 = sshll.u32 %s3726_s8, 3 }
  0x4a   : > { %990 = vmatpush.msra.mxu3 %v584_v9  ;;  %878 = vmatpush.msra.mxu2 %v567_v8  ;;  %v550_v14 = vld [vmem:[#allocation4 + $0xe0] sm:$0xff]  ;;  %v549_v18 = vld [vmem:[#allocation4 + $0xd8] sm:$0xff]  ;;  %v564_v21 = vld [vmem:[#allocation4 + $0x150] sm:$0xff]  ;;  %s3751_s29 = scalar_lea.vmem %s4271_s2, %s2623_s12 }
  0x4b   : > { %v582_v15 = vld [vmem:[#allocation4 + $0x1e0] sm:$0xff]  ;;  %765 = vmatpush.msra.mxu1 %v551_v10  ;;  %653 = vmatpush.msra.mxu0 %v534_v11  ;;  %v581_v19 = vld [vmem:[#allocation4 + $0x1d8] sm:$0xff]  ;;  %v548_v22 = vld [vmem:[#allocation4 + $0xd0] sm:$0xff] }
  0x4c   : > { %991 = vmatpush.msra.mxu3 %v583_v13  ;;  %879 = vmatpush.msra.mxu2 %v566_v12  ;;  %v580_v23 = vld [vmem:[#allocation4 + $0x1d0] sm:$0xff]  ;;  %v531_v24 = vld [vmem:[#allocation4 + $0x48] sm:$0xff]  ;;  %v530_v28 = vld [vmem:[#allocation4 + $0x40] sm:$0xff] }
  0x4d   : > { %766 = vmatpush.msra.mxu1 %v550_v14  ;;  %654 = vmatpush.msra.mxu0 %v533_v16  ;;  %v563_v25 = vld [vmem:[#allocation4 + $0x148] sm:$0xff]  ;;  %v562_v29 = vld [vmem:[#allocation4 + $0x140] sm:$0xff]  ;;  %v529_v32 = vld [vmem:[#allocation4 + $0x38] sm:$0xff] }
  0x4e   : > { %992 = vmatpush.msra.mxu3 %v582_v15  ;;  %880 = vmatpush.msra.mxu2 %v565_v17  ;;  %v547_v26 = vld [vmem:[#allocation4 + $0xc8] sm:$0xff]  ;;  %v546_v30 = vld [vmem:[#allocation4 + $0xc0] sm:$0xff]  ;;  %v561_v33 = vld [vmem:[#allocation4 + $0x138] sm:$0xff] }
  0x4f   : > { %767 = vmatpush.msra.mxu1 %v549_v18  ;;  %655 = vmatpush.msra.mxu0 %v532_v20  ;;  %v579_v27 = vld [vmem:[#allocation4 + $0x1c8] sm:$0xff]  ;;  %v578_v31 = vld [vmem:[#allocation4 + $0x1c0] sm:$0xff]  ;;  %v545_v34 = vld [vmem:[#allocation4 + $0xb8] sm:$0xff] }
  0x50   : > { %993 = vmatpush.msra.mxu3 %v581_v19  ;;  %881 = vmatpush.msra.mxu2 %v564_v21  ;;  %v577_v35 = vld [vmem:[#allocation4 + $0x1b8] sm:$0xff]  ;;  %v528_v36 = vld [vmem:[#allocation4 + $0x30] sm:$0xff]  ;;  %v527_v40 = vld [vmem:[#allocation4 + $0x28] sm:$0xff] }
  0x51   : > { %768 = vmatpush.msra.mxu1 %v548_v22  ;;  %656 = vmatpush.msra.mxu0 %v531_v24  ;;  %v560_v37 = vld [vmem:[#allocation4 + $0x130] sm:$0xff]  ;;  %v559_v41 = vld [vmem:[#allocation4 + $0x128] sm:$0xff]  ;;  %v526_v44 = vld [vmem:[#allocation4 + $0x20] sm:$0xff] }
  0x52   : > { %994 = vmatpush.msra.mxu3 %v580_v23  ;;  %882 = vmatpush.msra.mxu2 %v563_v25  ;;  %v544_v38 = vld [vmem:[#allocation4 + $0xb0] sm:$0xff]  ;;  %v543_v42 = vld [vmem:[#allocation4 + $0xa8] sm:$0xff]  ;;  %v558_v45 = vld [vmem:[#allocation4 + $0x120] sm:$0xff] }
  0x53   : > { %769 = vmatpush.msra.mxu1 %v547_v26  ;;  %657 = vmatpush.msra.mxu0 %v530_v28  ;;  %v576_v39 = vld [vmem:[#allocation4 + $0x1b0] sm:$0xff]  ;;  %v575_v43 = vld [vmem:[#allocation4 + $0x1a8] sm:$0xff]  ;;  %v542_v46 = vld [vmem:[#allocation4 + $0xa0] sm:$0xff] }
  0x54   : > { %995 = vmatpush.msra.mxu3 %v579_v27  ;;  %883 = vmatpush.msra.mxu2 %v562_v29  ;;  %v574_v47 = vld [vmem:[#allocation4 + $0x1a0] sm:$0xff]  ;;  %v525_v48 = vld [vmem:[#allocation4 + $0x18] sm:$0xff]  ;;  %v524_v52 = vld [vmem:[#allocation4 + $0x10] sm:$0xff] }
  0x55   : > { %770 = vmatpush.msra.mxu1 %v546_v30  ;;  %658 = vmatpush.msra.mxu0 %v529_v32  ;;  %v557_v49 = vld [vmem:[#allocation4 + $0x118] sm:$0xff]  ;;  %v556_v53 = vld [vmem:[#allocation4 + $0x110] sm:$0xff]  ;;  %v523_v56 = vld [vmem:[#allocation4 + $0x8] sm:$0xff] }
  0x56   : > { %996 = vmatpush.msra.mxu3 %v578_v31  ;;  %884 = vmatpush.msra.mxu2 %v561_v33  ;;  %v541_v50 = vld [vmem:[#allocation4 + $0x98] sm:$0xff]  ;;  %v540_v54 = vld [vmem:[#allocation4 + $0x90] sm:$0xff]  ;;  %v555_v57 = vld [vmem:[#allocation4 + $0x108] sm:$0xff] }
  0x57   : > { %771 = vmatpush.msra.mxu1 %v545_v34  ;;  %659 = vmatpush.msra.mxu0 %v528_v36  ;;  %v573_v51 = vld [vmem:[#allocation4 + $0x198] sm:$0xff]  ;;  %v572_v55 = vld [vmem:[#allocation4 + $0x190] sm:$0xff]  ;;  %v539_v58 = vld [vmem:[#allocation4 + $0x88] sm:$0xff] }
  0x58   : > { %997 = vmatpush.msra.mxu3 %v577_v35  ;;  %885 = vmatpush.msra.mxu2 %v560_v37  ;;  %v571_v59 = vld [vmem:[#allocation4 + $0x188] sm:$0xff]  ;;  %v522_v60 = vld [vmem:[#allocation4] sm:$0xff]  ;;  %v268_v63 = vld [vmem:[%s3077_s7 + $0x10] sm:$0xff] }
  0x59   : > { %772 = vmatpush.msra.mxu1 %v544_v38  ;;  %660 = vmatpush.msra.mxu0 %v527_v40  ;;  %v554_v61 = vld [vmem:[#allocation4 + $0x100] sm:$0xff]  ;;  %v633_v0 = vld [vmem:[#allocation4 + $0x378] sm:$0xff]  ;;  %v267_v3 = vld [vmem:[%s3077_s7 + $0x8] sm:$0xff] }
  0x5a   : > { %998 = vmatpush.msra.mxu3 %v576_v39  ;;  %886 = vmatpush.msra.mxu2 %v559_v41  ;;  %v266_v62 = vld [vmem:[%s3077_s7] sm:$0xff]  ;;  %v269_v4 = vld [vmem:[%s3077_s7 + $0x18] sm:$0xff]  ;;  %v632_v8 = vld [vmem:[#allocation4 + $0x370] sm:$0xff] }
  0x5b   : > { %773 = vmatpush.msra.mxu1 %v543_v42  ;;  %661 = vmatpush.msra.mxu0 %v526_v44  ;;  %v538_v1 = vld [vmem:[#allocation4 + $0x80] sm:$0xff]  ;;  %v601_v5 = vld [vmem:[#allocation4 + $0x278] sm:$0xff]  ;;  %v600_v9 = vld [vmem:[#allocation4 + $0x270] sm:$0xff] }
  0x5c   : > { %999 = vmatpush.msra.mxu3 %v575_v43  ;;  %887 = vmatpush.msra.mxu2 %v558_v45  ;;  %v570_v2 = vld [vmem:[#allocation4 + $0x180] sm:$0xff]  ;;  %v649_v6 = vld [vmem:[#allocation4 + $0x3f8] sm:$0xff]  ;;  %v648_v10 = vld [vmem:[#allocation4 + $0x3f0] sm:$0xff] }
  0x5d   : > { %774 = vmatpush.msra.mxu1 %v542_v46  ;;  %662 = vmatpush.msra.mxu0 %v525_v48  ;;  %v617_v7 = vld [vmem:[#allocation4 + $0x2f8] sm:$0xff]  ;;  %v616_v11 = vld [vmem:[#allocation4 + $0x2f0] sm:$0xff]  ;;  %v631_v12 = vld [vmem:[#allocation4 + $0x368] sm:$0xff] }
  0x5e   : > { %1000 = vmatpush.msra.mxu3 %v574_v47  ;;  %888 = vmatpush.msra.mxu2 %v557_v49  ;;  %v599_v13 = vld [vmem:[#allocation4 + $0x268] sm:$0xff]  ;;  %v274_v14 = vld [vmem:[%s3077_s7 + $0x40] sm:$0xff]  ;;  %v276_v15 = vld [vmem:[%s3077_s7 + $0x50] sm:$0xff] }
  0x5f   : > { %775 = vmatpush.msra.mxu1 %v541_v50  ;;  %663 = vmatpush.msra.mxu0 %v524_v52  ;;  %v647_v16 = vld [vmem:[#allocation4 + $0x3e8] sm:$0xff]  ;;  %v277_v19 = vld [vmem:[%s3077_s7 + $0x58] sm:$0xff]  ;;  %v282_v20 = vld [vmem:[%s3077_s7 + $0x80] sm:$0xff] }
  0x60   : > { %1001 = vmatpush.msra.mxu3 %v573_v51  ;;  %889 = vmatpush.msra.mxu2 %v556_v53  ;;  %v615_v17 = vld [vmem:[#allocation4 + $0x2e8] sm:$0xff]  ;;  %v284_v21 = vld [vmem:[%s3077_s7 + $0x90] sm:$0xff]  ;;  %v285_v23 = vld [vmem:[%s3077_s7 + $0x98] sm:$0xff] }
  0x61   : > { %776 = vmatpush.msra.mxu1 %v540_v54  ;;  %664 = vmatpush.msra.mxu0 %v523_v56  ;;  %v275_v18 = vld [vmem:[%s3077_s7 + $0x48] sm:$0xff]  ;;  %v630_v24 = vld [vmem:[#allocation4 + $0x360] sm:$0xff]  ;;  %v292_v29 = vld [vmem:[%s3077_s7 + $0xd0] sm:$0xff] }
  0x62   : > { %1002 = vmatpush.msra.mxu3 %v572_v55  ;;  %890 = vmatpush.msra.mxu2 %v555_v57  ;;  %v283_v22 = vld [vmem:[%s3077_s7 + $0x88] sm:$0xff]  ;;  %v598_v25 = vld [vmem:[#allocation4 + $0x260] sm:$0xff]  ;;  %v293_v31 = vld [vmem:[%s3077_s7 + $0xd8] sm:$0xff] }
  0x63   : > { %777 = vmatpush.msra.mxu1 %v539_v58  ;;  %665 = vmatpush.msra.mxu0 %v522_v60  ;;  %v646_v26 = vld [vmem:[#allocation4 + $0x3e0] sm:$0xff]  ;;  %v291_v30 = vld [vmem:[%s3077_s7 + $0xc8] sm:$0xff]  ;;  %v300_v33 = vld [vmem:[%s3077_s7 + $0x110] sm:$0xff] }
  0x64   : > { %1003 = vmatpush.msra.mxu3 %v571_v59  ;;  %891 = vmatpush.msra.mxu2 %v554_v61  ;;  %v614_v27 = vld [vmem:[#allocation4 + $0x2e0] sm:$0xff]  ;;  %v299_v34 = vld [vmem:[%s3077_s7 + $0x108] sm:$0xff]  ;;  %v301_v35 = vld [vmem:[%s3077_s7 + $0x118] sm:$0xff] }
  0x65   : > { %666 = vmatmul.f32.vlgmr.msra.gmra.mxu0 %v266_v62  ;;  %892 = vmatmul.f32.vlgmr.msra.gmra.mxu2 %v268_v63  ;;  %v290_v28 = vld [vmem:[%s3077_s7 + $0xc0] sm:$0xff]  ;;  %v629_v36 = vld [vmem:[#allocation4 + $0x358] sm:$0xff]  ;;  %v308_v41 = vld [vmem:[%s3077_s7 + $0x150] sm:$0xff] }
  0x66   : > { %1328 = vmatpush.msrb.mxu2 %v633_v0  ;;  %778 = vmatpush.msra.mxu1 %v538_v1  ;;  %v298_v32 = vld [vmem:[%s3077_s7 + $0x100] sm:$0xff]  ;;  %v597_v37 = vld [vmem:[#allocation4 + $0x258] sm:$0xff]  ;;  %v307_v42 = vld [vmem:[%s3077_s7 + $0x148] sm:$0xff] }
  0x67   : > { %1004 = vmatpush.msra.mxu3 %v570_v2  ;;  %779 = vmatmul.f32.vlgmr.msra.gmra.mxu1 %v267_v3  ;;  %v645_v38 = vld [vmem:[#allocation4 + $0x3d8] sm:$0xff]  ;;  %v306_v40 = vld [vmem:[%s3077_s7 + $0x140] sm:$0xff]  ;;  %v316_v45 = vld [vmem:[%s3077_s7 + $0x190] sm:$0xff] }
  0x68   : > { %1005 = vmatmul.f32.vlgmr.msra.gmra.mxu3 %v269_v4  ;;  %1102 = vmatpush.msrb.mxu0 %v601_v5  ;;  %v613_v39 = vld [vmem:[#allocation4 + $0x2d8] sm:$0xff]  ;;  %v314_v44 = vld [vmem:[%s3077_s7 + $0x180] sm:$0xff]  ;;  %v315_v46 = vld [vmem:[%s3077_s7 + $0x188] sm:$0xff] }
  0x69   : > { %1441 = vmatpush.msrb.mxu3 %v649_v6  ;;  %1215 = vmatpush.msrb.mxu1 %v617_v7  ;;  %v309_v43 = vld [vmem:[%s3077_s7 + $0x158] sm:$0xff]  ;;  %v628_v48 = vld [vmem:[#allocation4 + $0x350] sm:$0xff]  ;;  %v322_v52 = vld [vmem:[%s3077_s7 + $0x1c0] sm:$0xff] }
  0x6a   : > { %1329 = vmatpush.msrb.mxu2 %v632_v8  ;;  %1103 = vmatpush.msrb.mxu0 %v600_v9  ;;  %v317_v47 = vld [vmem:[%s3077_s7 + $0x198] sm:$0xff]  ;;  %v596_v49 = vld [vmem:[#allocation4 + $0x250] sm:$0xff]  ;;  %v323_v54 = vld [vmem:[%s3077_s7 + $0x1c8] sm:$0xff] }
  0x6b   : > { %1442 = vmatpush.msrb.mxu3 %v648_v10  ;;  %1216 = vmatpush.msrb.mxu1 %v616_v11  ;;  %v644_v50 = vld [vmem:[#allocation4 + $0x3d0] sm:$0xff]  ;;  %v325_v55 = vld [vmem:[%s3077_s7 + $0x1d8] sm:$0xff]  ;;  %v330_v56 = vld [vmem:[%s3077_s7 + $0x200] sm:$0xff] }
  0x6c   : > { %1330 = vmatpush.msrb.mxu2 %v631_v12  ;;  %1104 = vmatpush.msrb.mxu0 %v599_v13  ;;  %v612_v51 = vld [vmem:[#allocation4 + $0x2d0] sm:$0xff]  ;;  %v331_v58 = vld [vmem:[%s3077_s7 + $0x208] sm:$0xff]  ;;  %v333_v59 = vld [vmem:[%s3077_s7 + $0x218] sm:$0xff] }
  0x6d   : > { %669 = vmatmul.f32.gmra.mxu0 %v274_v14  ;;  %895 = vmatmul.f32.gmra.mxu2 %v276_v15  ;;  %v324_v53 = vld [vmem:[%s3077_s7 + $0x1d0] sm:$0xff]  ;;  %v627_v60 = vld [vmem:[#allocation4 + $0x348] sm:$0xff]  ;;  %v338_v0 = vld [vmem:[%s3077_s7 + $0x240] sm:$0xff] }
  0x6e   : > { %1443 = vmatpush.msrb.mxu3 %v647_v16  ;;  %1217 = vmatpush.msrb.mxu1 %v615_v17  ;;  %v332_v57 = vld [vmem:[%s3077_s7 + $0x210] sm:$0xff]  ;;  %v595_v61 = vld [vmem:[#allocation4 + $0x248] sm:$0xff]  ;;  %v341_v3 = vld [vmem:[%s3077_s7 + $0x258] sm:$0xff] }
  0x6f   : > { %782 = vmatmul.f32.gmra.mxu1 %v275_v18  ;;  %1331 = vmatpush.msrb.mxu2 %v630_v24  ;;  %v643_v62 = vld [vmem:[#allocation4 + $0x3c8] sm:$0xff]  ;;  %v340_v1 = vld [vmem:[%s3077_s7 + $0x250] sm:$0xff]  ;;  %v346_v4 = vld [vmem:[%s3077_s7 + $0x280] sm:$0xff] }
  0x70   : > { %1008 = vmatmul.f32.gmra.mxu3 %v277_v19  ;;  %1105 = vmatpush.msrb.mxu0 %v598_v25  ;;  %v611_v63 = vld [vmem:[#allocation4 + $0x2c8] sm:$0xff]  ;;  %v348_v5 = vld [vmem:[%s3077_s7 + $0x290] sm:$0xff]  ;;  %v349_v7 = vld [vmem:[%s3077_s7 + $0x298] sm:$0xff] }
  0x71   : > { %1444 = vmatpush.msrb.mxu3 %v646_v26  ;;  %1218 = vmatpush.msrb.mxu1 %v614_v27  ;;  %v339_v2 = vld [vmem:[%s3077_s7 + $0x248] sm:$0xff]  ;;  %v626_v8 = vld [vmem:[#allocation4 + $0x340] sm:$0xff]  ;;  %v356_v13 = vld [vmem:[%s3077_s7 + $0x2d0] sm:$0xff] }
  0x72   : > { %1332 = vmatpush.msrb.mxu2 %v629_v36  ;;  %1106 = vmatpush.msrb.mxu0 %v597_v37  ;;  %v347_v6 = vld [vmem:[%s3077_s7 + $0x288] sm:$0xff]  ;;  %v594_v9 = vld [vmem:[#allocation4 + $0x240] sm:$0xff]  ;;  %v357_v15 = vld [vmem:[%s3077_s7 + $0x2d8] sm:$0xff] }
  0x73   : > { %1445 = vmatpush.msrb.mxu3 %v645_v38  ;;  %1219 = vmatpush.msrb.mxu1 %v613_v39  ;;  %v642_v10 = vld [vmem:[#allocation4 + $0x3c0] sm:$0xff]  ;;  %v355_v14 = vld [vmem:[%s3077_s7 + $0x2c8] sm:$0xff]  ;;  %v364_v17 = vld [vmem:[%s3077_s7 + $0x310] sm:$0xff] }
  0x74   : > { %1333 = vmatpush.msrb.mxu2 %v628_v48  ;;  %1107 = vmatpush.msrb.mxu0 %v596_v49  ;;  %v610_v11 = vld [vmem:[#allocation4 + $0x2c0] sm:$0xff]  ;;  %v363_v18 = vld [vmem:[%s3077_s7 + $0x308] sm:$0xff]  ;;  %v365_v19 = vld [vmem:[%s3077_s7 + $0x318] sm:$0xff] }
  0x75   : > { %672 = vmatmul.f32.gmra.mxu0 %v282_v20  ;;  %898 = vmatmul.f32.gmra.mxu2 %v284_v21  ;;  %v354_v12 = vld [vmem:[%s3077_s7 + $0x2c0] sm:$0xff]  ;;  %v625_v20 = vld [vmem:[#allocation4 + $0x338] sm:$0xff]  ;;  %v372_v25 = vld [vmem:[%s3077_s7 + $0x350] sm:$0xff] }
  0x76   : > { %1446 = vmatpush.msrb.mxu3 %v644_v50  ;;  %1220 = vmatpush.msrb.mxu1 %v612_v51  ;;  %v362_v16 = vld [vmem:[%s3077_s7 + $0x300] sm:$0xff]  ;;  %v593_v21 = vld [vmem:[#allocation4 + $0x238] sm:$0xff]  ;;  %v371_v26 = vld [vmem:[%s3077_s7 + $0x348] sm:$0xff] }
  0x77   : > { %785 = vmatmul.f32.gmra.mxu1 %v283_v22  ;;  %1334 = vmatpush.msrb.mxu2 %v627_v60  ;;  %v641_v22 = vld [vmem:[#allocation4 + $0x3b8] sm:$0xff]  ;;  %v370_v24 = vld [vmem:[%s3077_s7 + $0x340] sm:$0xff]  ;;  %v388_v37 = vld [vmem:[%s3077_s7 + $0x3d0] sm:$0xff] }
  0x78   : > { %1011 = vmatmul.f32.gmra.mxu3 %v285_v23  ;;  %1108 = vmatpush.msrb.mxu0 %v595_v61  ;;  %v609_v23 = vld [vmem:[#allocation4 + $0x2b8] sm:$0xff]  ;;  %v386_v36 = vld [vmem:[%s3077_s7 + $0x3c0] sm:$0xff]  ;;  %v387_v38 = vld [vmem:[%s3077_s7 + $0x3c8] sm:$0xff] }
  0x79   : > { %1447 = vmatpush.msrb.mxu3 %v643_v62  ;;  %1221 = vmatpush.msrb.mxu1 %v611_v63  ;;  %v373_v27 = vld [vmem:[%s3077_s7 + $0x358] sm:$0xff]  ;;  %v591_v49 = vld [vmem:[#allocation4 + $0x228] sm:$0xff] }
  0x7a   : > { %1335 = vmatpush.msrb.mxu2 %v626_v8  ;;  %1109 = vmatpush.msrb.mxu0 %v594_v9  ;;  %v389_v39 = vld [vmem:[%s3077_s7 + $0x3d8] sm:$0xff]  ;;  %v639_v50 = vld [vmem:[#allocation4 + $0x3a8] sm:$0xff]  ;;  %v622_v8 = vld [vmem:[#allocation4 + $0x320] sm:$0xff] }
  0x7b   : > { %1448 = vmatpush.msrb.mxu3 %v642_v10  ;;  %1222 = vmatpush.msrb.mxu1 %v610_v11  ;;  %v405_v60 = vld [vmem:[%s3077_s7 + $0x458] sm:$0xff]  ;;  %v590_v11 = vld [vmem:[#allocation4 + $0x220] sm:$0xff] }
  0x7c   : > { %1336 = vmatpush.msrb.mxu2 %v625_v20  ;;  %1110 = vmatpush.msrb.mxu0 %v593_v21  ;;  %v419_v21 = vld [vmem:[%s3077_s7 + $0x4c8] sm:$0xff] }
  0x7d   : > { %675 = vmatmul.f32.gmra.mxu0 %v290_v28  ;;  %901 = vmatmul.f32.gmra.mxu2 %v292_v29  ;;  %v378_v28 = vld [vmem:[%s3077_s7 + $0x380] sm:$0xff]  ;;  %v380_v29 = vld [vmem:[%s3077_s7 + $0x390] sm:$0xff] }
  0x7e   : > { %1449 = vmatpush.msrb.mxu3 %v641_v22  ;;  %1223 = vmatpush.msrb.mxu1 %v609_v23  ;;  %v421_v22 = vld [vmem:[%s3077_s7 + $0x4d8] sm:$0xff] }
  0x7f   : > { %788 = vmatmul.f32.gmra.mxu1 %v291_v30  ;;  %v379_v30 = vld [vmem:[%s3077_s7 + $0x388] sm:$0xff] }
  0x80   : > { %1014 = vmatmul.f32.gmra.mxu3 %v293_v31  ;;  %v381_v31 = vld [vmem:[%s3077_s7 + $0x398] sm:$0xff] }
  0x85   : > { %678 = vmatmul.f32.gmra.mxu0 %v298_v32  ;;  %904 = vmatmul.f32.gmra.mxu2 %v300_v33  ;;  %v624_v32 = vld [vmem:[#allocation4 + $0x330] sm:$0xff] }
  0x86   : > { %1337 = vmatpush.msrb.mxu2 %v624_v32  ;;  %v592_v33 = vld [vmem:[#allocation4 + $0x230] sm:$0xff]  ;;  %v427_v32 = vld [vmem:[%s3077_s7 + $0x508] sm:$0xff] }
  0x87   : > { %791 = vmatmul.f32.gmra.mxu1 %v299_v34  ;;  %v640_v34 = vld [vmem:[#allocation4 + $0x3b0] sm:$0xff]  ;;  %1111 = vmatpush.msrb.mxu0 %v592_v33  ;;  %v429_v33 = vld [vmem:[%s3077_s7 + $0x518] sm:$0xff] }
  0x88   : > { %1017 = vmatmul.f32.gmra.mxu3 %v301_v35  ;;  %v608_v35 = vld [vmem:[#allocation4 + $0x2b0] sm:$0xff] }
  0x89   : > { %1450 = vmatpush.msrb.mxu3 %v640_v34  ;;  %1224 = vmatpush.msrb.mxu1 %v608_v35  ;;  %v621_v34 = vld [vmem:[#allocation4 + $0x318] sm:$0xff] }
  0x8a   : > { %1112 = vmatpush.msrb.mxu0 %v591_v49 }
  0x8b   : > { %1451 = vmatpush.msrb.mxu3 %v639_v50 }
  0x8c   : > { %1113 = vmatpush.msrb.mxu0 %v590_v11  ;;  %v451_v11 = vld [vmem:[%s3077_s7 + $0x5c8] sm:$0xff] }
  0x8d   : > { %681 = vmatmul.f32.gmra.mxu0 %v306_v40  ;;  %907 = vmatmul.f32.gmra.mxu2 %v308_v41  ;;  %v394_v41 = vld [vmem:[%s3077_s7 + $0x400] sm:$0xff] }
  0x8f   : > { %794 = vmatmul.f32.gmra.mxu1 %v307_v42  ;;  %v396_v42 = vld [vmem:[%s3077_s7 + $0x410] sm:$0xff] }
  0x90   : > { %1020 = vmatmul.f32.gmra.mxu3 %v309_v43 }
  0x95   : > { %684 = vmatmul.f32.gmra.mxu0 %v314_v44  ;;  %910 = vmatmul.f32.gmra.mxu2 %v316_v45  ;;  %v395_v44 = vld [vmem:[%s3077_s7 + $0x408] sm:$0xff]  ;;  %v397_v45 = vld [vmem:[%s3077_s7 + $0x418] sm:$0xff] }
  0x97   : > { %797 = vmatmul.f32.gmra.mxu1 %v315_v46  ;;  %v623_v46 = vld [vmem:[#allocation4 + $0x328] sm:$0xff] }
  0x98   : > { %1023 = vmatmul.f32.gmra.mxu3 %v317_v47  ;;  %1338 = vmatpush.msrb.mxu2 %v623_v46 }
  0x9a   : > { %1339 = vmatpush.msrb.mxu2 %v622_v8 }
  0x9c   : > { %1340 = vmatpush.msrb.mxu2 %v621_v34  ;;  %v466_v34 = vld [vmem:[%s3077_s7 + $0x640] sm:$0xff] }
  0x9d   : > { %687 = vmatmul.f32.gmra.mxu0 %v322_v52  ;;  %913 = vmatmul.f32.gmra.mxu2 %v324_v53  ;;  %v607_v52 = vld [vmem:[#allocation4 + $0x2a8] sm:$0xff] }
  0x9e   : > { %1225 = vmatpush.msrb.mxu1 %v607_v52 }
  0x9f   : > { %800 = vmatmul.f32.gmra.mxu1 %v323_v54  ;;  %v402_v54 = vld [vmem:[%s3077_s7 + $0x440] sm:$0xff] }
  0xa0   : > { %1026 = vmatmul.f32.gmra.mxu3 %v325_v55  ;;  %v404_v55 = vld [vmem:[%s3077_s7 + $0x450] sm:$0xff] }
  0xa5   : > { %690 = vmatmul.f32.gmra.mxu0 %v330_v56  ;;  %916 = vmatmul.f32.gmra.mxu2 %v332_v57 }
  0xa7   : > { %803 = vmatmul.f32.gmra.mxu1 %v331_v58 }
  0xa8   : > { %1029 = vmatmul.f32.gmra.mxu3 %v333_v59  ;;  %v403_v59 = vld [vmem:[%s3077_s7 + $0x448] sm:$0xff] }
  0xad   : > { %693 = vmatmul.f32.gmra.mxu0 %v338_v0  ;;  %919 = vmatmul.f32.gmra.mxu2 %v340_v1  ;;  %v410_v1 = vld [vmem:[%s3077_s7 + $0x480] sm:$0xff] }
  0xaf   : > { %806 = vmatmul.f32.gmra.mxu1 %v339_v2  ;;  %v412_v2 = vld [vmem:[%s3077_s7 + $0x490] sm:$0xff] }
  0xb0   : > { %1032 = vmatmul.f32.gmra.mxu3 %v341_v3 }
  0xb5   : > { %696 = vmatmul.f32.gmra.mxu0 %v346_v4  ;;  %922 = vmatmul.f32.gmra.mxu2 %v348_v5 }
  0xb7   : > { %809 = vmatmul.f32.gmra.mxu1 %v347_v6  ;;  %v411_v6 = vld [vmem:[%s3077_s7 + $0x488] sm:$0xff] }
  0xb8   : > { %1035 = vmatmul.f32.gmra.mxu3 %v349_v7  ;;  %v413_v7 = vld [vmem:[%s3077_s7 + $0x498] sm:$0xff] }
  0xbd   : > { %699 = vmatmul.f32.gmra.mxu0 %v354_v12  ;;  %925 = vmatmul.f32.gmra.mxu2 %v356_v13  ;;  %v638_v12 = vld [vmem:[#allocation4 + $0x3a0] sm:$0xff] }
  0xbe   : > { %1452 = vmatpush.msrb.mxu3 %v638_v12  ;;  %v453_v12 = vld [vmem:[%s3077_s7 + $0x5d8] sm:$0xff] }
  0xbf   : > { %812 = vmatmul.f32.gmra.mxu1 %v355_v14  ;;  %v606_v14 = vld [vmem:[#allocation4 + $0x2a0] sm:$0xff] }
  0xc0   : > { %1038 = vmatmul.f32.gmra.mxu3 %v357_v15  ;;  %1226 = vmatpush.msrb.mxu1 %v606_v14 }
  0xc5   : > { %702 = vmatmul.f32.gmra.mxu0 %v362_v16  ;;  %928 = vmatmul.f32.gmra.mxu2 %v364_v17  ;;  %v418_v16 = vld [vmem:[%s3077_s7 + $0x4c0] sm:$0xff]  ;;  %v420_v17 = vld [vmem:[%s3077_s7 + $0x4d0] sm:$0xff] }
  0xc7   : > { %815 = vmatmul.f32.gmra.mxu1 %v363_v18 }
  0xc8   : > { %1041 = vmatmul.f32.gmra.mxu3 %v365_v19 }
  0xcd   : > { %705 = vmatmul.f32.gmra.mxu0 %v370_v24  ;;  %931 = vmatmul.f32.gmra.mxu2 %v372_v25 }
  0xcf   : > { %818 = vmatmul.f32.gmra.mxu1 %v371_v26 }
  0xd0   : > { %1044 = vmatmul.f32.gmra.mxu3 %v373_v27  ;;  %v426_v27 = vld [vmem:[%s3077_s7 + $0x500] sm:$0xff] }
  0xd5   : > { %708 = vmatmul.f32.gmra.mxu0 %v378_v28  ;;  %934 = vmatmul.f32.gmra.mxu2 %v380_v29  ;;  %v428_v28 = vld [vmem:[%s3077_s7 + $0x510] sm:$0xff] }
  0xd7   : > { %821 = vmatmul.f32.gmra.mxu1 %v379_v30 }
  0xd8   : > { %1047 = vmatmul.f32.gmra.mxu3 %v381_v31 }
  0xdd   : > { %711 = vmatmul.f32.gmra.mxu0 %v386_v36  ;;  %937 = vmatmul.f32.gmra.mxu2 %v388_v37  ;;  %v589_v37 = vld [vmem:[#allocation4 + $0x218] sm:$0xff] }
  0xde   : > { %1114 = vmatpush.msrb.mxu0 %v589_v37 }
  0xdf   : > { %824 = vmatmul.f32.gmra.mxu1 %v387_v38  ;;  %v637_v38 = vld [vmem:[#allocation4 + $0x398] sm:$0xff] }
  0xe0   : > { %1050 = vmatmul.f32.gmra.mxu3 %v389_v39 }
  0xe1   : > { %1453 = vmatpush.msrb.mxu3 %v637_v38 }
  0xe2   : > { %v667_v40 = vpop.f32.mrf.mxu0 }
  0xe4   : > { %v780_v43 = vpop.f32.mrf.mxu1 }
  0xe5   : > { %714 = vmatmul.f32.gmra.mxu0 %v394_v41  ;;  %940 = vmatmul.f32.gmra.mxu2 %v396_v42  ;;  %v781_v47 = vadd.f32 %v780_v43, %v667_v40  ;;  %v605_v40 = vld [vmem:[#allocation4 + $0x298] sm:$0xff]  ;;  %v434_v42 = vld [vmem:[%s3077_s7 + $0x540] sm:$0xff]  ;;  %v436_v43 = vld [vmem:[%s3077_s7 + $0x550] sm:$0xff] }
  0xe6   : > { %1227 = vmatpush.msrb.mxu1 %v605_v40  ;;  %v469_v40 = vld [vmem:[%s3077_s7 + $0x658] sm:$0xff] }
  0xe7   : > { %827 = vmatmul.f32.gmra.mxu1 %v395_v44 }
  0xe8   : > { %1053 = vmatmul.f32.gmra.mxu3 %v397_v45  ;;  %v893_v48 = vpop.f32.mrf.mxu2 }
  0xe9   : > { %v894_v51 = vadd.f32 %v893_v48, %v781_v47  ;;  %v435_v47 = vld [vmem:[%s3077_s7 + $0x548] sm:$0xff]  ;;  %v437_v48 = vld [vmem:[%s3077_s7 + $0x558] sm:$0xff] }
  0xea   : > { %v670_v53 = vpop.f32.mrf.mxu0 }
  0xeb   : > { %v1006_v56 = vpop.f32.mrf.mxu3 }
  0xec   : > { %v3157_v57 = vadd.f32 %v1006_v56, %v894_v51  ;;  %v783_v58 = vpop.f32.mrf.mxu1 }
  0xed   : > { %717 = vmatmul.f32.gmra.mxu0 %v402_v54  ;;  %943 = vmatmul.f32.gmra.mxu2 %v404_v55  ;;  %v784_v61 = vadd.f32 %v783_v58, %v670_v53  ;;  %v442_v53 = vld [vmem:[%s3077_s7 + $0x580] sm:$0xff]  ;;  %v444_v54 = vld [vmem:[%s3077_s7 + $0x590] sm:$0xff] }
  0xef   : > { %830 = vmatmul.f32.gmra.mxu1 %v403_v59  ;;  %v443_v59 = vld [vmem:[%s3077_s7 + $0x588] sm:$0xff] }
  0xf0   : > { %1056 = vmatmul.f32.gmra.mxu3 %v405_v60  ;;  %v896_v62 = vpop.f32.mrf.mxu2  ;;  %v445_v60 = vld [vmem:[%s3077_s7 + $0x598] sm:$0xff] }
  0xf1   : > { %v897_v63 = vadd.f32 %v896_v62, %v784_v61  ;;  %v620_v61 = vld [vmem:[#allocation4 + $0x310] sm:$0xff] }
  0xf2   : > { %v673_v0 = vpop.f32.mrf.mxu0  ;;  %1341 = vmatpush.msrb.mxu2 %v620_v61  ;;  %v602_v61 = vld [vmem:[#allocation4 + $0x280] sm:$0xff] }
  0xf3   : > { %v1009_v3 = vpop.f32.mrf.mxu3 }
  0xf4   : > { %v3163_v4 = vadd.f32 %v1009_v3, %v897_v63  ;;  %v786_v5 = vpop.f32.mrf.mxu1  ;;  %v604_v3 = vld [vmem:[#allocation4 + $0x290] sm:$0xff] }
  0xf5   : > { %720 = vmatmul.f32.gmra.mxu0 %v410_v1  ;;  %946 = vmatmul.f32.gmra.mxu2 %v412_v2  ;;  %v787_v9 = vadd.f32 %v786_v5, %v673_v0  ;;  %v588_v0 = vld [vmem:[#allocation4 + $0x210] sm:$0xff] }
  0xf6   : > { %v636_v1 = vld [vmem:[#allocation4 + $0x390] sm:$0xff]  ;;  %1115 = vmatpush.msrb.mxu0 %v588_v0  ;;  %1228 = vmatpush.msrb.mxu1 %v604_v3 }
  0xf7   : > { %833 = vmatmul.f32.gmra.mxu1 %v411_v6  ;;  %1454 = vmatpush.msrb.mxu3 %v636_v1  ;;  %v450_v6 = vld [vmem:[%s3077_s7 + $0x5c0] sm:$0xff]  ;;  %v484_v0 = vld [vmem:[%s3077_s7 + $0x6d0] sm:$0xff] }
  0xf8   : > { %1059 = vmatmul.f32.gmra.mxu3 %v413_v7  ;;  %v899_v10 = vpop.f32.mrf.mxu2  ;;  %v452_v7 = vld [vmem:[%s3077_s7 + $0x5d0] sm:$0xff] }
  0xf9   : > { %v900_v13 = vadd.f32 %v899_v10, %v787_v9 }
  0xfa   : > { %v676_v15 = vpop.f32.mrf.mxu0 }
  0xfb   : > { %v1012_v18 = vpop.f32.mrf.mxu3 }
  0xfc   : > { %v3169_v19 = vadd.f32 %v1012_v18, %v900_v13  ;;  %v789_v20 = vpop.f32.mrf.mxu1  ;;  %v460_v18 = vld [vmem:[%s3077_s7 + $0x610] sm:$0xff] }
  0xfd   : > { %723 = vmatmul.f32.gmra.mxu0 %v418_v16  ;;  %949 = vmatmul.f32.gmra.mxu2 %v420_v17  ;;  %v790_v23 = vadd.f32 %v789_v20, %v676_v15  ;;  %v458_v17 = vld [vmem:[%s3077_s7 + $0x600] sm:$0xff] }
  0xff   : > { %836 = vmatmul.f32.gmra.mxu1 %v419_v21 }
 0x100   : > { %1062 = vmatmul.f32.gmra.mxu3 %v421_v22  ;;  %v902_v24 = vpop.f32.mrf.mxu2 }
 0x101   : > { %v903_v25 = vadd.f32 %v902_v24, %v790_v23  ;;  %v459_v23 = vld [vmem:[%s3077_s7 + $0x608] sm:$0xff]  ;;  %v461_v24 = vld [vmem:[%s3077_s7 + $0x618] sm:$0xff] }
 0x102   : > { %v679_v26 = vpop.f32.mrf.mxu0 }
 0x103   : > { %v1015_v29 = vpop.f32.mrf.mxu3 }
 0x104   : > { %v3175_v30 = vadd.f32 %v1015_v29, %v903_v25  ;;  %v792_v31 = vpop.f32.mrf.mxu1  ;;  %v619_v25 = vld [vmem:[#allocation4 + $0x308] sm:$0xff] }
 0x105   : > { %726 = vmatmul.f32.gmra.mxu0 %v426_v27  ;;  %952 = vmatmul.f32.gmra.mxu2 %v428_v28  ;;  %v793_v35 = vadd.f32 %v792_v31, %v679_v26  ;;  %v587_v28 = vld [vmem:[#allocation4 + $0x208] sm:$0xff] }
 0x106   : > { %1342 = vmatpush.msrb.mxu2 %v619_v25  ;;  %v635_v29 = vld [vmem:[#allocation4 + $0x388] sm:$0xff]  ;;  %1116 = vmatpush.msrb.mxu0 %v587_v28  ;;  %v498_v25 = vld [vmem:[%s3077_s7 + $0x740] sm:$0xff] }
 0x107   : > { %839 = vmatmul.f32.gmra.mxu1 %v427_v32  ;;  %1455 = vmatpush.msrb.mxu3 %v635_v29  ;;  %v603_v32 = vld [vmem:[#allocation4 + $0x288] sm:$0xff] }
 0x108   : > { %1065 = vmatmul.f32.gmra.mxu3 %v429_v33  ;;  %v905_v36 = vpop.f32.mrf.mxu2  ;;  %1229 = vmatpush.msrb.mxu1 %v603_v32  ;;  %v501_v32 = vld [vmem:[%s3077_s7 + $0x758] sm:$0xff] }
 0x109   : > { %v906_v39 = vadd.f32 %v905_v36, %v793_v35  ;;  %v468_v35 = vld [vmem:[%s3077_s7 + $0x650] sm:$0xff] }
 0x10a   : > { %v682_v41 = vpop.f32.mrf.mxu0  ;;  %1230 = vmatpush.msrb.mxu1 %v602_v61 }
 0x10b   : > { %v1018_v44 = vpop.f32.mrf.mxu3 }
 0x10c   : > { %v3181_v45 = vadd.f32 %v1018_v44, %v906_v39  ;;  %v795_v46 = vpop.f32.mrf.mxu1  ;;  %v467_v39 = vld [vmem:[%s3077_s7 + $0x648] sm:$0xff] }
 0x10d   : > { %729 = vmatmul.f32.gmra.mxu0 %v434_v42  ;;  %955 = vmatmul.f32.gmra.mxu2 %v436_v43  ;;  %v796_v49 = vadd.f32 %v795_v46, %v682_v41  ;;  %v474_v46 = vld [vmem:[%s3077_s7 + $0x680] sm:$0xff] }
 0x10f   : > { %842 = vmatmul.f32.gmra.mxu1 %v435_v47  ;;  %v476_v47 = vld [vmem:[%s3077_s7 + $0x690] sm:$0xff] }
 0x110   : > { %1068 = vmatmul.f32.gmra.mxu3 %v437_v48  ;;  %v908_v50 = vpop.f32.mrf.mxu2 }
 0x111   : > { %v909_v51 = vadd.f32 %v908_v50, %v796_v49 }
 0x112   : > { %v685_v52 = vpop.f32.mrf.mxu0 }
 0x113   : > { %v1021_v55 = vpop.f32.mrf.mxu3 }
 0x114   : > { %v3187_v56 = vadd.f32 %v1021_v55, %v909_v51  ;;  %v798_v58 = vpop.f32.mrf.mxu1  ;;  %v475_v51 = vld [vmem:[%s3077_s7 + $0x688] sm:$0xff] }
 0x115   : > { %732 = vmatmul.f32.gmra.mxu0 %v442_v53  ;;  %958 = vmatmul.f32.gmra.mxu2 %v444_v54  ;;  %v799_v62 = vadd.f32 %v798_v58, %v685_v52  ;;  %v477_v52 = vld [vmem:[%s3077_s7 + $0x698] sm:$0xff]  ;;  %v618_v53 = vld [vmem:[#allocation4 + $0x300] sm:$0xff] }
 0x116   : > { %1343 = vmatpush.msrb.mxu2 %v618_v53  ;;  %v586_v58 = vld [vmem:[#allocation4 + $0x200] sm:$0xff] }
 0x117   : > { %845 = vmatmul.f32.gmra.mxu1 %v443_v59  ;;  %v634_v59 = vld [vmem:[#allocation4 + $0x380] sm:$0xff]  ;;  %1117 = vmatpush.msrb.mxu0 %v586_v58  ;;  %v515_v58 = vld [vmem:[%s3077_s7 + $0x7c8] sm:$0xff] }
 0x118   : > { %1071 = vmatmul.f32.gmra.mxu3 %v445_v60  ;;  %v911_v63 = vpop.f32.mrf.mxu2 }
 0x119   : > { %v912_v2 = vadd.f32 %v911_v63, %v799_v62  ;;  %1456 = vmatpush.msrb.mxu3 %v634_v59  ;;  %v482_v63 = vld [vmem:[%s3077_s7 + $0x6c0] sm:$0xff]  ;;  %v517_v59 = vld [vmem:[%s3077_s7 + $0x7d8] sm:$0xff] }
 0x11a   : > { %v688_v5 = vpop.f32.mrf.mxu0 }
 0x11b   : > { %v1024_v8 = vpop.f32.mrf.mxu3 }
 0x11c   : > { %v3193_v9 = vadd.f32 %v1024_v8, %v912_v2  ;;  %v801_v10 = vpop.f32.mrf.mxu1 }
 0x11d   : > { %735 = vmatmul.f32.gmra.mxu0 %v450_v6  ;;  %961 = vmatmul.f32.gmra.mxu2 %v452_v7  ;;  %v802_v13 = vadd.f32 %v801_v10, %v688_v5  ;;  %v483_v5 = vld [vmem:[%s3077_s7 + $0x6c8] sm:$0xff]  ;;  %v485_v6 = vld [vmem:[%s3077_s7 + $0x6d8] sm:$0xff] }
 0x11f   : > { %848 = vmatmul.f32.gmra.mxu1 %v451_v11 }
 0x120   : > { %1074 = vmatmul.f32.gmra.mxu3 %v453_v12  ;;  %v914_v14 = vpop.f32.mrf.mxu2  ;;  %v490_v12 = vld [vmem:[%s3077_s7 + $0x700] sm:$0xff] }
 0x121   : > { %v915_v15 = vadd.f32 %v914_v14, %v802_v13  ;;  %v492_v13 = vld [vmem:[%s3077_s7 + $0x710] sm:$0xff] }
 0x122   : > { %v691_v16 = vpop.f32.mrf.mxu0 }
 0x123   : > { %v1027_v20 = vpop.f32.mrf.mxu3 }
 0x124   : > { %v3199_v21 = vadd.f32 %v1027_v20, %v915_v15  ;;  %v804_v22 = vpop.f32.mrf.mxu1 }
 0x125   : > { %738 = vmatmul.f32.gmra.mxu0 %v458_v17  ;;  %964 = vmatmul.f32.gmra.mxu2 %v460_v18  ;;  %v805_v26 = vadd.f32 %v804_v22, %v691_v16  ;;  %v491_v17 = vld [vmem:[%s3077_s7 + $0x708] sm:$0xff]  ;;  %v493_v18 = vld [vmem:[%s3077_s7 + $0x718] sm:$0xff] }
 0x127   : > { %851 = vmatmul.f32.gmra.mxu1 %v459_v23 }
 0x128   : > { %1077 = vmatmul.f32.gmra.mxu3 %v461_v24  ;;  %v917_v27 = vpop.f32.mrf.mxu2 }
 0x129   : > { %v918_v31 = vadd.f32 %v917_v27, %v805_v26  ;;  %v500_v26 = vld [vmem:[%s3077_s7 + $0x750] sm:$0xff] }
 0x12a   : > { %v694_v33 = vpop.f32.mrf.mxu0 }
 0x12b   : > { %v1030_v36 = vpop.f32.mrf.mxu3 }
 0x12c   : > { %v3205_v37 = vadd.f32 %v1030_v36, %v918_v31  ;;  %v807_v38 = vpop.f32.mrf.mxu1  ;;  %v499_v31 = vld [vmem:[%s3077_s7 + $0x748] sm:$0xff] }
 0x12d   : > { %741 = vmatmul.f32.gmra.mxu0 %v466_v34  ;;  %967 = vmatmul.f32.gmra.mxu2 %v468_v35  ;;  %v808_v41 = vadd.f32 %v807_v38, %v694_v33  ;;  %v506_v38 = vld [vmem:[%s3077_s7 + $0x780] sm:$0xff] }
 0x12f   : > { %854 = vmatmul.f32.gmra.mxu1 %v467_v39  ;;  %v508_v39 = vld [vmem:[%s3077_s7 + $0x790] sm:$0xff] }
 0x130   : > { %1080 = vmatmul.f32.gmra.mxu3 %v469_v40  ;;  %v920_v42 = vpop.f32.mrf.mxu2 }
 0x131   : > { %v921_v43 = vadd.f32 %v920_v42, %v808_v41 }
 0x132   : > { %v697_v44 = vpop.f32.mrf.mxu0 }
 0x133   : > { %v1033_v48 = vpop.f32.mrf.mxu3 }
 0x134   : > { %v3211_v49 = vadd.f32 %v1033_v48, %v921_v43  ;;  %v810_v50 = vpop.f32.mrf.mxu1  ;;  %v507_v43 = vld [vmem:[%s3077_s7 + $0x788] sm:$0xff] }
 0x135   : > { %744 = vmatmul.f32.gmra.mxu0 %v474_v46  ;;  %970 = vmatmul.f32.gmra.mxu2 %v476_v47  ;;  %v811_v54 = vadd.f32 %v810_v50, %v697_v44  ;;  %v509_v44 = vld [vmem:[%s3077_s7 + $0x798] sm:$0xff] }
 0x137   : > { %857 = vmatmul.f32.gmra.mxu1 %v475_v51  ;;  %v514_v51 = vld [vmem:[%s3077_s7 + $0x7c0] sm:$0xff] }
 0x138   : > { %1083 = vmatmul.f32.gmra.mxu3 %v477_v52  ;;  %v923_v55 = vpop.f32.mrf.mxu2  ;;  %v516_v52 = vld [vmem:[%s3077_s7 + $0x7d0] sm:$0xff] }
 0x139   : > { %v924_v60 = vadd.f32 %v923_v55, %v811_v54 }
 0x13a   : > { %v700_v62 = vpop.f32.mrf.mxu0 }
 0x13b   : > { %v1036_v1 = vpop.f32.mrf.mxu3 }
 0x13c   : > { %v3217_v2 = vadd.f32 %v1036_v1, %v924_v60  ;;  %v813_v3 = vpop.f32.mrf.mxu1  ;;  %v272_v1 = vld [vmem:[%s3077_s7 + $0x30] sm:$0xff] }
 0x13d   : > { %747 = vmatmul.f32.gmra.mxu0 %v482_v63  ;;  %973 = vmatmul.f32.gmra.mxu2 %v484_v0  ;;  %v814_v7 = vadd.f32 %v813_v3, %v700_v62  ;;  %v270_v0 = vld [vmem:[%s3077_s7 + $0x20] sm:$0xff] }
 0x13f   : > { %860 = vmatmul.f32.gmra.mxu1 %v483_v5 }
 0x140   : > { %1086 = vmatmul.f32.gmra.mxu3 %v485_v6  ;;  %v926_v8 = vpop.f32.mrf.mxu2 }
 0x141   : > { %v927_v10 = vadd.f32 %v926_v8, %v814_v7  ;;  %v271_v7 = vld [vmem:[%s3077_s7 + $0x28] sm:$0xff]  ;;  %v273_v8 = vld [vmem:[%s3077_s7 + $0x38] sm:$0xff] }
 0x142   : > { %v703_v11 = vpop.f32.mrf.mxu0 }
 0x143   : > { %v1039_v14 = vpop.f32.mrf.mxu3 }
 0x144   : > { %v3223_v15 = vadd.f32 %v1039_v14, %v927_v10  ;;  %v816_v16 = vpop.f32.mrf.mxu1  ;;  %v278_v14 = vld [vmem:[%s3077_s7 + $0x60] sm:$0xff] }
 0x145   : > { %750 = vmatmul.f32.gmra.mxu0 %v490_v12  ;;  %976 = vmatmul.f32.gmra.mxu2 %v492_v13  ;;  %v817_v20 = vadd.f32 %v816_v16, %v703_v11  ;;  %v280_v16 = vld [vmem:[%s3077_s7 + $0x70] sm:$0xff] }
 0x147   : > { %863 = vmatmul.f32.gmra.mxu1 %v491_v17 }
 0x148   : > { %1089 = vmatmul.f32.gmra.mxu3 %v493_v18  ;;  %v929_v22 = vpop.f32.mrf.mxu2 }
 0x149   : > { %v930_v23 = vadd.f32 %v929_v22, %v817_v20  ;;  %v279_v22 = vld [vmem:[%s3077_s7 + $0x68] sm:$0xff] }
 0x14a   : > { %v706_v24 = vpop.f32.mrf.mxu0 }
 0x14b   : > { %v1042_v27 = vpop.f32.mrf.mxu3 }
 0x14c   : > { %v3229_v28 = vadd.f32 %v1042_v27, %v930_v23  ;;  %v819_v29 = vpop.f32.mrf.mxu1  ;;  %v281_v23 = vld [vmem:[%s3077_s7 + $0x78] sm:$0xff] }
 0x14d   : > { %753 = vmatmul.f32.gmra.mxu0 %v498_v25  ;;  %979 = vmatmul.f32.gmra.mxu2 %v500_v26  ;;  %v820_v33 = vadd.f32 %v819_v29, %v706_v24  ;;  %v286_v29 = vld [vmem:[%s3077_s7 + $0xa0] sm:$0xff] }
 0x14f   : > { %866 = vmatmul.f32.gmra.mxu1 %v499_v31  ;;  %v288_v31 = vld [vmem:[%s3077_s7 + $0xb0] sm:$0xff] }
 0x150   : > { %1092 = vmatmul.f32.gmra.mxu3 %v501_v32  ;;  %v932_v34 = vpop.f32.mrf.mxu2 }
 0x151   : > { %v933_v35 = vadd.f32 %v932_v34, %v820_v33 }
 0x152   : > { %v709_v36 = vpop.f32.mrf.mxu0 }
 0x153   : > { %v1045_v40 = vpop.f32.mrf.mxu3 }
 0x154   : > { %v3235_v41 = vadd.f32 %v1045_v40, %v933_v35  ;;  %v822_v42 = vpop.f32.mrf.mxu1  ;;  %v287_v35 = vld [vmem:[%s3077_s7 + $0xa8] sm:$0xff] }
 0x155   : > { %756 = vmatmul.f32.gmra.mxu0 %v506_v38  ;;  %982 = vmatmul.f32.gmra.mxu2 %v508_v39  ;;  %v823_v46 = vadd.f32 %v822_v42, %v709_v36  ;;  %v289_v36 = vld [vmem:[%s3077_s7 + $0xb8] sm:$0xff] }
 0x157   : > { %869 = vmatmul.f32.gmra.mxu1 %v507_v43  ;;  %v294_v43 = vld [vmem:[%s3077_s7 + $0xe0] sm:$0xff] }
 0x158   : > { %1095 = vmatmul.f32.gmra.mxu3 %v509_v44  ;;  %v935_v47 = vpop.f32.mrf.mxu2  ;;  %v296_v44 = vld [vmem:[%s3077_s7 + $0xf0] sm:$0xff] }
 0x159   : > { %v936_v48 = vadd.f32 %v935_v47, %v823_v46 }
 0x15a   : > { %v712_v50 = vpop.f32.mrf.mxu0 }
 0x15b   : > { %v1048_v53 = vpop.f32.mrf.mxu3 }
 0x15c   : > { %v3241_v54 = vadd.f32 %v1048_v53, %v936_v48  ;;  %v825_v55 = vpop.f32.mrf.mxu1 }
 0x15d   : > { %759 = vmatmul.f32.gmra.mxu0 %v514_v51  ;;  %985 = vmatmul.f32.gmra.mxu2 %v516_v52  ;;  %v826_v60 = vadd.f32 %v825_v55, %v712_v50  ;;  %v295_v50 = vld [vmem:[%s3077_s7 + $0xe8] sm:$0xff]  ;;  %v297_v51 = vld [vmem:[%s3077_s7 + $0xf8] sm:$0xff] }
 0x15f   : > { %872 = vmatmul.f32.gmra.mxu1 %v515_v58 }
 0x160   : > { %1098 = vmatmul.f32.gmra.mxu3 %v517_v59  ;;  %v938_v61 = vpop.f32.mrf.mxu2  ;;  %v302_v59 = vld [vmem:[%s3077_s7 + $0x120] sm:$0xff] }
 0x161   : > { %v939_v62 = vadd.f32 %v938_v61, %v826_v60  ;;  %v304_v60 = vld [vmem:[%s3077_s7 + $0x130] sm:$0xff] }
 0x162   : > { %v715_v63 = vpop.f32.mrf.mxu0 }
 0x163   : > { %v1051_v3 = vpop.f32.mrf.mxu3 }
 0x164   : > { %v3247_v5 = vadd.f32 %v1051_v3, %v939_v62  ;;  %v828_v6 = vpop.f32.mrf.mxu1 }
 0x165   : > { %1118 = vmatmul.f32.vlgmr.msrb.gmra.mxu0 %v270_v0  ;;  %1344 = vmatmul.f32.vlgmr.msrb.gmra.mxu2 %v272_v1  ;;  %v829_v10 = vadd.f32 %v828_v6, %v715_v63  ;;  %v303_v0 = vld [vmem:[%s3077_s7 + $0x128] sm:$0xff]  ;;  %v305_v1 = vld [vmem:[%s3077_s7 + $0x138] sm:$0xff] }
 0x167   : > { %1231 = vmatmul.f32.vlgmr.msrb.gmra.mxu1 %v271_v7 }
 0x168   : > { %1457 = vmatmul.f32.vlgmr.msrb.gmra.mxu3 %v273_v8  ;;  %v941_v11 = vpop.f32.mrf.mxu2 }
 0x169   : > { %v942_v12 = vadd.f32 %v941_v11, %v829_v10  ;;  %v310_v10 = vld [vmem:[%s3077_s7 + $0x160] sm:$0xff]  ;;  %v312_v11 = vld [vmem:[%s3077_s7 + $0x170] sm:$0xff] }
 0x16a   : > { %v718_v13 = vpop.f32.mrf.mxu0 }
 0x16b   : > { %v1054_v17 = vpop.f32.mrf.mxu3 }
 0x16c   : > { %v3253_v18 = vadd.f32 %v1054_v17, %v942_v12  ;;  %v831_v20 = vpop.f32.mrf.mxu1  ;;  %v313_v17 = vld [vmem:[%s3077_s7 + $0x178] sm:$0xff] }
 0x16d   : > { %1121 = vmatmul.f32.gmra.mxu0 %v278_v14  ;;  %1347 = vmatmul.f32.gmra.mxu2 %v280_v16  ;;  %v832_v24 = vadd.f32 %v831_v20, %v718_v13  ;;  %v311_v16 = vld [vmem:[%s3077_s7 + $0x168] sm:$0xff] }
 0x16f   : > { %1234 = vmatmul.f32.gmra.mxu1 %v279_v22 }
 0x170   : > { %1460 = vmatmul.f32.gmra.mxu3 %v281_v23  ;;  %v944_v25 = vpop.f32.mrf.mxu2 }
 0x171   : > { %v945_v26 = vadd.f32 %v944_v25, %v832_v24  ;;  %v318_v25 = vld [vmem:[%s3077_s7 + $0x1a0] sm:$0xff] }
 0x172   : > { %v721_v27 = vpop.f32.mrf.mxu0 }
 0x173   : > { %v1057_v32 = vpop.f32.mrf.mxu3 }
 0x174   : > { %v3259_v33 = vadd.f32 %v1057_v32, %v945_v26  ;;  %v834_v34 = vpop.f32.mrf.mxu1  ;;  %v320_v26 = vld [vmem:[%s3077_s7 + $0x1b0] sm:$0xff]  ;;  %v319_v32 = vld [vmem:[%s3077_s7 + $0x1a8] sm:$0xff] }
 0x175   : > { %1124 = vmatmul.f32.gmra.mxu0 %v286_v29  ;;  %1350 = vmatmul.f32.gmra.mxu2 %v288_v31  ;;  %v835_v38 = vadd.f32 %v834_v34, %v721_v27  ;;  %v321_v34 = vld [vmem:[%s3077_s7 + $0x1b8] sm:$0xff] }
 0x177   : > { %1237 = vmatmul.f32.gmra.mxu1 %v287_v35 }
 0x178   : > { %1463 = vmatmul.f32.gmra.mxu3 %v289_v36  ;;  %v947_v39 = vpop.f32.mrf.mxu2 }
 0x179   : > { %v948_v40 = vadd.f32 %v947_v39, %v835_v38 }
 0x17a   : > { %v724_v42 = vpop.f32.mrf.mxu0 }
 0x17b   : > { %v1060_v46 = vpop.f32.mrf.mxu3 }
 0x17c   : > { %v3265_v47 = vadd.f32 %v1060_v46, %v948_v40  ;;  %v837_v48 = vpop.f32.mrf.mxu1  ;;  %v326_v40 = vld [vmem:[%s3077_s7 + $0x1e0] sm:$0xff] }
 0x17d   : > { %1127 = vmatmul.f32.gmra.mxu0 %v294_v43  ;;  %1353 = vmatmul.f32.gmra.mxu2 %v296_v44  ;;  %v838_v52 = vadd.f32 %v837_v48, %v724_v42  ;;  %v328_v42 = vld [vmem:[%s3077_s7 + $0x1f0] sm:$0xff]  ;;  %v327_v48 = vld [vmem:[%s3077_s7 + $0x1e8] sm:$0xff] }
 0x17f   : > { %1240 = vmatmul.f32.gmra.mxu1 %v295_v50  ;;  %v329_v50 = vld [vmem:[%s3077_s7 + $0x1f8] sm:$0xff] }
 0x180   : > { %1466 = vmatmul.f32.gmra.mxu3 %v297_v51  ;;  %v950_v53 = vpop.f32.mrf.mxu2 }
 0x181   : > { %v951_v55 = vadd.f32 %v950_v53, %v838_v52 }
 0x182   : > { %v727_v58 = vpop.f32.mrf.mxu0 }
 0x183   : > { %v1063_v61 = vpop.f32.mrf.mxu3 }
 0x184   : > { %v3271_v62 = vadd.f32 %v1063_v61, %v951_v55  ;;  %v840_v63 = vpop.f32.mrf.mxu1 }
 0x185   : > { %1130 = vmatmul.f32.gmra.mxu0 %v302_v59  ;;  %1356 = vmatmul.f32.gmra.mxu2 %v304_v60  ;;  %v841_v3 = vadd.f32 %v840_v63, %v727_v58  ;;  %v334_v58 = vld [vmem:[%s3077_s7 + $0x220] sm:$0xff]  ;;  %v336_v59 = vld [vmem:[%s3077_s7 + $0x230] sm:$0xff] }
 0x187   : > { %1243 = vmatmul.f32.gmra.mxu1 %v303_v0  ;;  %v335_v0 = vld [vmem:[%s3077_s7 + $0x228] sm:$0xff] }
 0x188   : > { %1469 = vmatmul.f32.gmra.mxu3 %v305_v1  ;;  %v953_v6 = vpop.f32.mrf.mxu2  ;;  %v337_v1 = vld [vmem:[%s3077_s7 + $0x238] sm:$0xff] }
 0x189   : > { %v954_v7 = vadd.f32 %v953_v6, %v841_v3 }
 0x18a   : > { %v730_v8 = vpop.f32.mrf.mxu0 }
 0x18b   : > { %v1066_v12 = vpop.f32.mrf.mxu3 }
 0x18c   : > { %v3277_v13 = vadd.f32 %v1066_v12, %v954_v7  ;;  %v843_v14 = vpop.f32.mrf.mxu1 }
 0x18d   : > { %1133 = vmatmul.f32.gmra.mxu0 %v310_v10  ;;  %1359 = vmatmul.f32.gmra.mxu2 %v312_v11  ;;  %v844_v20 = vadd.f32 %v843_v14, %v730_v8  ;;  %v342_v10 = vld [vmem:[%s3077_s7 + $0x260] sm:$0xff]  ;;  %v344_v11 = vld [vmem:[%s3077_s7 + $0x270] sm:$0xff] }
 0x18f   : > { %1246 = vmatmul.f32.gmra.mxu1 %v311_v16 }
 0x190   : > { %1472 = vmatmul.f32.gmra.mxu3 %v313_v17  ;;  %v956_v22 = vpop.f32.mrf.mxu2  ;;  %v343_v17 = vld [vmem:[%s3077_s7 + $0x268] sm:$0xff] }
 0x191   : > { %v957_v23 = vadd.f32 %v956_v22, %v844_v20  ;;  %v345_v20 = vld [vmem:[%s3077_s7 + $0x278] sm:$0xff] }
 0x192   : > { %v733_v24 = vpop.f32.mrf.mxu0 }
 0x193   : > { %v1069_v27 = vpop.f32.mrf.mxu3 }
 0x194   : > { %v3283_v29 = vadd.f32 %v1069_v27, %v957_v23  ;;  %v846_v31 = vpop.f32.mrf.mxu1  ;;  %v352_v27 = vld [vmem:[%s3077_s7 + $0x2b0] sm:$0xff] }
 0x195   : > { %1136 = vmatmul.f32.gmra.mxu0 %v318_v25  ;;  %1362 = vmatmul.f32.gmra.mxu2 %v320_v26  ;;  %v847_v35 = vadd.f32 %v846_v31, %v733_v24  ;;  %v350_v26 = vld [vmem:[%s3077_s7 + $0x2a0] sm:$0xff] }
 0x197   : > { %1249 = vmatmul.f32.gmra.mxu1 %v319_v32 }
 0x198   : > { %1475 = vmatmul.f32.gmra.mxu3 %v321_v34  ;;  %v959_v36 = vpop.f32.mrf.mxu2 }
 0x199   : > { %v960_v38 = vadd.f32 %v959_v36, %v847_v35  ;;  %v351_v35 = vld [vmem:[%s3077_s7 + $0x2a8] sm:$0xff]  ;;  %v353_v36 = vld [vmem:[%s3077_s7 + $0x2b8] sm:$0xff] }
 0x19a   : > { %v736_v39 = vpop.f32.mrf.mxu0 }
 0x19b   : > { %v1072_v43 = vpop.f32.mrf.mxu3 }
 0x19c   : > { %v3289_v44 = vadd.f32 %v1072_v43, %v960_v38  ;;  %v849_v46 = vpop.f32.mrf.mxu1  ;;  %v358_v43 = vld [vmem:[%s3077_s7 + $0x2e0] sm:$0xff] }
 0x19d   : > { %1139 = vmatmul.f32.gmra.mxu0 %v326_v40  ;;  %1365 = vmatmul.f32.gmra.mxu2 %v328_v42  ;;  %v850_v51 = vadd.f32 %v849_v46, %v736_v39  ;;  %v360_v46 = vld [vmem:[%s3077_s7 + $0x2f0] sm:$0xff] }
 0x19f   : > { %1252 = vmatmul.f32.gmra.mxu1 %v327_v48 }
 0x1a0   : > { %1478 = vmatmul.f32.gmra.mxu3 %v329_v50  ;;  %v962_v52 = vpop.f32.mrf.mxu2 }
 0x1a1   : > { %v963_v53 = vadd.f32 %v962_v52, %v850_v51  ;;  %v359_v52 = vld [vmem:[%s3077_s7 + $0x2e8] sm:$0xff] }
 0x1a2   : > { %v739_v55 = vpop.f32.mrf.mxu0 }
 0x1a3   : > { %v1075_v60 = vpop.f32.mrf.mxu3 }
 0x1a4   : > { %v3295_v61 = vadd.f32 %v1075_v60, %v963_v53  ;;  %v852_v63 = vpop.f32.mrf.mxu1  ;;  %v361_v53 = vld [vmem:[%s3077_s7 + $0x2f8] sm:$0xff] }
 0x1a5   : > { %1142 = vmatmul.f32.gmra.mxu0 %v334_v58  ;;  %1368 = vmatmul.f32.gmra.mxu2 %v336_v59  ;;  %v853_v3 = vadd.f32 %v852_v63, %v739_v55  ;;  %v366_v63 = vld [vmem:[%s3077_s7 + $0x320] sm:$0xff] }
 0x1a7   : > { %1255 = vmatmul.f32.gmra.mxu1 %v335_v0  ;;  %v368_v0 = vld [vmem:[%s3077_s7 + $0x330] sm:$0xff] }
 0x1a8   : > { %1481 = vmatmul.f32.gmra.mxu3 %v337_v1  ;;  %v965_v6 = vpop.f32.mrf.mxu2 }
 0x1a9   : > { %v966_v7 = vadd.f32 %v965_v6, %v853_v3 }
 0x1aa   : > { %v742_v8 = vpop.f32.mrf.mxu0 }
 0x1ab   : > { %v1078_v12 = vpop.f32.mrf.mxu3 }
 0x1ac   : > { %v3301_v14 = vadd.f32 %v1078_v12, %v966_v7  ;;  %v855_v16 = vpop.f32.mrf.mxu1  ;;  %v367_v7 = vld [vmem:[%s3077_s7 + $0x328] sm:$0xff] }
 0x1ad   : > { %1145 = vmatmul.f32.gmra.mxu0 %v342_v10  ;;  %1371 = vmatmul.f32.gmra.mxu2 %v344_v11  ;;  %v856_v22 = vadd.f32 %v855_v16, %v742_v8  ;;  %v1555_v8 = vlaneseq  ;;  %v369_v10 = vld [vmem:[%s3077_s7 + $0x338] sm:$0xff] }
 0x1af   : > { %1258 = vmatmul.f32.gmra.mxu1 %v343_v17  ;;  %v3325_v16 = vshrl.u32 %v1555_v8, 7 }
 0x1b0   : > { %1484 = vmatmul.f32.gmra.mxu3 %v345_v20  ;;  %v968_v23 = vpop.f32.mrf.mxu2  ;;  %v3329_v20 = vstv %s2624_s22 }
 0x1b1   : > { %v969_v24 = vadd.f32 %v968_v23, %v856_v22  ;;  %v374_v23 = vld [vmem:[%s3077_s7 + $0x360] sm:$0xff] }
 0x1b2   : > { %v745_v25 = vpop.f32.mrf.mxu0 }
 0x1b3   : > { %v1081_v31 = vpop.f32.mrf.mxu3 }
 0x1b4   : > { %v3307_v32 = vadd.f32 %v1081_v31, %v969_v24  ;;  %v858_v34 = vpop.f32.mrf.mxu1  ;;  %v376_v24 = vld [vmem:[%s3077_s7 + $0x370] sm:$0xff]  ;;  %v375_v31 = vld [vmem:[%s3077_s7 + $0x368] sm:$0xff] }
 0x1b5   : > { %1148 = vmatmul.f32.gmra.mxu0 %v350_v26  ;;  %1374 = vmatmul.f32.gmra.mxu2 %v352_v27  ;;  %v859_v38 = vadd.f32 %v858_v34, %v745_v25  ;;  %v1589_v34 = vadd.s32 %v3329_v20, %v3325_v16 }
 0x1b7   : > { %1261 = vmatmul.f32.gmra.mxu1 %v351_v35  ;;  %v377_v35 = vld [vmem:[%s3077_s7 + $0x378] sm:$0xff]  ;;  %vm1623_vm0 = vcmp.lt.s32.totalorder %v1589_v34, 0 }
 0x1b8   : > { %1487 = vmatmul.f32.gmra.mxu3 %v353_v36  ;;  %v971_v39 = vpop.f32.mrf.mxu2 }
 0x1b9   : > { %v972_v40 = vadd.f32 %v971_v39, %v859_v38  ;;  %v1624_v39 = vsub.s32 0, %v1589_v34 }
 0x1ba   : > { %v748_v42 = vpop.f32.mrf.mxu0 }
 0x1bb   : > { %v1084_v48 = vpop.f32.mrf.mxu3 }
 0x1bc   : > { %v3313_v50 = vadd.f32 %v1084_v48, %v972_v40  ;;  %v861_v51 = vpop.f32.mrf.mxu1  ;;  %v1557_v40 = vadd.s32 8, %v3325_v16  ;;  %v384_v48 = vld [vmem:[%s3077_s7 + $0x3b0] sm:$0xff] }
 0x1bd   : > { %1151 = vmatmul.f32.gmra.mxu0 %v358_v43  ;;  %1377 = vmatmul.f32.gmra.mxu2 %v360_v46  ;;  %v862_v55 = vadd.f32 %v861_v51, %v748_v42  ;;  %v382_v46 = vld [vmem:[%s3077_s7 + $0x3a0] sm:$0xff] }
 0x1bf   : > { %1264 = vmatmul.f32.gmra.mxu1 %v359_v52 }
 0x1c0   : > { %1490 = vmatmul.f32.gmra.mxu3 %v361_v53  ;;  %v974_v58 = vpop.f32.mrf.mxu2 }
 0x1c1   : > { %v975_v59 = vadd.f32 %v974_v58, %v862_v55  ;;  %v383_v55 = vld [vmem:[%s3077_s7 + $0x3a8] sm:$0xff]  ;;  %v1625_v58 = vsel %vm1623_vm0, %v1624_v39, %v1589_v34 }
 0x1c2   : > { %v751_v60 = vpop.f32.mrf.mxu0 }
 0x1c3   : > { %v1087_v1 = vpop.f32.mrf.mxu3 }
 0x1c4   : > { %v3319_v3 = vadd.f32 %v1087_v1, %v975_v59  ;;  %v864_v6 = vpop.f32.mrf.mxu1  ;;  %v1590_v59 = vadd.s32 %v3329_v20, %v1557_v40 }
 0x1c5   : > { %1154 = vmatmul.f32.gmra.mxu0 %v366_v63  ;;  %1380 = vmatmul.f32.gmra.mxu2 %v368_v0  ;;  %v865_v11 = vadd.f32 %v864_v6, %v751_v60  ;;  %v385_v60 = vld [vmem:[%s3077_s7 + $0x3b8] sm:$0xff]  ;;  %v1627_v0 = vand.u32 1, %v1625_v58 }
 0x1c6   : > { %v1631_v6 = vsub.s32 0, %v1590_v59  ;;  %vm1630_vm1 = vcmp.lt.s32.totalorder %v1590_v59, 0 }
 0x1c7   : > { %1267 = vmatmul.f32.gmra.mxu1 %v367_v7  ;;  %v1558_v7 = vadd.s32 16, %v3325_v16 }
 0x1c8   : > { %1493 = vmatmul.f32.gmra.mxu3 %v369_v10  ;;  %v977_v12 = vpop.f32.mrf.mxu2 }
 0x1c9   : > { %v978_v17 = vadd.f32 %v977_v12, %v865_v11  ;;  %v390_v12 = vld [vmem:[%s3077_s7 + $0x3e0] sm:$0xff] }
 0x1ca   : > { %v754_v22 = vpop.f32.mrf.mxu0 }
 0x1cb   : > { %v1090_v25 = vpop.f32.mrf.mxu3 }
 0x1cc   : > { %v3333_v26 = vadd.f32 %v1090_v25, %v978_v17  ;;  %v867_v27 = vpop.f32.mrf.mxu1  ;;  %v392_v17 = vld [vmem:[%s3077_s7 + $0x3f0] sm:$0xff] }
 0x1cd   : > { %1157 = vmatmul.f32.gmra.mxu0 %v374_v23  ;;  %1383 = vmatmul.f32.gmra.mxu2 %v376_v24  ;;  %v868_v36 = vadd.f32 %v867_v27, %v754_v22  ;;  %v1628_v23 = vsub.s32 0, %v1627_v0  ;;  %v391_v27 = vld [vmem:[%s3077_s7 + $0x3e8] sm:$0xff] }
 0x1cf   : > { %1270 = vmatmul.f32.gmra.mxu1 %v375_v31  ;;  %v1632_v31 = vsel %vm1630_vm1, %v1631_v6, %v1590_v59  ;;  %v1629_v39 = vsel %vm1623_vm0, %v1628_v23, %v1627_v0 }
 0x1d0   : > { %1496 = vmatmul.f32.gmra.mxu3 %v377_v35  ;;  %v980_v38 = vpop.f32.mrf.mxu2  ;;  %v3356_v35 = vadd.s32 %v3329_v20, %v1558_v7  ;;  %v1634_v40 = vand.u32 1, %v1632_v31  ;;  %vm1847_vm3 = vcmp.ne.s32.totalorder %v1629_v39, 0  ;;  %vm1879_vm4 = vcmp.lt.s32.totalorder %v1629_v39, 0 }
 0x1d1   : > { %v981_v42 = vadd.f32 %v980_v38, %v868_v36  ;;  %v393_v36 = vld [vmem:[%s3077_s7 + $0x3f8] sm:$0xff]  ;;  %v1943_v6 = vadd.s32 2, %v1629_v39  ;;  %vm3376_vm5 = vmand %vm1879_vm4, %vm1847_vm3 }
 0x1d2   : > { %v757_v43 = vpop.f32.mrf.mxu0  ;;  %vm1637_vm2 = vcmp.lt.s32.totalorder %v3356_v35, 0 }
 0x1d3   : > { %v1093_v51 = vpop.f32.mrf.mxu3 }
 0x1d4   : > { %v3342_v52 = vadd.f32 %v1093_v51, %v981_v42  ;;  %v870_v53 = vpop.f32.mrf.mxu1 }
 0x1d5   : > { %1160 = vmatmul.f32.gmra.mxu0 %v382_v46  ;;  %1386 = vmatmul.f32.gmra.mxu2 %v384_v48  ;;  %v871_v63 = vadd.f32 %v870_v53, %v757_v43  ;;  %v1638_v43 = vsub.s32 0, %v3356_v35  ;;  %v1559_v46 = vadd.s32 24, %v3325_v16  ;;  %v398_v53 = vld [vmem:[%s3077_s7 + $0x420] sm:$0xff] }
 0x1d7   : > { %1273 = vmatmul.f32.gmra.mxu1 %v383_v55  ;;  %v400_v55 = vld [vmem:[%s3077_s7 + $0x430] sm:$0xff]  ;;  %v1639_v7 = vsel %vm1637_vm2, %v1638_v43, %v3356_v35  ;;  %v406_v43 = vld [vmem:[%s3077_s7 + $0x460] sm:$0xff] }
 0x1d8   : > { %1499 = vmatmul.f32.gmra.mxu3 %v385_v60  ;;  %v983_v1 = vpop.f32.mrf.mxu2  ;;  %v1635_v60 = vsub.s32 0, %v1634_v40  ;;  %v1641_v23 = vand.u32 1, %v1639_v7 }
 0x1d9   : > { %v984_v10 = vadd.f32 %v983_v1, %v871_v63  ;;  %v399_v1 = vld [vmem:[%s3077_s7 + $0x428] sm:$0xff] }
 0x1da   : > { %v760_v11 = vpop.f32.mrf.mxu0 }
 0x1db   : > { %v1096_v22 = vpop.f32.mrf.mxu3 }
 0x1dc   : > { %v3351_v24 = vadd.f32 %v1096_v22, %v984_v10  ;;  %v873_v25 = vpop.f32.mrf.mxu1  ;;  %v3373_v10 = vadd.s32 %v3329_v20, %v1559_v46  ;;  %v1636_v22 = vsel %vm1630_vm1, %v1635_v60, %v1634_v40 }
 0x1dd   : > { %1163 = vmatmul.f32.gmra.mxu0 %v390_v12  ;;  %1389 = vmatmul.f32.gmra.mxu2 %v392_v17  ;;  %v874_v38 = vadd.f32 %v873_v25, %v760_v11  ;;  %v401_v11 = vld [vmem:[%s3077_s7 + $0x438] sm:$0xff]  ;;  %v3381_v17 = vand.u32 127, %v1555_v8  ;;  %v408_v8 = vld [vmem:[%s3077_s7 + $0x470] sm:$0xff]  ;;  %vm1848_vm7 = vcmp.ne.s32.totalorder %v1636_v22, 0  ;;  %vm1880_vm8 = vcmp.lt.s32.totalorder %v1636_v22, 0 }
 0x1de   : > { %v1645_v31 = vsub.s32 0, %v3373_v10  ;;  %vm1644_vm6 = vcmp.lt.s32.totalorder %v3373_v10, 0  ;;  %vm3402_vm10 = vmand %vm1880_vm8, %vm1848_vm7 }
 0x1df   : > { %1276 = vmatmul.f32.gmra.mxu1 %v391_v27  ;;  %v1975_v27 = vsel %vm3376_vm5, %v1943_v6, %v1629_v39  ;;  %v1642_v39 = vsub.s32 0, %v1641_v23 }
 0x1e0   : > { %1502 = vmatmul.f32.gmra.mxu3 %v393_v36  ;;  %v986_v42 = vpop.f32.mrf.mxu2  ;;  %v1560_v36 = vadd.s32 32, %v3325_v16  ;;  %vm2007_vm9 = vcmp.eq.s32.totalorder %v1975_v27, %v3381_v17 }
 0x1e1   : > { %v987_v48 = vadd.f32 %v986_v42, %v874_v38 }
 0x1e2   : > { %v1119_v51 = vpop.f32.mrf.mxu0 }
 0x1e3   : > { %v1099_v58 = vpop.f32.mrf.mxu3  ;;  %v1120_v34 = vadd.f32 %v1119_v51, %v3157_v57  ;;  %v407_v51 = vld [vmem:[%s3077_s7 + $0x468] sm:$0xff] }
 0x1e4   : > { %v3366_v63 = vadd.f32 %v1099_v58, %v987_v48  ;;  %v1232_v0 = vpop.f32.mrf.mxu1  ;;  %v3398_v58 = vadd.s32 %v3329_v20, %v1560_v36  ;;  %v416_v36 = vld [vmem:[%s3077_s7 + $0x4b0] sm:$0xff] }
 0x1e5   : > { %1166 = vmatmul.f32.gmra.mxu0 %v398_v53  ;;  %1392 = vmatmul.f32.gmra.mxu2 %v400_v55  ;;  %v1233_v12 = vadd.f32 %v1232_v0, %v1120_v34  ;;  %v1944_v53 = vadd.s32 2, %v1636_v22  ;;  %v1646_v55 = vsel %vm1644_vm6, %v1645_v31, %v3373_v10  ;;  %v409_v34 = vld [vmem:[%s3077_s7 + $0x478] sm:$0xff]  ;;  %v414_v31 = vld [vmem:[%s3077_s7 + $0x4a0] sm:$0xff] }
 0x1e6   : > { %v1648_v6 = vand.u32 1, %v1646_v55  ;;  %v1652_v57 = vsub.s32 0, %v3398_v58  ;;  %vm1651_vm11 = vcmp.lt.s32.totalorder %v3398_v58, 0 }
 0x1e7   : > { %1279 = vmatmul.f32.gmra.mxu1 %v399_v1  ;;  %v1643_v1 = vsel %vm1637_vm2, %v1642_v39, %v1641_v23  ;;  %v417_v39 = vld [vmem:[%s3077_s7 + $0x4b8] sm:$0xff] }
 0x1e8   : > { %1505 = vmatmul.f32.gmra.mxu3 %v401_v11  ;;  %v1345_v25 = vpop.f32.mrf.mxu2  ;;  %v1976_v11 = vsel %vm3402_vm10, %v1944_v53, %v1636_v22  ;;  %vm1849_vm12 = vcmp.ne.s32.totalorder %v1643_v1, 0  ;;  %vm1881_vm13 = vcmp.lt.s32.totalorder %v1643_v1, 0  ;;  %v1649_v22 = vsub.s32 0, %v1648_v6 }
 0x1e9   : > { %v1346_v38 = vadd.f32 %v1345_v25, %v1233_v12  ;;  %v1561_v12 = vadd.s32 40, %v3325_v16  ;;  %vm2008_vm14 = vcmp.eq.s32.totalorder %v1976_v11, %v3381_v17  ;;  %vm3426_vm15 = vmand %vm1881_vm13, %vm1849_vm12  ;;  %v422_v11 = vld [vmem:[%s3077_s7 + $0x4e0] sm:$0xff] }
 0x1ea   : > { %v1122_v42 = vpop.f32.mrf.mxu0 }
 0x1eb   : > { %v1123_v59 = vadd.f32 %v1122_v42, %v3163_v4  ;;  %v1458_v40 = vpop.f32.mrf.mxu3 }
 0x1ec   : > { %v1235_v46 = vpop.f32.mrf.mxu1  ;;  %v1459_v48 = vadd.f32 %v1458_v40, %v1346_v38  ;;  %v3422_v40 = vadd.s32 %v3329_v20, %v1561_v12 }
 0x1ed   : > { %1169 = vmatmul.f32.gmra.mxu0 %v406_v43  ;;  %1395 = vmatmul.f32.gmra.mxu2 %v408_v8  ;;  %v1236_v0 = vadd.f32 %v1235_v46, %v1123_v59  ;;  %v415_v43 = vld [vmem:[%s3077_s7 + $0x4a8] sm:$0xff]  ;;  %v1945_v8 = vadd.s32 2, %v1643_v1  ;;  %v1653_v59 = vsel %vm1651_vm11, %v1652_v57, %v3398_v58  ;;  %v424_v57 = vld [vmem:[%s3077_s7 + $0x4f0] sm:$0xff] }
 0x1ee   : > { %v2039_v60 = vsel %vm2007_vm9, %v1459_v48, 0.0  ;;  %v1655_v53 = vand.u32 1, %v1653_v59  ;;  %v1659_v4 = vsub.s32 0, %v3422_v40  ;;  %vm1658_vm0 = vcmp.lt.s32.totalorder %v3422_v40, 0 }
 0x1ef   : > { %2071 = vadd.xlane.f32.xlu0 %v2039_v60  ;;  %1282 = vmatmul.f32.gmra.mxu1 %v407_v51  ;;  %v1650_v51 = vsel %vm1644_vm6, %v1649_v22, %v1648_v6  ;;  %v1562_v60 = vadd.s32 48, %v3325_v16 }
 0x1f0   : > { %1508 = vmatmul.f32.gmra.mxu3 %v409_v34  ;;  %v1348_v7 = vpop.f32.mrf.mxu2  ;;  %v1977_v34 = vsel %vm3426_vm15, %v1945_v8, %v1643_v1  ;;  %vm1850_vm1 = vcmp.ne.s32.totalorder %v1650_v51, 0  ;;  %vm1882_vm2 = vcmp.lt.s32.totalorder %v1650_v51, 0  ;;  %v1656_v1 = vsub.s32 0, %v1655_v53 }
 0x1f1   : > { %v1349_v25 = vadd.f32 %v1348_v7, %v1236_v0  ;;  %vm2009_vm3 = vcmp.eq.s32.totalorder %v1977_v34, %v3381_v17  ;;  %vm3450_vm4 = vmand %vm1882_vm2, %vm1850_vm1  ;;  %v432_v34 = vld [vmem:[%s3077_s7 + $0x530] sm:$0xff] }
 0x1f2   : > { %v1125_v27 = vpop.f32.mrf.mxu0 }
 0x1f3   : > { %v1126_v35 = vadd.f32 %v1125_v27, %v3169_v19  ;;  %v1461_v23 = vpop.f32.mrf.mxu3  ;;  %v423_v27 = vld [vmem:[%s3077_s7 + $0x4e8] sm:$0xff]  ;;  %v1563_v19 = vadd.s32 56, %v3325_v16 }
 0x1f4   : > { %v1462_v38 = vadd.f32 %v1461_v23, %v1349_v25  ;;  %v1238_v42 = vpop.f32.mrf.mxu1  ;;  %v425_v23 = vld [vmem:[%s3077_s7 + $0x4f8] sm:$0xff] }
 0x1f5   : > { %1172 = vmatmul.f32.gmra.mxu0 %v414_v31  ;;  %1398 = vmatmul.f32.gmra.mxu2 %v416_v36  ;;  %v1239_v48 = vadd.f32 %v1238_v42, %v1126_v35  ;;  %v1946_v31 = vadd.s32 2, %v1650_v51  ;;  %v1660_v36 = vsel %vm1658_vm0, %v1659_v4, %v3422_v40  ;;  %v3446_v35 = vadd.s32 %v3329_v20, %v1562_v60 }
 0x1f6   : > { %v2040_v46 = vsel %vm2008_vm14, %v1462_v38, 0.0  ;;  %v1657_v42 = vsel %vm1651_vm11, %v1656_v1, %v1655_v53 }
 0x1f7   : > { %2073 = vadd.xlane.f32.xlu0 %v2040_v46  ;;  %1285 = vmatmul.f32.gmra.mxu1 %v415_v43  ;;  %v1662_v43 = vand.u32 1, %v1660_v36  ;;  %v1978_v59 = vsel %vm3450_vm4, %v1946_v31, %v1650_v51  ;;  %vm1665_vm5 = vcmp.lt.s32.totalorder %v3446_v35, 0  ;;  %vm1851_vm6 = vcmp.ne.s32.totalorder %v1657_v42, 0 }
 0x1f8   : > { %1511 = vmatmul.f32.gmra.mxu3 %v417_v39  ;;  %v1351_v55 = vpop.f32.mrf.mxu2  ;;  %v1666_v39 = vsub.s32 0, %v3446_v35  ;;  %vm1883_vm7 = vcmp.lt.s32.totalorder %v1657_v42, 0  ;;  %vm2010_vm8 = vcmp.eq.s32.totalorder %v1978_v59, %v3381_v17 }
 0x1f9   : > { %v1352_v0 = vadd.f32 %v1351_v55, %v1239_v48  ;;  %v430_v55 = vld [vmem:[%s3077_s7 + $0x520] sm:$0xff]  ;;  %v1663_v51 = vsub.s32 0, %v1662_v43  ;;  %vm3474_vm9 = vmand %vm1883_vm7, %vm1851_vm6 }
 0x1fa   : > { %v1128_v7 = vpop.f32.mrf.mxu0 }
 0x1fb   : > { %v1129_v10 = vadd.f32 %v1128_v7, %v3175_v30  ;;  %v1464_v6 = vpop.f32.mrf.mxu3  ;;  %v1947_v7 = vadd.s32 2, %v1657_v42 }
 0x1fc   : > { %v1241_v12 = vpop.f32.mrf.mxu1  ;;  %v1465_v25 = vadd.f32 %v1464_v6, %v1352_v0  ;;  %v431_v0 = vld [vmem:[%s3077_s7 + $0x528] sm:$0xff] }
 0x1fd   : > { %1175 = vmatmul.f32.gmra.mxu0 %v422_v11  ;;  %1401 = vmatmul.f32.gmra.mxu2 %v424_v57  ;;  %v1242_v38 = vadd.f32 %v1241_v12, %v1129_v10  ;;  %v1667_v11 = vsel %vm1665_vm5, %v1666_v39, %v3446_v35  ;;  %v3470_v57 = vadd.s32 %v3329_v20, %v1563_v19  ;;  %v433_v10 = vld [vmem:[%s3077_s7 + $0x538] sm:$0xff]  ;;  %v439_v19 = vld [vmem:[%s3077_s7 + $0x568] sm:$0xff] }
 0x1fe   : > { %v2041_v22 = vsel %vm2009_vm3, %v1465_v25, 0.0  ;;  %v1664_v12 = vsel %vm1658_vm0, %v1663_v51, %v1662_v43  ;;  %v1669_v25 = vand.u32 1, %v1667_v11  ;;  %v1979_v31 = vsel %vm3474_vm9, %v1947_v7, %v1657_v42 }
 0x1ff   : > { %2075 = vadd.xlane.f32.xlu1 %v2041_v22  ;;  %1288 = vmatmul.f32.gmra.mxu1 %v423_v27  ;;  %v1673_v36 = vsub.s32 0, %v3470_v57  ;;  %vm1672_vm10 = vcmp.lt.s32.totalorder %v3470_v57, 0  ;;  %vm1852_vm11 = vcmp.ne.s32.totalorder %v1664_v12, 0  ;;  %vm1884_vm12 = vcmp.lt.s32.totalorder %v1664_v12, 0 }
 0x200   : > { %1514 = vmatmul.f32.gmra.mxu3 %v425_v23  ;;  %v1354_v8 = vpop.f32.mrf.mxu2  ;;  %v1564_v23 = vadd.s32 64, %v3325_v16  ;;  %vm2011_vm13 = vcmp.eq.s32.totalorder %v1979_v31, %v3381_v17  ;;  %v1670_v42 = vsub.s32 0, %v1669_v25  ;;  %vm3498_vm14 = vmand %vm1884_vm12, %vm1852_vm11  ;;  %v1565_v11 = vadd.s32 72, %v3325_v16 }
 0x201   : > { %v1355_v46 = vadd.f32 %v1354_v8, %v1242_v38  ;;  %v438_v38 = vld [vmem:[%s3077_s7 + $0x560] sm:$0xff]  ;;  %v440_v8 = vld [vmem:[%s3077_s7 + $0x570] sm:$0xff] }
 0x202   : > { %v1131_v48 = vpop.f32.mrf.mxu0  ;;  %v1671_v51 = vsel %vm1665_vm5, %v1670_v42, %v1669_v25 }
 0x203   : > { %v1132_v58 = vadd.f32 %v1131_v48, %v3181_v45  ;;  %v1467_v53 = vpop.f32.mrf.mxu3  ;;  %v1674_v48 = vsel %vm1672_vm10, %v1673_v36, %v3470_v57  ;;  %vm1853_vm0 = vcmp.ne.s32.totalorder %v1671_v51, 0  ;;  %vm1885_vm1 = vcmp.lt.s32.totalorder %v1671_v51, 0  ;;  %v447_v36 = vld [vmem:[%s3077_s7 + $0x5a8] sm:$0xff] }
 0x204   : > { %v1468_v4 = vadd.f32 %v1467_v53, %v1355_v46  ;;  %v1244_v60 = vpop.f32.mrf.mxu1  ;;  %v1948_v46 = vadd.s32 2, %v1664_v12  ;;  %vm3522_vm3 = vmand %vm1885_vm1, %vm1853_vm0 }
 0x205   : > { %1178 = vmatmul.f32.gmra.mxu0 %v430_v55  ;;  %1404 = vmatmul.f32.gmra.mxu2 %v432_v34  ;;  %v1245_v1 = vadd.f32 %v1244_v60, %v1132_v58  ;;  %v3494_v55 = vadd.s32 %v3329_v20, %v1564_v23  ;;  %v441_v34 = vld [vmem:[%s3077_s7 + $0x578] sm:$0xff]  ;;  %v1949_v23 = vadd.s32 2, %v1671_v51 }
 0x206   : > { %v2042_v6 = vsel %vm2010_vm8, %v1468_v4, 0.0  ;;  %v1676_v4 = vand.u32 1, %v1674_v48 }
 0x207   : > { %2077 = vadd.xlane.f32.xlu1 %v2042_v6  ;;  %1291 = vmatmul.f32.gmra.mxu1 %v431_v0  ;;  %v1980_v0 = vsel %vm3498_vm14, %v1948_v46, %v1664_v12  ;;  %v1680_v7 = vsub.s32 0, %v3494_v55  ;;  %vm1679_vm15 = vcmp.lt.s32.totalorder %v3494_v55, 0  ;;  %v446_v6 = vld [vmem:[%s3077_s7 + $0x5a0] sm:$0xff]  ;;  %v1566_v46 = vadd.s32 80, %v3325_v16 }
 0x208   : > { %1517 = vmatmul.f32.gmra.mxu3 %v433_v10  ;;  %v1357_v27 = vpop.f32.mrf.mxu2  ;;  %vm2012_vm2 = vcmp.eq.s32.totalorder %v1980_v0, %v3381_v17  ;;  %v1677_v12 = vsub.s32 0, %v1676_v4  ;;  %v455_v0 = vld [vmem:[%s3077_s7 + $0x5e8] sm:$0xff] }
 0x209   : > { %v1358_v30 = vadd.f32 %v1357_v27, %v1245_v1  ;;  %v448_v1 = vld [vmem:[%s3077_s7 + $0x5b0] sm:$0xff] }
 0x20a   : > { %v1134_v22 = vpop.f32.mrf.mxu0 }
 0x20b   : > { %v1135_v40 = vadd.f32 %v1134_v22, %v3187_v56  ;;  %v1470_v43 = vpop.f32.mrf.mxu3  ;;  %v3518_v22 = vadd.s32 %v3329_v20, %v1565_v11  ;;  %v454_v56 = vld [vmem:[%s3077_s7 + $0x5e0] sm:$0xff] }
 0x20c   : > { %v1247_v59 = vpop.f32.mrf.mxu1  ;;  %v1471_v39 = vadd.f32 %v1470_v43, %v1358_v30  ;;  %v1681_v30 = vsel %vm1679_vm15, %v1680_v7, %v3494_v55  ;;  %v1678_v43 = vsel %vm1672_vm10, %v1677_v12, %v1676_v4 }
 0x20d   : > { %1181 = vmatmul.f32.gmra.mxu0 %v438_v38  ;;  %1407 = vmatmul.f32.gmra.mxu2 %v440_v8  ;;  %v1248_v53 = vadd.f32 %v1247_v59, %v1135_v40  ;;  %v449_v38 = vld [vmem:[%s3077_s7 + $0x5b8] sm:$0xff]  ;;  %v1683_v42 = vand.u32 1, %v1681_v30  ;;  %vm1686_vm4 = vcmp.lt.s32.totalorder %v3518_v22, 0  ;;  %vm1854_vm5 = vcmp.ne.s32.totalorder %v1678_v43, 0 }
 0x20e   : > { %v2043_v58 = vsel %vm2011_vm13, %v1471_v39, 0.0  ;;  %v1981_v39 = vsel %vm3522_vm3, %v1949_v23, %v1671_v51  ;;  %vm1886_vm6 = vcmp.lt.s32.totalorder %v1678_v43, 0  ;;  %v1950_v7 = vadd.s32 2, %v1678_v43 }
 0x20f   : > { %2079 = vadd.xlane.f32.xlu2 %v2043_v58  ;;  %1294 = vmatmul.f32.gmra.mxu1 %v439_v19  ;;  %v1687_v19 = vsub.s32 0, %v3518_v22  ;;  %v456_v58 = vld [vmem:[%s3077_s7 + $0x5f0] sm:$0xff]  ;;  %vm2013_vm7 = vcmp.eq.s32.totalorder %v1981_v39, %v3381_v17  ;;  %v1684_v51 = vsub.s32 0, %v1683_v42  ;;  %vm3546_vm8 = vmand %vm1886_vm6, %vm1854_vm5 }
 0x210   : > { %1520 = vmatmul.f32.gmra.mxu3 %v441_v34  ;;  %v1360_v60 = vpop.f32.mrf.mxu2 }
 0x211   : > { %v1361_v10 = vadd.f32 %v1360_v60, %v1248_v53  ;;  %v1688_v11 = vsel %vm1686_vm4, %v1687_v19, %v3518_v22 }
 0x212   : > { %v1137_v45 = vpop.f32.mrf.mxu0 }
 0x213   : > { %v1138_v35 = vadd.f32 %v1137_v45, %v3193_v9  ;;  %v1473_v25 = vpop.f32.mrf.mxu3  ;;  %v457_v45 = vld [vmem:[%s3077_s7 + $0x5f8] sm:$0xff]  ;;  %v464_v9 = vld [vmem:[%s3077_s7 + $0x630] sm:$0xff] }
 0x214   : > { %v1474_v27 = vadd.f32 %v1473_v25, %v1361_v10  ;;  %v1250_v31 = vpop.f32.mrf.mxu1  ;;  %v3542_v10 = vadd.s32 %v3329_v20, %v1566_v46  ;;  %v1690_v25 = vand.u32 1, %v1688_v11  ;;  %v470_v11 = vld [vmem:[%s3077_s7 + $0x660] sm:$0xff] }
 0x215   : > { %1184 = vmatmul.f32.gmra.mxu0 %v446_v6  ;;  %1410 = vmatmul.f32.gmra.mxu2 %v448_v1  ;;  %v1251_v40 = vadd.f32 %v1250_v31, %v1138_v35  ;;  %v1685_v35 = vsel %vm1679_vm15, %v1684_v51, %v1683_v42 }
 0x216   : > { %v2044_v8 = vsel %vm2012_vm2, %v1474_v27, 0.0  ;;  %v1982_v27 = vsel %vm3546_vm8, %v1950_v7, %v1678_v43  ;;  %v1694_v31 = vsub.s32 0, %v3542_v10  ;;  %vm1693_vm9 = vcmp.lt.s32.totalorder %v3542_v10, 0 }
 0x217   : > { %2081 = vadd.xlane.f32.xlu2 %v2044_v8  ;;  %1297 = vmatmul.f32.gmra.mxu1 %v447_v36  ;;  %v1567_v36 = vadd.s32 88, %v3325_v16  ;;  %vm1855_vm10 = vcmp.ne.s32.totalorder %v1685_v35, 0  ;;  %vm1887_vm11 = vcmp.lt.s32.totalorder %v1685_v35, 0  ;;  %vm2014_vm12 = vcmp.eq.s32.totalorder %v1982_v27, %v3381_v17 }
 0x218   : > { %1523 = vmatmul.f32.gmra.mxu3 %v449_v38  ;;  %v1363_v59 = vpop.f32.mrf.mxu2  ;;  %v462_v38 = vld [vmem:[%s3077_s7 + $0x620] sm:$0xff]  ;;  %v1951_v39 = vadd.s32 2, %v1685_v35  ;;  %v1695_v19 = vsel %vm1693_vm9, %v1694_v31, %v3542_v10  ;;  %vm3570_vm13 = vmand %vm1887_vm11, %vm1855_vm10 }
 0x219   : > { %v1364_v48 = vadd.f32 %v1363_v59, %v1251_v40  ;;  %v1691_v40 = vsub.s32 0, %v1690_v25  ;;  %v463_v59 = vld [vmem:[%s3077_s7 + $0x628] sm:$0xff]  ;;  %v3566_v46 = vadd.s32 %v3329_v20, %v1567_v36  ;;  %v473_v36 = vld [vmem:[%s3077_s7 + $0x678] sm:$0xff] }
 0x21a   : > { %v1140_v34 = vpop.f32.mrf.mxu0  ;;  %v1983_v51 = vsel %vm3570_vm13, %v1951_v39, %v1685_v35  ;;  %v478_v39 = vld [vmem:[%s3077_s7 + $0x6a0] sm:$0xff] }
 0x21b   : > { %v1141_v57 = vadd.f32 %v1140_v34, %v3199_v21  ;;  %v1476_v53 = vpop.f32.mrf.mxu3  ;;  %vm1700_vm14 = vcmp.lt.s32.totalorder %v3566_v46, 0  ;;  %vm2015_vm1 = vcmp.eq.s32.totalorder %v1983_v51, %v3381_v17 }
 0x21c   : > { %v1477_v4 = vadd.f32 %v1476_v53, %v1364_v48  ;;  %v1253_v60 = vpop.f32.mrf.mxu1  ;;  %v465_v48 = vld [vmem:[%s3077_s7 + $0x638] sm:$0xff] }
 0x21d   : > { %1187 = vmatmul.f32.gmra.mxu0 %v454_v56  ;;  %1413 = vmatmul.f32.gmra.mxu2 %v456_v58  ;;  %v1254_v1 = vadd.f32 %v1253_v60, %v1141_v57  ;;  %v1692_v58 = vsel %vm1686_vm4, %v1691_v40, %v1690_v25  ;;  %v1697_v57 = vand.u32 1, %v1695_v19  ;;  %v1568_v60 = vadd.s32 96, %v3325_v16  ;;  %v471_v25 = vld [vmem:[%s3077_s7 + $0x668] sm:$0xff]  ;;  %v480_v19 = vld [vmem:[%s3077_s7 + $0x6b0] sm:$0xff] }
 0x21e   : > { %v2045_v6 = vsel %vm2013_vm7, %v1477_v4, 0.0  ;;  %v1701_v4 = vsub.s32 0, %v3566_v46  ;;  %vm1856_vm15 = vcmp.ne.s32.totalorder %v1692_v58, 0  ;;  %vm1888_vm0 = vcmp.lt.s32.totalorder %v1692_v58, 0 }
 0x21f   : > { %2083 = vadd.xlane.f32.xlu0 %v2045_v6  ;;  %1300 = vmatmul.f32.gmra.mxu1 %v455_v0  ;;  %v1698_v6 = vsub.s32 0, %v1697_v57  ;;  %v3590_v31 = vadd.s32 %v3329_v20, %v1568_v60  ;;  %vm3594_vm2 = vmand %vm1888_vm0, %vm1856_vm15 }
 0x220   : > { %1526 = vmatmul.f32.gmra.mxu3 %v457_v45  ;;  %v1366_v12 = vpop.f32.mrf.mxu2  ;;  %v472_v45 = vld [vmem:[%s3077_s7 + $0x670] sm:$0xff]  ;;  %v1702_v27 = vsel %vm1700_vm14, %v1701_v4, %v3566_v46  ;;  %v481_v4 = vld [vmem:[%s3077_s7 + $0x6b8] sm:$0xff] }
 0x221   : > { %v1367_v23 = vadd.f32 %v1366_v12, %v1254_v1  ;;  %v1952_v12 = vadd.s32 2, %v1692_v58  ;;  %v1708_v40 = vsub.s32 0, %v3590_v31  ;;  %vm1707_vm3 = vcmp.lt.s32.totalorder %v3590_v31, 0 }
 0x222   : > { %v1143_v30 = vpop.f32.mrf.mxu0 }
 0x223   : > { %v1144_v55 = vadd.f32 %v1143_v30, %v3205_v37  ;;  %v1479_v8 = vpop.f32.mrf.mxu3 }
 0x224   : > { %v1480_v43 = vadd.f32 %v1479_v8, %v1367_v23  ;;  %v1256_v42 = vpop.f32.mrf.mxu1  ;;  %v1984_v8 = vsel %vm3594_vm2, %v1952_v12, %v1692_v58  ;;  %v479_v58 = vld [vmem:[%s3077_s7 + $0x6a8] sm:$0xff]  ;;  %v488_v12 = vld [vmem:[%s3077_s7 + $0x6f0] sm:$0xff] }
 0x225   : > { %1190 = vmatmul.f32.gmra.mxu0 %v462_v38  ;;  %1416 = vmatmul.f32.gmra.mxu2 %v464_v9  ;;  %v1257_v56 = vadd.f32 %v1256_v42, %v1144_v55  ;;  %v1699_v38 = vsel %vm1693_vm9, %v1698_v6, %v1697_v57  ;;  %v1704_v9 = vand.u32 1, %v1702_v27  ;;  %vm2016_vm6 = vcmp.eq.s32.totalorder %v1984_v8, %v3381_v17  ;;  %v489_v8 = vld [vmem:[%s3077_s7 + $0x6f8] sm:$0xff] }
 0x226   : > { %v2046_v34 = vsel %vm2014_vm12, %v1480_v43, 0.0  ;;  %v1569_v43 = vadd.s32 104, %v3325_v16  ;;  %vm1857_vm4 = vcmp.ne.s32.totalorder %v1699_v38, 0  ;;  %vm1889_vm5 = vcmp.lt.s32.totalorder %v1699_v38, 0 }
 0x227   : > { %2085 = vadd.xlane.f32.xlu1 %v2046_v34  ;;  %1303 = vmatmul.f32.gmra.mxu1 %v463_v59  ;;  %v1705_v37 = vsub.s32 0, %v1704_v9  ;;  %v1953_v57 = vadd.s32 2, %v1699_v38  ;;  %vm3618_vm7 = vmand %vm1889_vm5, %vm1857_vm4  ;;  %v1570_v6 = vadd.s32 112, %v3325_v16 }
 0x228   : > { %1529 = vmatmul.f32.gmra.mxu3 %v465_v48  ;;  %v1369_v53 = vpop.f32.mrf.mxu2  ;;  %v3614_v51 = vadd.s32 %v3329_v20, %v1569_v43 }
 0x229   : > { %v1370_v0 = vadd.f32 %v1369_v53, %v1257_v56  ;;  %v1709_v53 = vsel %vm1707_vm3, %v1708_v40, %v3590_v31 }
 0x22a   : > { %v1146_v7 = vpop.f32.mrf.mxu0  ;;  %vm1714_vm8 = vcmp.lt.s32.totalorder %v3614_v51, 0 }
 0x22b   : > { %v1147_v22 = vadd.f32 %v1146_v7, %v3211_v49  ;;  %v1482_v21 = vpop.f32.mrf.mxu3  ;;  %v1706_v7 = vsel %vm1700_vm14, %v1705_v37, %v1704_v9 }
 0x22c   : > { %v1483_v1 = vadd.f32 %v1482_v21, %v1370_v0  ;;  %v1259_v35 = vpop.f32.mrf.mxu1  ;;  %v1715_v21 = vsub.s32 0, %v3614_v51  ;;  %vm1858_vm9 = vcmp.ne.s32.totalorder %v1706_v7, 0  ;;  %vm1890_vm10 = vcmp.lt.s32.totalorder %v1706_v7, 0 }
 0x22d   : > { %1193 = vmatmul.f32.gmra.mxu0 %v470_v11  ;;  %1419 = vmatmul.f32.gmra.mxu2 %v472_v45  ;;  %v1260_v30 = vadd.f32 %v1259_v35, %v1147_v22  ;;  %v1711_v11 = vand.u32 1, %v1709_v53  ;;  %v1985_v22 = vsel %vm3618_vm7, %v1953_v57, %v1699_v38  ;;  %v1954_v38 = vadd.s32 2, %v1706_v7  ;;  %vm3642_vm12 = vmand %vm1890_vm10, %vm1858_vm9 }
 0x22e   : > { %v2047_v23 = vsel %vm2015_vm1, %v1483_v1, 0.0  ;;  %vm2017_vm11 = vcmp.eq.s32.totalorder %v1985_v22, %v3381_v17  ;;  %v1716_v9 = vsel %vm1714_vm8, %v1715_v21, %v3614_v51 }
 0x22f   : > { %2087 = vadd.xlane.f32.xlu2 %v2047_v23  ;;  %1306 = vmatmul.f32.gmra.mxu1 %v471_v25  ;;  %v486_v25 = vld [vmem:[%s3077_s7 + $0x6e0] sm:$0xff] }
 0x230   : > { %1532 = vmatmul.f32.gmra.mxu3 %v473_v36  ;;  %v1372_v55 = vpop.f32.mrf.mxu2  ;;  %v1712_v36 = vsub.s32 0, %v1711_v11 }
 0x231   : > { %v1373_v42 = vadd.f32 %v1372_v55, %v1260_v30  ;;  %v487_v30 = vld [vmem:[%s3077_s7 + $0x6e8] sm:$0xff]  ;;  %v3638_v55 = vadd.s32 %v3329_v20, %v1570_v6 }
 0x232   : > { %v1149_v59 = vpop.f32.mrf.mxu0 }
 0x233   : > { %v1150_v10 = vadd.f32 %v1149_v59, %v3217_v2  ;;  %v1485_v48 = vpop.f32.mrf.mxu3  ;;  %v1718_v59 = vand.u32 1, %v1716_v9  ;;  %vm1721_vm13 = vcmp.lt.s32.totalorder %v3638_v55, 0 }
 0x234   : > { %v1486_v34 = vadd.f32 %v1485_v48, %v1373_v42  ;;  %v1262_v56 = vpop.f32.mrf.mxu1  ;;  %v1713_v42 = vsel %vm1707_vm3, %v1712_v36, %v1711_v11  ;;  %v1571_v48 = vadd.s32 120, %v3325_v16 }
 0x235   : > { %1196 = vmatmul.f32.gmra.mxu0 %v478_v39  ;;  %1422 = vmatmul.f32.gmra.mxu2 %v480_v19  ;;  %v1263_v0 = vadd.f32 %v1262_v56, %v1150_v10  ;;  %v1986_v19 = vsel %vm3642_vm12, %v1954_v38, %v1706_v7  ;;  %v1722_v10 = vsub.s32 0, %v3638_v55  ;;  %v494_v56 = vld [vmem:[%s3077_s7 + $0x720] sm:$0xff]  ;;  %vm1859_vm14 = vcmp.ne.s32.totalorder %v1713_v42, 0 }
 0x236   : > { %v2048_v60 = vsel %vm2016_vm6, %v1486_v34, 0.0  ;;  %vm1891_vm15 = vcmp.lt.s32.totalorder %v1713_v42, 0  ;;  %vm2018_vm0 = vcmp.eq.s32.totalorder %v1986_v19, %v3381_v17  ;;  %v1719_v53 = vsub.s32 0, %v1718_v59 }
 0x237   : > { %2089 = vadd.xlane.f32.xlu0 %v2048_v60  ;;  %1309 = vmatmul.f32.gmra.mxu1 %v479_v58  ;;  %v496_v58 = vld [vmem:[%s3077_s7 + $0x730] sm:$0xff]  ;;  %v495_v60 = vld [vmem:[%s3077_s7 + $0x728] sm:$0xff]  ;;  %v1723_v7 = vsel %vm1721_vm13, %v1722_v10, %v3638_v55  ;;  %v3662_v11 = vadd.s32 %v3329_v20, %v1571_v48  ;;  %vm3666_vm1 = vmand %vm1891_vm15, %vm1859_vm14 }
 0x238   : > { %1535 = vmatmul.f32.gmra.mxu3 %v481_v4  ;;  %v1375_v45 = vpop.f32.mrf.mxu2  ;;  %v1720_v6 = vsel %vm1714_vm8, %v1719_v53, %v1718_v59  ;;  %v505_v59 = vld [vmem:[%s3077_s7 + $0x778] sm:$0xff]  ;;  %v510_v55 = vld [vmem:[%s3077_s7 + $0x7a0] sm:$0xff]  ;;  %v512_v53 = vld [vmem:[%s3077_s7 + $0x7b0] sm:$0xff] }
 0x239   : > { %v1376_v1 = vadd.f32 %v1375_v45, %v1263_v0  ;;  %v1955_v0 = vadd.s32 2, %v1713_v42  ;;  %v497_v45 = vld [vmem:[%s3077_s7 + $0x738] sm:$0xff]  ;;  %vm1728_vm2 = vcmp.lt.s32.totalorder %v3662_v11, 0  ;;  %vm1860_vm3 = vcmp.ne.s32.totalorder %v1720_v6, 0 }
 0x23a   : > { %v1152_v35 = vpop.f32.mrf.mxu0  ;;  %vm1892_vm4 = vcmp.lt.s32.totalorder %v1720_v6, 0 }
 0x23b   : > { %v1153_v46 = vadd.f32 %v1152_v35, %v3223_v15  ;;  %v1488_v27 = vpop.f32.mrf.mxu3  ;;  %v503_v15 = vld [vmem:[%s3077_s7 + $0x768] sm:$0xff]  ;;  %vm3690_vm6 = vmand %vm1892_vm4, %vm1860_vm3 }
 0x23c   : > { %v1489_v49 = vadd.f32 %v1488_v27, %v1376_v1  ;;  %v1265_v23 = vpop.f32.mrf.mxu1  ;;  %v1725_v1 = vand.u32 1, %v1723_v7 }
 0x23d   : > { %1199 = vmatmul.f32.gmra.mxu0 %v486_v25  ;;  %1425 = vmatmul.f32.gmra.mxu2 %v488_v12  ;;  %v1266_v43 = vadd.f32 %v1265_v23, %v1153_v46  ;;  %v1987_v25 = vsel %vm3666_vm1, %v1955_v0, %v1713_v42  ;;  %v1729_v12 = vsub.s32 0, %v3662_v11  ;;  %v1572_v46 = vadd.s32 128, %v3325_v16  ;;  %v504_v23 = vld [vmem:[%s3077_s7 + $0x770] sm:$0xff] }
 0x23e   : > { %v2049_v40 = vsel %vm2017_vm11, %v1489_v49, 0.0  ;;  %v502_v49 = vld [vmem:[%s3077_s7 + $0x760] sm:$0xff]  ;;  %vm2019_vm5 = vcmp.eq.s32.totalorder %v1987_v25, %v3381_v17  ;;  %v1726_v38 = vsub.s32 0, %v1725_v1 }
 0x23f   : > { %2091 = vadd.xlane.f32.xlu1 %v2049_v40  ;;  %1312 = vmatmul.f32.gmra.mxu1 %v487_v30  ;;  %v1956_v40 = vadd.s32 2, %v1720_v6  ;;  %v3686_v42 = vadd.s32 %v3329_v20, %v1572_v46 }
 0x240   : > { %1538 = vmatmul.f32.gmra.mxu3 %v489_v8  ;;  %v1378_v39 = vpop.f32.mrf.mxu2  ;;  %v1727_v10 = vsel %vm1721_vm13, %v1726_v38, %v1725_v1  ;;  %v520_v38 = vld [vmem:[%s3077_s7 + $0x7f0] sm:$0xff] }
 0x241   : > { %v1379_v37 = vadd.f32 %v1378_v39, %v1266_v43  ;;  %v1730_v43 = vsel %vm1728_vm2, %v1729_v12, %v3662_v11  ;;  %vm1735_vm7 = vcmp.lt.s32.totalorder %v3686_v42, 0  ;;  %vm1861_vm8 = vcmp.ne.s32.totalorder %v1727_v10, 0 }
 0x242   : > { %v1155_v34 = vpop.f32.mrf.mxu0  ;;  %v1732_v48 = vand.u32 1, %v1730_v43  ;;  %vm1893_vm9 = vcmp.lt.s32.totalorder %v1727_v10, 0  ;;  %v519_v43 = vld [vmem:[%s3077_s7 + $0x7e8] sm:$0xff] }
 0x243   : > { %v1156_v31 = vadd.f32 %v1155_v34, %v3229_v28  ;;  %v1491_v57 = vpop.f32.mrf.mxu3  ;;  %v1988_v34 = vsel %vm3690_vm6, %v1956_v40, %v1720_v6  ;;  %v1957_v28 = vadd.s32 2, %v1727_v10  ;;  %v513_v6 = vld [vmem:[%s3077_s7 + $0x7b8] sm:$0xff]  ;;  %vm3719_vm11 = vmand %vm1893_vm9, %vm1861_vm8 }
 0x244   : > { %v1492_v4 = vadd.f32 %v1491_v57, %v1379_v37  ;;  %v1268_v2 = vpop.f32.mrf.mxu1  ;;  %vm2020_vm10 = vcmp.eq.s32.totalorder %v1988_v34, %v3381_v17 }
 0x245   : > { %1202 = vmatmul.f32.gmra.mxu0 %v494_v56  ;;  %1428 = vmatmul.f32.gmra.mxu2 %v496_v58  ;;  %v1269_v21 = vadd.f32 %v1268_v2, %v1156_v31  ;;  %v1736_v56 = vsub.s32 0, %v3686_v42  ;;  %v1573_v58 = vadd.s32 136, %v3325_v16 }
 0x246   : > { %v2050_v22 = vsel %vm2018_vm0, %v1492_v4, 0.0 }
 0x247   : > { %2093 = vadd.xlane.f32.xlu2 %v2050_v22  ;;  %1315 = vmatmul.f32.gmra.mxu1 %v495_v60  ;;  %v1733_v60 = vsub.s32 0, %v1732_v48  ;;  %v1737_v22 = vsel %vm1735_vm7, %v1736_v56, %v3686_v42 }
 0x248   : > { %1541 = vmatmul.f32.gmra.mxu3 %v497_v45  ;;  %v1381_v35 = vpop.f32.mrf.mxu2  ;;  %v511_v45 = vld [vmem:[%s3077_s7 + $0x7a8] sm:$0xff]  ;;  %v1739_v12 = vand.u32 1, %v1737_v22 }
 0x249   : > { %v1382_v27 = vadd.f32 %v1381_v35, %v1269_v21  ;;  %v3714_v21 = vadd.s32 %v3329_v20, %v1573_v58  ;;  %v1734_v25 = vsel %vm1728_vm2, %v1733_v60, %v1732_v48  ;;  %v2135_v58 = vld [vmem:[%s3751_s29] sm:$0xff]  ;;  %vm2199_vm2 = vcmask 7168  }
 0x24a   : > { %v1158_v36 = vpop.f32.mrf.mxu0  ;;  %vm1862_vm13 = vcmp.ne.s32.totalorder %v1734_v25, 0  ;;  %vm1894_vm14 = vcmp.lt.s32.totalorder %v1734_v25, 0 }
 0x24b   : > { %v1159_v51 = vadd.f32 %v1158_v36, %v3235_v41  ;;  %v1494_v30 = vpop.f32.mrf.mxu3  ;;  %v1743_v36 = vsub.s32 0, %v3714_v21  ;;  %vm1742_vm12 = vcmp.lt.s32.totalorder %v3714_v21, 0  ;;  %vm3755_vm0 = vmand %vm1894_vm14, %vm1862_vm13 }
 0x24c   : > { %v1495_v9 = vadd.f32 %v1494_v30, %v1382_v27  ;;  %v1271_v8 = vpop.f32.mrf.mxu1  ;;  %v1989_v27 = vsel %vm3719_vm11, %v1957_v28, %v1727_v10  ;;  %v518_v30 = vld [vmem:[%s3077_s7 + $0x7e0] sm:$0xff] }
 0x24d   : > { %1205 = vmatmul.f32.gmra.mxu0 %v502_v49  ;;  %1431 = vmatmul.f32.gmra.mxu2 %v504_v23  ;;  %v1272_v19 = vadd.f32 %v1271_v8, %v1159_v51  ;;  %v1574_v49 = vadd.s32 144, %v3325_v16  ;;  %vm2021_vm15 = vcmp.eq.s32.totalorder %v1989_v27, %v3381_v17  ;;  %v1740_v8 = vsub.s32 0, %v1739_v12  ;;  %v2136_v27 = vld [vmem:[%s3751_s29 + $0x8] sm:$0xff] }
 0x24e   : > { %v2051_v39 = vsel %vm2019_vm5, %v1495_v9, 0.0  ;;  %v1744_v41 = vsel %vm1742_vm12, %v1743_v36, %v3714_v21 }
 0x24f   : > { %2095 = vadd.xlane.f32.xlu0 %v2051_v39  ;;  %1318 = vmatmul.f32.gmra.mxu1 %v503_v15  ;;  %v3745_v39 = vadd.s32 %v3329_v20, %v1574_v49  ;;  %v1746_v34 = vand.u32 1, %v1744_v41 }
 0x250   : > { %1544 = vmatmul.f32.gmra.mxu3 %v505_v59  ;;  %v1384_v37 = vpop.f32.mrf.mxu2  ;;  %v1958_v59 = vadd.s32 2, %v1734_v25 }
 0x251   : > { %v1385_v31 = vadd.f32 %v1384_v37, %v1272_v19  ;;  %v521_v19 = vld [vmem:[%s3077_s7 + $0x7f8] sm:$0xff]  ;;  %v1741_v37 = vsel %vm1735_vm7, %v1740_v8, %v1739_v12  ;;  %vm1749_vm1 = vcmp.lt.s32.totalorder %v3745_v39, 0 }
 0x252   : > { %v1161_v57 = vpop.f32.mrf.mxu0  ;;  %vm1863_vm3 = vcmp.ne.s32.totalorder %v1741_v37, 0  ;;  %vm1895_vm4 = vcmp.lt.s32.totalorder %v1741_v37, 0  ;;  %v1959_v22 = vadd.s32 2, %v1741_v37 }
 0x253   : > { %v1162_v4 = vadd.f32 %v1161_v57, %v3241_v54  ;;  %v1497_v2 = vpop.f32.mrf.mxu3  ;;  %v1750_v57 = vsub.s32 0, %v3745_v39  ;;  %vm3780_vm6 = vmand %vm1895_vm4, %vm1863_vm3 }
 0x254   : > { %v1498_v0 = vadd.f32 %v1497_v2, %v1385_v31  ;;  %v1274_v7 = vpop.f32.mrf.mxu1  ;;  %v1990_v31 = vsel %vm3755_vm0, %v1958_v59, %v1734_v25  ;;  %v1991_v36 = vsel %vm3780_vm6, %v1959_v22, %v1741_v37 }
 0x255   : > { %1208 = vmatmul.f32.gmra.mxu0 %v510_v55  ;;  %1434 = vmatmul.f32.gmra.mxu2 %v512_v53  ;;  %v1275_v35 = vadd.f32 %v1274_v7, %v1162_v4  ;;  %v1575_v55 = vadd.s32 152, %v3325_v16  ;;  %vm2022_vm5 = vcmp.eq.s32.totalorder %v1990_v31, %v3381_v17  ;;  %v1747_v7 = vsub.s32 0, %v1746_v34 }
 0x256   : > { %v2052_v1 = vsel %vm2020_vm10, %v1498_v0, 0.0  ;;  %vm2023_vm10 = vcmp.eq.s32.totalorder %v1991_v36, %v3381_v17  ;;  %v1577_v31 = vadd.s32 168, %v3325_v16 }
 0x257   : > { %2097 = vadd.xlane.f32.xlu1 %v2052_v1  ;;  %1321 = vmatmul.f32.gmra.mxu1 %v511_v45  ;;  %v3774_v54 = vadd.s32 %v3329_v20, %v1575_v55  ;;  %v1748_v25 = vsel %vm1742_vm12, %v1747_v7, %v1746_v34  ;;  %v2137_v34 = vld [vmem:[%s3751_s29 + $0x10] sm:$0xff] }
 0x258   : > { %1547 = vmatmul.f32.gmra.mxu3 %v513_v6  ;;  %v1387_v46 = vpop.f32.mrf.mxu2  ;;  %v1751_v6 = vsel %vm1749_vm1, %v1750_v57, %v3745_v39  ;;  %vm1864_vm8 = vcmp.ne.s32.totalorder %v1748_v25, 0  ;;  %vm1896_vm9 = vcmp.lt.s32.totalorder %v1748_v25, 0 }
 0x259   : > { %v1388_v23 = vadd.f32 %v1387_v46, %v1275_v35  ;;  %v1753_v12 = vand.u32 1, %v1751_v6  ;;  %v1757_v49 = vsub.s32 0, %v3774_v54  ;;  %vm1756_vm7 = vcmp.lt.s32.totalorder %v3774_v54, 0  ;;  %vm3802_vm11 = vmand %vm1896_vm9, %vm1864_vm8 }
 0x25a   : > { %v1164_v51 = vpop.f32.mrf.mxu0 }
 0x25b   : > { %v1165_v11 = vadd.f32 %v1164_v51, %v3247_v5  ;;  %v1500_v9 = vpop.f32.mrf.mxu3  ;;  %v1754_v8 = vsub.s32 0, %v1753_v12  ;;  %v1758_v59 = vsel %vm1756_vm7, %v1757_v49, %v3774_v54 }
 0x25c   : > { %v1501_v15 = vadd.f32 %v1500_v9, %v1388_v23  ;;  %v1277_v40 = vpop.f32.mrf.mxu1  ;;  %v1576_v23 = vadd.s32 160, %v3325_v16 }
 0x25d   : > { %1211 = vmatmul.f32.gmra.mxu0 %v518_v30  ;;  %1437 = vmatmul.f32.gmra.mxu2 %v520_v38  ;;  %v1278_v48 = vadd.f32 %v1277_v40, %v1165_v11 }
 0x25e   : > { %v2053_v10 = vsel %vm2021_vm15, %v1501_v15, 0.0  ;;  %v3798_v41 = vadd.s32 %v3329_v20, %v1576_v23 }
 0x25f   : > { %2099 = vadd.xlane.f32.xlu2 %v2053_v10  ;;  %1324 = vmatmul.f32.gmra.mxu1 %v519_v43  ;;  %v1960_v43 = vadd.s32 2, %v1748_v25  ;;  %v1755_v10 = vsel %vm1749_vm1, %v1754_v8, %v1753_v12 }
 0x260   : > { %1550 = vmatmul.f32.gmra.mxu3 %v521_v19  ;;  %v1390_v56 = vpop.f32.mrf.mxu2  ;;  %vm1763_vm12 = vcmp.lt.s32.totalorder %v3798_v41, 0  ;;  %vm1865_vm13 = vcmp.ne.s32.totalorder %v1755_v10, 0  ;;  %vm1897_vm14 = vcmp.lt.s32.totalorder %v1755_v10, 0  ;;  %v1961_v7 = vadd.s32 2, %v1755_v10 }
 0x261   : > { %v1391_v53 = vadd.f32 %v1390_v56, %v1278_v48  ;;  %v1760_v48 = vand.u32 1, %v1758_v59  ;;  %v1992_v56 = vsel %vm3802_vm11, %v1960_v43, %v1748_v25  ;;  %vm3824_vm0 = vmand %vm1897_vm14, %vm1865_vm13  ;;  %v2138_v25 = vld [vmem:[%s3751_s29 + $0x18] sm:$0xff] }
 0x262   : > { %v2072_v4 = vpop.xlane.xlu0 %2071  ;;  %v1167_v2 = vpop.f32.mrf.mxu0  ;;  %vm2024_vm15 = vcmp.eq.s32.totalorder %v1992_v56, %v3381_v17  ;;  %v1993_v12 = vsel %vm3824_vm0, %v1961_v7, %v1755_v10 }
 0x263   : > { %v2167_v42 = vadd.f32 %v2135_v58, %v2072_v4  ;;  %v1168_v60 = vadd.f32 %v1167_v2, %v3253_v18  ;;  %v1503_v0 = vpop.f32.mrf.mxu3  ;;  %v1764_v58 = vsub.s32 0, %v3798_v41 }
 0x264   : > { %v1504_v45 = vadd.f32 %v1503_v0, %v1391_v53  ;;  %v1280_v28 = vpop.f32.mrf.mxu1 }
 0x265   : > { %2200 = vst.msk [vmem:[%s3776_s9] sm:$0xff] %vm2199_vm2, %v2167_v42  ;;  %v1281_v35 = vadd.f32 %v1280_v28, %v1168_v60  ;;  %v1761_v42 = vsub.s32 0, %v1760_v48  ;;  %v3820_v28 = vadd.s32 %v3329_v20, %v1577_v31 }
 0x266   : > { %v2054_v1 = vsel %vm2022_vm5, %v1504_v45, 0.0  ;;  %v1765_v45 = vsel %vm1763_vm12, %v1764_v58, %v3798_v41  ;;  %vm2025_vm5 = vcmp.eq.s32.totalorder %v1993_v12, %v3381_v17 }
 0x267   : > { %2101 = vadd.xlane.f32.xlu0 %v2054_v1  ;;  %v1762_v18 = vsel %vm1756_vm7, %v1761_v42, %v1760_v48  ;;  %v1767_v1 = vand.u32 1, %v1765_v45  ;;  %vm1770_vm1 = vcmp.lt.s32.totalorder %v3820_v28, 0 }
 0x268   : > { %v1393_v46 = vpop.f32.mrf.mxu2  ;;  %vm1866_vm3 = vcmp.ne.s32.totalorder %v1762_v18, 0  ;;  %vm1898_vm4 = vcmp.lt.s32.totalorder %v1762_v18, 0 }
 0x269   : > { %v1394_v51 = vadd.f32 %v1393_v46, %v1281_v35  ;;  %v1771_v46 = vsub.s32 0, %v3820_v28  ;;  %vm3846_vm6 = vmand %vm1898_vm4, %vm1866_vm3 }
 0x26a   : > { %v2074_v30 = vpop.xlane.xlu0 %2073  ;;  %v1170_v38 = vpop.f32.mrf.mxu0 }
 0x26b   : > { %v2168_v21 = vadd.f32 %v2136_v27, %v2074_v30  ;;  %v1171_v11 = vadd.f32 %v1170_v38, %v3259_v33  ;;  %v1506_v9 = vpop.f32.mrf.mxu3  ;;  %v1578_v27 = vadd.s32 176, %v3325_v16  ;;  %v1768_v38 = vsub.s32 0, %v1767_v1 }
 0x26c   : > { %v1507_v15 = vadd.f32 %v1506_v9, %v1394_v51  ;;  %v1283_v40 = vpop.f32.mrf.mxu1  ;;  %v1962_v9 = vadd.s32 2, %v1762_v18  ;;  %v1772_v8 = vsel %vm1770_vm1, %v1771_v46, %v3820_v28 }
 0x26d   : > { %2201 = vst.msk [vmem:[%s3776_s9 + $0x8] sm:$0xff] %vm2199_vm2, %v2168_v21  ;;  %v1284_v5 = vadd.f32 %v1283_v40, %v1171_v11  ;;  %v1769_v59 = vsel %vm1763_vm12, %v1768_v38, %v1767_v1  ;;  %v1774_v19 = vand.u32 1, %v1772_v8  ;;  %v1580_v1 = vadd.s32 192, %v3325_v16  ;;  %v2141_v40 = vld [vmem:[%s3751_s29 + $0x30] sm:$0xff] }
 0x26e   : > { %v2055_v33 = vsel %vm2023_vm10, %v1507_v15, 0.0  ;;  %v3842_v15 = vadd.s32 %v3329_v20, %v1578_v27  ;;  %v1994_v10 = vsel %vm3846_vm6, %v1962_v9, %v1762_v18  ;;  %vm1867_vm8 = vcmp.ne.s32.totalorder %v1769_v59, 0 }
 0x26f   : > { %2103 = vadd.xlane.f32.xlu1 %v2055_v33  ;;  %vm1899_vm9 = vcmp.lt.s32.totalorder %v1769_v59, 0  ;;  %vm2026_vm10 = vcmp.eq.s32.totalorder %v1994_v10, %v3381_v17 }
 0x270   : > { %v1396_v37 = vpop.f32.mrf.mxu2  ;;  %v1778_v48 = vsub.s32 0, %v3842_v15  ;;  %vm1777_vm7 = vcmp.lt.s32.totalorder %v3842_v15, 0  ;;  %vm3868_vm11 = vmand %vm1899_vm9, %vm1867_vm8 }
 0x271   : > { %v1397_v57 = vadd.f32 %v1396_v37, %v1284_v5  ;;  %v2139_v5 = vld [vmem:[%s3751_s29 + $0x20] sm:$0xff]  ;;  %v1579_v37 = vadd.s32 184, %v3325_v16 }
 0x272   : > { %v2076_v55 = vpop.xlane.xlu1 %2075  ;;  %v1173_v53 = vpop.f32.mrf.mxu0 }
 0x273   : > { %v2169_v39 = vadd.f32 %v2137_v34, %v2076_v55  ;;  %v1174_v4 = vadd.f32 %v1173_v53, %v3265_v47  ;;  %v1509_v2 = vpop.f32.mrf.mxu3  ;;  %v1775_v55 = vsub.s32 0, %v1774_v19  ;;  %v3864_v42 = vadd.s32 %v3329_v20, %v1579_v37 }
 0x274   : > { %v1510_v60 = vadd.f32 %v1509_v2, %v1397_v57  ;;  %v1286_v0 = vpop.f32.mrf.mxu1  ;;  %v1779_v2 = vsel %vm1777_vm7, %v1778_v48, %v3842_v15 }
 0x275   : > { %2202 = vst.msk [vmem:[%s3776_s9 + $0x10] sm:$0xff] %vm2199_vm2, %v2169_v39  ;;  %v1287_v6 = vadd.f32 %v1286_v0, %v1174_v4  ;;  %v1963_v4 = vadd.s32 2, %v1769_v59  ;;  %v1776_v7 = vsel %vm1770_vm1, %v1775_v55, %v1774_v19  ;;  %v1781_v45 = vand.u32 1, %v1779_v2  ;;  %v2142_v2 = vld [vmem:[%s3751_s29 + $0x38] sm:$0xff] }
 0x276   : > { %v2056_v47 = vsel %vm2024_vm15, %v1510_v60, 0.0  ;;  %v1785_v18 = vsub.s32 0, %v3864_v42  ;;  %vm1784_vm12 = vcmp.lt.s32.totalorder %v3864_v42, 0  ;;  %vm1868_vm13 = vcmp.ne.s32.totalorder %v1776_v7, 0 }
 0x277   : > { %2105 = vadd.xlane.f32.xlu2 %v2056_v47  ;;  %v2140_v47 = vld [vmem:[%s3751_s29 + $0x28] sm:$0xff]  ;;  %vm1900_vm14 = vcmp.lt.s32.totalorder %v1776_v7, 0 }
 0x278   : > { %v1399_v35 = vpop.f32.mrf.mxu2  ;;  %vm3890_vm0 = vmand %vm1900_vm14, %vm1868_vm13 }
 0x279   : > { %v1400_v36 = vadd.f32 %v1399_v35, %v1287_v6  ;;  %v1995_v6 = vsel %vm3868_vm11, %v1963_v4, %v1769_v59  ;;  %v1581_v59 = vadd.s32 200, %v3325_v16 }
 0x27a   : > { %v2078_v49 = vpop.xlane.xlu1 %2077  ;;  %v1176_v23 = vpop.f32.mrf.mxu0  ;;  %vm2027_vm15 = vcmp.eq.s32.totalorder %v1995_v6, %v3381_v17 }
 0x27b   : > { %v2170_v54 = vadd.f32 %v2138_v25, %v2078_v49  ;;  %v1177_v51 = vadd.f32 %v1176_v23, %v3271_v62  ;;  %v1512_v30 = vpop.f32.mrf.mxu3 }
 0x27c   : > { %v1513_v21 = vadd.f32 %v1512_v30, %v1400_v36  ;;  %v1289_v11 = vpop.f32.mrf.mxu1  ;;  %v1782_v36 = vsub.s32 0, %v1781_v45  ;;  %v3886_v30 = vadd.s32 %v3329_v20, %v1580_v1 }
 0x27d   : > { %2203 = vst.msk [vmem:[%s3776_s9 + $0x18] sm:$0xff] %vm2199_vm2, %v2170_v54  ;;  %v1290_v43 = vadd.f32 %v1289_v11, %v1177_v51  ;;  %v1964_v54 = vadd.s32 2, %v1776_v7  ;;  %v1786_v51 = vsel %vm1784_vm12, %v1785_v18, %v3864_v42 }
 0x27e   : > { %v2057_v62 = vsel %vm2025_vm5, %v1513_v21, 0.0  ;;  %v1783_v11 = vsel %vm1777_vm7, %v1782_v36, %v1781_v45  ;;  %v1788_v9 = vand.u32 1, %v1786_v51  ;;  %vm1791_vm1 = vcmp.lt.s32.totalorder %v3886_v30, 0 }
 0x27f   : > { %2107 = vadd.xlane.f32.xlu0 %v2057_v62  ;;  %v1996_v62 = vsel %vm3890_vm0, %v1964_v54, %v1776_v7  ;;  %vm1869_vm3 = vcmp.ne.s32.totalorder %v1783_v11, 0  ;;  %vm1901_vm4 = vcmp.lt.s32.totalorder %v1783_v11, 0  ;;  %v2143_v54 = vld [vmem:[%s3751_s29 + $0x40] sm:$0xff] }
 0x280   : > { %v1402_v33 = vpop.f32.mrf.mxu2  ;;  %vm2028_vm5 = vcmp.eq.s32.totalorder %v1996_v62, %v3381_v17  ;;  %v1789_v37 = vsub.s32 0, %v1788_v9  ;;  %vm3912_vm6 = vmand %vm1901_vm4, %vm1869_vm3 }
 0x281   : > { %v1403_v34 = vadd.f32 %v1402_v33, %v1290_v43  ;;  %v1792_v43 = vsub.s32 0, %v3886_v30 }
 0x282   : > { %v2080_v56 = vpop.xlane.xlu2 %2079  ;;  %v1179_v58 = vpop.f32.mrf.mxu0 }
 0x283   : > { %v2171_v41 = vadd.f32 %v2139_v5, %v2080_v56  ;;  %v1180_v31 = vadd.f32 %v1179_v58, %v3277_v13  ;;  %v1515_v57 = vpop.f32.mrf.mxu3  ;;  %v1965_v58 = vadd.s32 2, %v1783_v11 }
 0x284   : > { %v1516_v53 = vadd.f32 %v1515_v57, %v1403_v34  ;;  %v1292_v39 = vpop.f32.mrf.mxu1  ;;  %v1584_v57 = vadd.s32 224, %v3325_v16 }
 0x285   : > { %2204 = vst.msk [vmem:[%s3776_s9 + $0x20] sm:$0xff] %vm2199_vm2, %v2171_v41  ;;  %v1293_v0 = vadd.f32 %v1292_v39, %v1180_v31  ;;  %v1793_v41 = vsel %vm1791_vm1, %v1792_v43, %v3886_v30  ;;  %v3908_v31 = vadd.s32 %v3329_v20, %v1581_v59  ;;  %v1997_v60 = vsel %vm3912_vm6, %v1965_v58, %v1783_v11 }
 0x286   : > { %v2058_v13 = vsel %vm2026_vm10, %v1516_v53, 0.0  ;;  %v1790_v53 = vsel %vm1784_vm12, %v1789_v37, %v1788_v9  ;;  %v1795_v39 = vand.u32 1, %v1793_v41  ;;  %vm2029_vm10 = vcmp.eq.s32.totalorder %v1997_v60, %v3381_v17 }
 0x287   : > { %2109 = vadd.xlane.f32.xlu1 %v2058_v13  ;;  %v1799_v13 = vsub.s32 0, %v3908_v31  ;;  %vm1798_vm7 = vcmp.lt.s32.totalorder %v3908_v31, 0  ;;  %vm1870_vm8 = vcmp.ne.s32.totalorder %v1790_v53, 0  ;;  %vm1902_vm9 = vcmp.lt.s32.totalorder %v1790_v53, 0 }
 0x288   : > { %v1405_v22 = vpop.f32.mrf.mxu2  ;;  %v1796_v18 = vsub.s32 0, %v1795_v39  ;;  %vm3934_vm11 = vmand %vm1902_vm9, %vm1870_vm8 }
 0x289   : > { %v1406_v35 = vadd.f32 %v1405_v22, %v1293_v0  ;;  %v1582_v0 = vadd.s32 208, %v3325_v16 }
 0x28a   : > { %v2082_v25 = vpop.xlane.xlu2 %2081  ;;  %v1182_v12 = vpop.f32.mrf.mxu0  ;;  %v1797_v36 = vsel %vm1791_vm1, %v1796_v18, %v1795_v39 }
 0x28b   : > { %v2172_v28 = vadd.f32 %v2140_v47, %v2082_v25  ;;  %v1183_v46 = vadd.f32 %v1182_v12, %v3283_v29  ;;  %v1518_v27 = vpop.f32.mrf.mxu3  ;;  %v1966_v25 = vadd.s32 2, %v1790_v53  ;;  %v1800_v12 = vsel %vm1798_vm7, %v1799_v13, %v3908_v31 }
 0x28c   : > { %v1519_v49 = vadd.f32 %v1518_v27, %v1406_v35  ;;  %v1295_v23 = vpop.f32.mrf.mxu1  ;;  %vm1871_vm13 = vcmp.ne.s32.totalorder %v1797_v36, 0  ;;  %vm1903_vm14 = vcmp.lt.s32.totalorder %v1797_v36, 0 }
 0x28d   : > { %2205 = vst.msk [vmem:[%s3776_s9 + $0x28] sm:$0xff] %vm2199_vm2, %v2172_v28  ;;  %v1296_v21 = vadd.f32 %v1295_v23, %v1183_v46  ;;  %v3930_v28 = vadd.s32 %v3329_v20, %v1582_v0  ;;  %v1998_v51 = vsel %vm3934_vm11, %v1966_v25, %v1790_v53  ;;  %vm3956_vm0 = vmand %vm1903_vm14, %vm1871_vm13 }
 0x28e   : > { %v2059_v29 = vsel %vm2027_vm15, %v1519_v49, 0.0  ;;  %v1802_v49 = vand.u32 1, %v1800_v12  ;;  %vm2030_vm15 = vcmp.eq.s32.totalorder %v1998_v51, %v3381_v17  ;;  %v1585_v12 = vadd.s32 232, %v3325_v16 }
 0x28f   : > { %2111 = vadd.xlane.f32.xlu2 %v2059_v29  ;;  %v1806_v38 = vsub.s32 0, %v3930_v28  ;;  %v1583_v29 = vadd.s32 216, %v3325_v16  ;;  %vm1805_vm12 = vcmp.lt.s32.totalorder %v3930_v28, 0 }
 0x290   : > { %v1408_v8 = vpop.f32.mrf.mxu2  ;;  %v1803_v62 = vsub.s32 0, %v1802_v49 }
 0x291   : > { %v1409_v19 = vadd.f32 %v1408_v8, %v1296_v21 }
 0x292   : > { %v2084_v33 = vpop.xlane.xlu0 %2083  ;;  %v1185_v5 = vpop.f32.mrf.mxu0 }
 0x293   : > { %v2173_v15 = vadd.f32 %v2141_v40, %v2084_v33  ;;  %v1186_v10 = vadd.f32 %v1185_v5, %v3289_v44  ;;  %v1521_v48 = vpop.f32.mrf.mxu3  ;;  %v1807_v33 = vsel %vm1805_vm12, %v1806_v38, %v3930_v28  ;;  %v3952_v5 = vadd.s32 %v3329_v20, %v1583_v29 }
 0x294   : > { %v1522_v34 = vadd.f32 %v1521_v48, %v1409_v19  ;;  %v1298_v56 = vpop.f32.mrf.mxu1  ;;  %v1967_v19 = vadd.s32 2, %v1797_v36  ;;  %v1804_v48 = vsel %vm1798_vm7, %v1803_v62, %v1802_v49  ;;  %v1809_v37 = vand.u32 1, %v1807_v33  ;;  %v2146_v62 = vld [vmem:[%s3751_s29 + $0x58] sm:$0xff] }
 0x295   : > { %2206 = vst.msk [vmem:[%s3776_s9 + $0x30] sm:$0xff] %vm2199_vm2, %v2173_v15  ;;  %v1299_v55 = vadd.f32 %v1298_v56, %v1186_v10  ;;  %v2144_v56 = vld [vmem:[%s3751_s29 + $0x48] sm:$0xff]  ;;  %v1813_v41 = vsub.s32 0, %v3952_v5  ;;  %vm1812_vm1 = vcmp.lt.s32.totalorder %v3952_v5, 0  ;;  %vm1872_vm3 = vcmp.ne.s32.totalorder %v1804_v48, 0 }
 0x296   : > { %v2060_v44 = vsel %vm2028_vm5, %v1522_v34, 0.0  ;;  %v1999_v58 = vsel %vm3956_vm0, %v1967_v19, %v1797_v36  ;;  %vm1904_vm4 = vcmp.lt.s32.totalorder %v1804_v48, 0  ;;  %v1968_v0 = vadd.s32 2, %v1804_v48 }
 0x297   : > { %2113 = vadd.xlane.f32.xlu0 %v2060_v44  ;;  %vm2031_vm5 = vcmp.eq.s32.totalorder %v1999_v58, %v3381_v17  ;;  %vm3978_vm6 = vmand %vm1904_vm4, %vm1872_vm3  ;;  %v1586_v19 = vadd.s32 240, %v3325_v16 }
 0x298   : > { %v1411_v4 = vpop.f32.mrf.mxu2 }
 0x299   : > { %v1412_v7 = vadd.f32 %v1411_v4, %v1299_v55 }
 0x29a   : > { %v2086_v45 = vpop.xlane.xlu1 %2085  ;;  %v1188_v22 = vpop.f32.mrf.mxu0 }
 0x29b   : > { %v2174_v42 = vadd.f32 %v2142_v2, %v2086_v45  ;;  %v1189_v47 = vadd.f32 %v1188_v22, %v3295_v61  ;;  %v1524_v6 = vpop.f32.mrf.mxu3  ;;  %v1810_v2 = vsub.s32 0, %v1809_v37  ;;  %v3974_v45 = vadd.s32 %v3329_v20, %v1584_v57 }
 0x29c   : > { %v1525_v1 = vadd.f32 %v1524_v6, %v1412_v7  ;;  %v1301_v35 = vpop.f32.mrf.mxu1  ;;  %v1814_v7 = vsel %vm1812_vm1, %v1813_v41, %v3952_v5  ;;  %v1619_v57 = vadd.s32 %v3329_v20, %v1586_v19  ;;  %v2149_v19 = vld [vmem:[%s3751_s29 + $0x70] sm:$0xff] }
 0x29d   : > { %2207 = vst.msk [vmem:[%s3776_s9 + $0x38] sm:$0xff] %vm2199_vm2, %v2174_v42  ;;  %v1302_v27 = vadd.f32 %v1301_v35, %v1189_v47  ;;  %v1811_v47 = vsel %vm1805_vm12, %v1810_v2, %v1809_v37  ;;  %v1816_v6 = vand.u32 1, %v1814_v7  ;;  %v2000_v35 = vsel %vm3978_vm6, %v1968_v0, %v1804_v48 }
 0x29e   : > { %v2061_v61 = vsel %vm2029_vm10, %v1525_v1, 0.0  ;;  %v2145_v1 = vld [vmem:[%s3751_s29 + $0x50] sm:$0xff]  ;;  %v1820_v25 = vsub.s32 0, %v3974_v45  ;;  %vm1819_vm7 = vcmp.lt.s32.totalorder %v3974_v45, 0  ;;  %vm1873_vm8 = vcmp.ne.s32.totalorder %v1811_v47, 0 }
 0x29f   : > { %2115 = vadd.xlane.f32.xlu1 %v2061_v61  ;;  %vm1905_vm9 = vcmp.lt.s32.totalorder %v1811_v47, 0  ;;  %vm2032_vm10 = vcmp.eq.s32.totalorder %v2000_v35, %v3381_v17  ;;  %v1969_v38 = vadd.s32 2, %v1811_v47 }
 0x2a0   : > { %v1414_v23 = vpop.f32.mrf.mxu2  ;;  %v1821_v29 = vsel %vm1819_vm7, %v1820_v25, %v3974_v45  ;;  %vm4000_vm11 = vmand %vm1905_vm9, %vm1873_vm8 }
 0x2a1   : > { %v1415_v21 = vadd.f32 %v1414_v23, %v1302_v27  ;;  %v1817_v23 = vsub.s32 0, %v1816_v6 }
 0x2a2   : > { %v2088_v11 = vpop.xlane.xlu2 %2087  ;;  %v1191_v9 = vpop.f32.mrf.mxu0 }
 0x2a3   : > { %v2175_v30 = vadd.f32 %v2143_v54, %v2088_v11  ;;  %v1192_v8 = vadd.f32 %v1191_v9, %v3301_v14  ;;  %v1527_v40 = vpop.f32.mrf.mxu3 }
 0x2a4   : > { %v1528_v43 = vadd.f32 %v1527_v40, %v1415_v21  ;;  %v1304_v59 = vpop.f32.mrf.mxu1  ;;  %v3996_v21 = vadd.s32 %v3329_v20, %v1585_v12 }
 0x2a5   : > { %2208 = vst.msk [vmem:[%s3776_s9 + $0x40] sm:$0xff] %vm2199_vm2, %v2175_v30  ;;  %v1305_v10 = vadd.f32 %v1304_v59, %v1192_v8  ;;  %v1818_v30 = vsel %vm1812_vm1, %v1817_v23, %v1816_v6  ;;  %v1823_v8 = vand.u32 1, %v1821_v29  ;;  %vm1833_vm1 = vcmp.lt.s32.totalorder %v1619_v57, 0 }
 0x2a6   : > { %v2062_v14 = vsel %vm2030_vm15, %v1528_v43, 0.0  ;;  %v2001_v43 = vsel %vm4000_vm11, %v1969_v38, %v1811_v47  ;;  %v1827_v59 = vsub.s32 0, %v3996_v21  ;;  %vm1826_vm12 = vcmp.lt.s32.totalorder %v3996_v21, 0 }
 0x2a7   : > { %2117 = vadd.xlane.f32.xlu2 %v2062_v14  ;;  %vm1874_vm13 = vcmp.ne.s32.totalorder %v1818_v30, 0  ;;  %vm1906_vm14 = vcmp.lt.s32.totalorder %v1818_v30, 0  ;;  %vm2033_vm15 = vcmp.eq.s32.totalorder %v2001_v43, %v3381_v17  ;;  %v1824_v37 = vsub.s32 0, %v1823_v8 }
 0x2a8   : > { %v1417_v34 = vpop.f32.mrf.mxu2  ;;  %v1970_v58 = vadd.s32 2, %v1818_v30  ;;  %v1828_v41 = vsel %vm1826_vm12, %v1827_v59, %v3996_v21  ;;  %vm4020_vm0 = vmand %vm1906_vm14, %vm1874_vm13 }
 0x2a9   : > { %v1418_v44 = vadd.f32 %v1417_v34, %v1305_v10 }
 0x2aa   : > { %v2090_v55 = vpop.xlane.xlu0 %2089  ;;  %v1194_v53 = vpop.f32.mrf.mxu0  ;;  %v2002_v2 = vsel %vm4020_vm0, %v1970_v58, %v1818_v30 }
 0x2ab   : > { %v2176_v31 = vadd.f32 %v2144_v56, %v2090_v55  ;;  %v1195_v39 = vadd.f32 %v1194_v53, %v3307_v32  ;;  %v1530_v4 = vpop.f32.mrf.mxu3  ;;  %v1825_v53 = vsel %vm1819_vm7, %v1824_v37, %v1823_v8 }
 0x2ac   : > { %v1531_v60 = vadd.f32 %v1530_v4, %v1418_v44  ;;  %v1307_v13 = vpop.f32.mrf.mxu1  ;;  %v2147_v4 = vld [vmem:[%s3751_s29 + $0x60] sm:$0xff]  ;;  %vm1875_vm3 = vcmp.ne.s32.totalorder %v1825_v53, 0  ;;  %vm1907_vm4 = vcmp.lt.s32.totalorder %v1825_v53, 0 }
 0x2ad   : > { %2209 = vst.msk [vmem:[%s3776_s9 + $0x48] sm:$0xff] %vm2199_vm2, %v2176_v31  ;;  %v1308_v42 = vadd.f32 %v1307_v13, %v1195_v39  ;;  %v1830_v31 = vand.u32 1, %v1828_v41  ;;  %v1587_v13 = vadd.s32 248, %v3325_v16  ;;  %vm4036_vm6 = vmand %vm1907_vm4, %vm1875_vm3 }
 0x2ae   : > { %v2063_v32 = vsel %vm2031_vm5, %v1531_v60, 0.0  ;;  %v1834_v60 = vsub.s32 0, %v1619_v57  ;;  %vm2034_vm5 = vcmp.eq.s32.totalorder %v2002_v2, %v3381_v17 }
 0x2af   : > { %2119 = vadd.xlane.f32.xlu0 %v2063_v32  ;;  %v1831_v47 = vsub.s32 0, %v1830_v31  ;;  %v1620_v35 = vadd.s32 %v3329_v20, %v1587_v13 }
 0x2b0   : > { %v1420_v18 = vpop.f32.mrf.mxu2  ;;  %v1835_v16 = vsel %vm1833_vm1, %v1834_v60, %v1619_v57 }
 0x2b1   : > { %v1421_v46 = vadd.f32 %v1420_v18, %v1308_v42  ;;  %vm1840_vm7 = vcmp.lt.s32.totalorder %v1620_v35, 0 }
 0x2b2   : > { %v2092_v61 = vpop.xlane.xlu1 %2091  ;;  %v1197_v27 = vpop.f32.mrf.mxu0 }
 0x2b3   : > { %v2177_v28 = vadd.f32 %v2145_v1, %v2092_v61  ;;  %v1198_v36 = vadd.f32 %v1197_v27, %v3313_v50  ;;  %v1533_v49 = vpop.f32.mrf.mxu3  ;;  %v1971_v1 = vadd.s32 2, %v1825_v53  ;;  %v1837_v61 = vand.u32 1, %v1835_v16 }
 0x2b4   : > { %v1534_v54 = vadd.f32 %v1533_v49, %v1421_v46  ;;  %v1310_v51 = vpop.f32.mrf.mxu1  ;;  %v1832_v46 = vsel %vm1826_vm12, %v1831_v47, %v1830_v31  ;;  %v1841_v49 = vsub.s32 0, %v1620_v35 }
 0x2b5   : > { %2210 = vst.msk [vmem:[%s3776_s9 + $0x50] sm:$0xff] %vm2199_vm2, %v2177_v28  ;;  %v1311_v9 = vadd.f32 %v1310_v51, %v1198_v36  ;;  %v2148_v28 = vld [vmem:[%s3751_s29 + $0x68] sm:$0xff]  ;;  %v2003_v36 = vsel %vm4036_vm6, %v1971_v1, %v1825_v53  ;;  %vm1876_vm8 = vcmp.ne.s32.totalorder %v1832_v46, 0  ;;  %vm1908_vm9 = vcmp.lt.s32.totalorder %v1832_v46, 0  ;;  %v2150_v53 = vld [vmem:[%s3751_s29 + $0x78] sm:$0xff] }
 0x2b6   : > { %v2064_v50 = vsel %vm2032_vm10, %v1534_v54, 0.0  ;;  %vm2035_vm10 = vcmp.eq.s32.totalorder %v2003_v36, %v3381_v17  ;;  %v1838_v21 = vsub.s32 0, %v1837_v61  ;;  %v1842_v30 = vsel %vm1840_vm7, %v1841_v49, %v1620_v35  ;;  %vm4050_vm11 = vmand %vm1908_vm9, %vm1876_vm8 }
 0x2b7   : > { %2121 = vadd.xlane.f32.xlu1 %v2064_v50  ;;  %v1844_v43 = vand.u32 1, %v1842_v30  ;;  %v2158_v30 = vld [vmem:[%s3751_s29 + $0xb8] sm:$0xff] }
 0x2b8   : > { %v1423_v40 = vpop.f32.mrf.mxu2 }
 0x2b9   : > { %v1424_v33 = vadd.f32 %v1423_v40, %v1311_v9  ;;  %v1972_v9 = vadd.s32 2, %v1832_v46 }
 0x2ba   : > { %v2094_v15 = vpop.xlane.xlu2 %2093  ;;  %v1200_v14 = vpop.f32.mrf.mxu0 }
 0x2bb   : > { %v2178_v5 = vadd.f32 %v2146_v62, %v2094_v15  ;;  %v1201_v10 = vadd.f32 %v1200_v14, %v3319_v3  ;;  %v1536_v48 = vpop.f32.mrf.mxu3 }
 0x2bc   : > { %v1537_v34 = vadd.f32 %v1536_v48, %v1424_v33  ;;  %v1313_v56 = vpop.f32.mrf.mxu1  ;;  %v2004_v33 = vsel %vm4050_vm11, %v1972_v9, %v1832_v46 }
 0x2bd   : > { %2211 = vst.msk [vmem:[%s3776_s9 + $0x58] sm:$0xff] %vm2199_vm2, %v2178_v5  ;;  %v1314_v55 = vadd.f32 %v1313_v56, %v1201_v10  ;;  %vm2036_vm14 = vcmp.eq.s32.totalorder %v2004_v33, %v3381_v17 }
 0x2be   : > { %v2065_v3 = vsel %vm2033_vm15, %v1537_v34, 0.0  ;;  %v1845_v34 = vsub.s32 0, %v1844_v43 }
 0x2bf   : > { %2123 = vadd.xlane.f32.xlu2 %v2065_v3 }
 0x2c0   : > { %v1426_v39 = vpop.f32.mrf.mxu2 }
 0x2c1   : > { %v1427_v0 = vadd.f32 %v1426_v39, %v1314_v55  ;;  %v1846_v55 = vsel %vm1840_vm7, %v1845_v34, %v1844_v43  ;;  %v2163_v34 = vld [vmem:[%s3751_s29 + $0xe0] sm:$0xff] }
 0x2c2   : > { %v2096_v7 = vpop.xlane.xlu0 %2095  ;;  %v1203_v22 = vpop.f32.mrf.mxu0  ;;  %vm1878_vm0 = vcmp.ne.s32.totalorder %v1846_v55, 0 }
 0x2c3   : > { %v2179_v32 = vadd.f32 %v2147_v4, %v2096_v7  ;;  %v1204_v45 = vadd.f32 %v1203_v22, %v3333_v26  ;;  %v1539_v42 = vpop.f32.mrf.mxu3 }
 0x2c4   : > { %v1540_v6 = vadd.f32 %v1539_v42, %v1427_v0  ;;  %v1316_v18 = vpop.f32.mrf.mxu1 }
 0x2c5   : > { %2212 = vst.msk [vmem:[%s3776_s9 + $0x60] sm:$0xff] %vm2199_vm2, %v2179_v32  ;;  %v1317_v26 = vadd.f32 %v1316_v18, %v1204_v45  ;;  %v1974_v32 = vadd.s32 2, %v1846_v55 }
 0x2c6   : > { %v2066_v12 = vsel %vm2034_vm5, %v1540_v6, 0.0  ;;  %v2151_v6 = vld [vmem:[%s3751_s29 + $0x80] sm:$0xff] }
 0x2c7   : > { %2125 = vadd.xlane.f32.xlu0 %v2066_v12 }
 0x2c8   : > { %v1429_v27 = vpop.f32.mrf.mxu2 }
 0x2c9   : > { %v1430_v20 = vadd.f32 %v1429_v27, %v1317_v26  ;;  %v2152_v26 = vld [vmem:[%s3751_s29 + $0x88] sm:$0xff]  ;;  %v2153_v27 = vld [vmem:[%s3751_s29 + $0x90] sm:$0xff] }
 0x2ca   : > { %v2098_v23 = vpop.xlane.xlu1 %2097  ;;  %v1206_v54 = vpop.f32.mrf.mxu0 }
 0x2cb   : > { %v2180_v51 = vadd.f32 %v2148_v28, %v2098_v23  ;;  %v1207_v38 = vadd.f32 %v1206_v54, %v3342_v52  ;;  %v1542_v29 = vpop.f32.mrf.mxu3  ;;  %v1839_v52 = vsel %vm1833_vm1, %v1838_v21, %v1837_v61  ;;  %vm1910_vm1 = vcmp.lt.s32.totalorder %v1846_v55, 0  ;;  %v2155_v23 = vld [vmem:[%s3751_s29 + $0xa0] sm:$0xff] }
 0x2cc   : > { %v1543_v11 = vadd.f32 %v1542_v29, %v1430_v20  ;;  %v1319_v50 = vpop.f32.mrf.mxu1  ;;  %vm1877_vm12 = vcmp.ne.s32.totalorder %v1839_v52, 0  ;;  %vm1909_vm13 = vcmp.lt.s32.totalorder %v1839_v52, 0  ;;  %v1973_v41 = vadd.s32 2, %v1839_v52  ;;  %vm1942_vm4 = vmand %vm1910_vm1, %vm1878_vm0 }
 0x2cd   : > { %2213 = vst.msk [vmem:[%s3776_s9 + $0x68] sm:$0xff] %vm2199_vm2, %v2180_v51  ;;  %v1320_v62 = vadd.f32 %v1319_v50, %v1207_v38  ;;  %vm4062_vm15 = vmand %vm1909_vm13, %vm1877_vm12  ;;  %v2006_v18 = vsel %vm1942_vm4, %v1974_v32, %v1846_v55  ;;  %v2156_v38 = vld [vmem:[%s3751_s29 + $0xa8] sm:$0xff] }
 0x2ce   : > { %v2067_v40 = vsel %vm2035_vm10, %v1543_v11, 0.0  ;;  %v2005_v31 = vsel %vm4062_vm15, %v1973_v41, %v1839_v52  ;;  %vm2038_vm5 = vcmp.eq.s32.totalorder %v2006_v18, %v3381_v17  ;;  %v2157_v11 = vld [vmem:[%s3751_s29 + $0xb0] sm:$0xff]  ;;  %v2164_v41 = vld [vmem:[%s3751_s29 + $0xe8] sm:$0xff] }
 0x2cf   : > { %2127 = vadd.xlane.f32.xlu1 %v2067_v40  ;;  %vm2037_vm3 = vcmp.eq.s32.totalorder %v2005_v31, %v3381_v17  ;;  %v2154_v17 = vld [vmem:[%s3751_s29 + $0x98] sm:$0xff] }
 0x2d0   : > { %v1432_v59 = vpop.f32.mrf.mxu2 }
 0x2d1   : > { %v1433_v15 = vadd.f32 %v1432_v59, %v1320_v62  ;;  %v2159_v62 = vld [vmem:[%s3751_s29 + $0xc0] sm:$0xff]  ;;  %v2160_v59 = vld [vmem:[%s3751_s29 + $0xc8] sm:$0xff] }
 0x2d2   : > { %v2100_v14 = vpop.xlane.xlu2 %2099  ;;  %v1209_v5 = vpop.f32.mrf.mxu0 }
 0x2d3   : > { %v2181_v10 = vadd.f32 %v2149_v19, %v2100_v14  ;;  %v1210_v48 = vadd.f32 %v1209_v5, %v3351_v24  ;;  %v1545_v37 = vpop.f32.mrf.mxu3 }
 0x2d4   : > { %v1546_v56 = vadd.f32 %v1545_v37, %v1433_v15  ;;  %v1322_v58 = vpop.f32.mrf.mxu1  ;;  %v2161_v15 = vld [vmem:[%s3751_s29 + $0xd0] sm:$0xff] }
 0x2d5   : > { %2214 = vst.msk [vmem:[%s3776_s9 + $0x70] sm:$0xff] %vm2199_vm2, %v2181_v10  ;;  %v1323_v3 = vadd.f32 %v1322_v58, %v1210_v48  ;;  %v2162_v10 = vld [vmem:[%s3751_s29 + $0xd8] sm:$0xff] }
 0x2d6   : > { %v2068_v44 = vsel %vm2036_vm14, %v1546_v56, 0.0 }
 0x2d7   : > { %2129 = vadd.xlane.f32.xlu2 %v2068_v44 }
 0x2d8   : > { %v1435_v24 = vpop.f32.mrf.mxu2 }
 0x2d9   : > { %v1436_v39 = vadd.f32 %v1435_v24, %v1323_v3  ;;  %v2165_v3 = vld [vmem:[%s3751_s29 + $0xf0] sm:$0xff] }
 0x2da   : > { %v2102_v4 = vpop.xlane.xlu0 %2101  ;;  %v1212_v2 = vpop.f32.mrf.mxu0 }
 0x2db   : > { %v2182_v60 = vadd.f32 %v2150_v53, %v2102_v4  ;;  %v1213_v13 = vadd.f32 %v1212_v2, %v3366_v63  ;;  %v1548_v0 = vpop.f32.mrf.mxu3  ;;  %v2166_v53 = vld [vmem:[%s3751_s29 + $0xf8] sm:$0xff] }
 0x2dc   : > { %v1549_v7 = vadd.f32 %v1548_v0, %v1436_v39  ;;  %v1325_v22 = vpop.f32.mrf.mxu1 }
 0x2dd   : > { %2215 = vst.msk [vmem:[%s3776_s9 + $0x78] sm:$0xff] %vm2199_vm2, %v2182_v60  ;;  %v1326_v42 = vadd.f32 %v1325_v22, %v1213_v13 }
 0x2de   : > { %v2069_v45 = vsel %vm2037_vm3, %v1549_v7, 0.0 }
 0x2df   : > { %2131 = vadd.xlane.f32.xlu0 %v2069_v45 }
 0x2e0   : > { %v1438_v47 = vpop.f32.mrf.mxu2 }
 0x2e1   : > { %v1439_v63 = vadd.f32 %v1438_v47, %v1326_v42 }
 0x2e2   : > { %v2104_v1 = vpop.xlane.xlu1 %2103 }
 0x2e3   : > { %v2183_v16 = vadd.f32 %v2151_v6, %v2104_v1  ;;  %v1551_v35 = vpop.f32.mrf.mxu3 }
 0x2e4   : > { %v1552_v25 = vadd.f32 %v1551_v35, %v1439_v63 }
 0x2e5   : > { %2216 = vst.msk [vmem:[%s3776_s9 + $0x80] sm:$0xff] %vm2199_vm2, %v2183_v16 }
 0x2e6   : > { %v2070_v12 = vsel %vm2038_vm5, %v1552_v25, 0.0 }
 0x2e7   : > { %2133 = vadd.xlane.f32.xlu1 %v2070_v12 }
 0x2ea   : > { %v2106_v46 = vpop.xlane.xlu2 %2105 }
 0x2eb   : > { %v2184_v61 = vadd.f32 %v2152_v26, %v2106_v46 }
 0x2ed   : > { %2217 = vst.msk [vmem:[%s3776_s9 + $0x88] sm:$0xff] %vm2199_vm2, %v2184_v61 }
 0x2f2   : > { %v2108_v28 = vpop.xlane.xlu0 %2107 }
 0x2f3   : > { %v2185_v36 = vadd.f32 %v2153_v27, %v2108_v28 }
 0x2f5   : > { %2218 = vst.msk [vmem:[%s3776_s9 + $0x90] sm:$0xff] %vm2199_vm2, %v2185_v36 }
 0x2fa   : > { %v2110_v49 = vpop.xlane.xlu1 %2109 }
 0x2fb   : > { %v2186_v20 = vadd.f32 %v2154_v17, %v2110_v49 }
 0x2fd   : > { %2219 = vst.msk [vmem:[%s3776_s9 + $0x98] sm:$0xff] %vm2199_vm2, %v2186_v20 }
 0x302   : > { %v2112_v54 = vpop.xlane.xlu2 %2111 }
 0x303   : > { %v2187_v51 = vadd.f32 %v2155_v23, %v2112_v54 }
 0x305   : > { %2220 = vst.msk [vmem:[%s3776_s9 + $0xa0] sm:$0xff] %vm2199_vm2, %v2187_v51 }
 0x30a   : > { %v2114_v29 = vpop.xlane.xlu0 %2113 }
 0x30b   : > { %v2188_v21 = vadd.f32 %v2156_v38, %v2114_v29 }
 0x30d   : > { %2221 = vst.msk [vmem:[%s3776_s9 + $0xa8] sm:$0xff] %vm2199_vm2, %v2188_v21 }
 0x312   : > { %v2116_v50 = vpop.xlane.xlu1 %2115 }
 0x313   : > { %v2189_v9 = vadd.f32 %v2157_v11, %v2116_v50 }
 0x315   : > { %2222 = vst.msk [vmem:[%s3776_s9 + $0xb0] sm:$0xff] %vm2199_vm2, %v2189_v9 }
 0x31a   : > { %v2118_v8 = vpop.xlane.xlu2 %2117 }
 0x31b   : > { %v2190_v40 = vadd.f32 %v2158_v30, %v2118_v8 }
 0x31d   : > { %2223 = vst.msk [vmem:[%s3776_s9 + $0xb8] sm:$0xff] %vm2199_vm2, %v2190_v40 }
 0x322   : > { %v2120_v52 = vpop.xlane.xlu0 %2119 }
 0x323   : > { %v2191_v43 = vadd.f32 %v2159_v62, %v2120_v52 }
 0x325   : > { %2224 = vst.msk [vmem:[%s3776_s9 + $0xc0] sm:$0xff] %vm2199_vm2, %v2191_v43 }
 0x32a   : > { %v2122_v19 = vpop.xlane.xlu1 %2121 }
 0x32b   : > { %v2192_v33 = vadd.f32 %v2160_v59, %v2122_v19 }
 0x32d   : > { %2225 = vst.msk [vmem:[%s3776_s9 + $0xc8] sm:$0xff] %vm2199_vm2, %v2192_v33 }
 0x332   : > { %v2124_v14 = vpop.xlane.xlu2 %2123 }
 0x333   : > { %v2193_v5 = vadd.f32 %v2161_v15, %v2124_v14 }
 0x335   : > { %2226 = vst.msk [vmem:[%s3776_s9 + $0xd0] sm:$0xff] %vm2199_vm2, %v2193_v5 }
 0x33a   : > { %v2126_v48 = vpop.xlane.xlu0 %2125 }
 0x33b   : > { %v2194_v37 = vadd.f32 %v2162_v10, %v2126_v48 }
 0x33d   : > { %2227 = vst.msk [vmem:[%s3776_s9 + $0xd8] sm:$0xff] %vm2199_vm2, %v2194_v37 }
 0x342   : > { %v2128_v56 = vpop.xlane.xlu1 %2127 }
 0x343   : > { %v2195_v58 = vadd.f32 %v2163_v34, %v2128_v56 }
 0x345   : > { %2228 = vst.msk [vmem:[%s3776_s9 + $0xe0] sm:$0xff] %vm2199_vm2, %v2195_v58 }
 0x34a   : > { %v2130_v57 = vpop.xlane.xlu2 %2129 }
 0x34b   : > { %v2196_v44 = vadd.f32 %v2164_v41, %v2130_v57 }
 0x34d   : > { %2229 = vst.msk [vmem:[%s3776_s9 + $0xe8] sm:$0xff] %vm2199_vm2, %v2196_v44 }
 0x352   : > { %v2132_v55 = vpop.xlane.xlu0 %2131 }
 0x353   : > { %v2197_v24 = vadd.f32 %v2165_v3, %v2132_v55 }
 0x355   : > { %2230 = vst.msk [vmem:[%s3776_s9 + $0xf0] sm:$0xff] %vm2199_vm2, %v2197_v24 }
 0x359   : > { %2238 = sbr.rel (!%p3007_p10) target bundleno = 926 (0x39e), region = 44 }
 0x35a   : > { %v2134_v31 = vpop.xlane.xlu1 %2133 }
 0x35b   : > { %v2198_v39 = vadd.f32 %v2166_v53, %v2134_v31 }
 0x35d   : > { %2231 = vst.msk [vmem:[%s3776_s9 + $0xf8] sm:$0xff] %vm2199_vm2, %v2198_v39 }
 0x35e   : > { %s4355_s10 = smov (!%p2241_p2, %s2240_s10), 32 }
 0x35f   : > { %s2627_s25 = sshll.u32 %s4355_s10, 3 }
 0x360   : > { %p2630_p6 = scmp.eq.s32.totalorder %s2627_s25, 0 }
 0x361   : > { %s4137_s26 = sshrl.u32 (!%p2630_p6), %s4355_s10, 5 }
 0x362   : > { %2249 = sbr.rel (%p2630_p6) target bundleno = 926 (0x39e), region = 48  ;;  %p2631_p10 = scmp.le.s32.totalorder (!%p2630_p6), %s4137_s26, 0 }
 0x367   : > { %2543 = sbr.rel (%p2631_p10) target bundleno = 909 (0x38d), region = 133  ;;  %s4343_s16 = smov (!%p2631_p10), %s4131_s21 }
 0x368   : > { %s4344_s23 = smov (!%p2631_p10), %s3776_s9  ;;  %s4146_s27 = smov (!%p2631_p10), 0  }
 0x369   : > { %s4148_s4 = smov (!%p2631_p10), 0  }
 0x36c LB: >> { %v2374_v4 = vld [vmem:[%s2907_s23] sm:$0xff]  ;;  %v2376_v2 = vld [vmem:[%s2907_s23 + $0x8] sm:$0xff]  ;;  %v2378_v60 = vld [vmem:[%s2907_s23 + $0x10] sm:$0xff]  ;;  %s2438_s5 = sadd.s32 1, %s2911_s27  ;;  %s2368_s4 = sadd.s32 1, %s2915_s4   ;;  %s2915_s4 = sphi %s4148_s4, %s2368_s4   ;;  %s2911_s27 = sphi %s4146_s27, %s4347_s27   ;;  %s2907_s23 = sphi %s4344_s23, %s4346_s23   ;;  %s2903_s16 = sphi %s4343_s16, %s4345_s16  }
 0x36d   : >> { %2375 = vst [vmem:[%s2903_s16] sm:$0xff] %v2374_v4  ;;  %v2380_v13 = vld [vmem:[%s2907_s23 + $0x18] sm:$0xff]  ;;  %p2439_p7 = scmp.ge.s32.totalorder %s2438_s5, %s4137_s26  ;;  %v2382_v0 = vld [vmem:[%s2907_s23 + $0x20] sm:$0xff]  ;;  %v2384_v7 = vld [vmem:[%s2907_s23 + $0x28] sm:$0xff]  ;;  %p2367_p9 = scmp.ge.s32.totalorder %s2368_s4, %s4137_s26 }
 0x36e   : >> { %2377 = vst [vmem:[%s2903_s16 + $0x8] sm:$0xff] %v2376_v2  ;;  %v2386_v22 = vld [vmem:[%s2907_s23 + $0x30] sm:$0xff]  ;;  %v2388_v32 = vld [vmem:[%s2907_s23 + $0x38] sm:$0xff]  ;;  %v2390_v45 = vld [vmem:[%s2907_s23 + $0x40] sm:$0xff] }
 0x36f   : >> { %2379 = vst [vmem:[%s2903_s16 + $0x10] sm:$0xff] %v2378_v60  ;;  %s4357_s5 = smov (%p2439_p7, %s2438_s5), 0  ;;  %v2392_v42 = vld [vmem:[%s2907_s23 + $0x48] sm:$0xff]  ;;  %v2394_v47 = vld [vmem:[%s2907_s23 + $0x50] sm:$0xff]  ;;  %v2396_v6 = vld [vmem:[%s2907_s23 + $0x58] sm:$0xff] }
 0x370   : >> { %2381 = vst [vmem:[%s2903_s16 + $0x18] sm:$0xff] %v2380_v13  ;;  %s2632_s6 = sshll.u32 %s4357_s5, 8  ;;  %v2398_v18 = vld [vmem:[%s2907_s23 + $0x60] sm:$0xff]  ;;  %v2400_v63 = vld [vmem:[%s2907_s23 + $0x68] sm:$0xff]  ;;  %v2402_v1 = vld [vmem:[%s2907_s23 + $0x70] sm:$0xff]  ;;  %s4347_s27 = smov %s4357_s5 }
 0x371   : >> { %2383 = vst [vmem:[%s2903_s16 + $0x20] sm:$0xff] %v2382_v0  ;;  %s4180_s15 = scalar_lea.vmem %s3776_s9, %s2632_s6 [#allocation6]   ;;  %s4183_s7 = scalar_lea.vmem %s4131_s21, %s2632_s6   ;;  %v2404_v16 = vld [vmem:[%s2907_s23 + $0x78] sm:$0xff]  ;;  %v2406_v35 = vld [vmem:[%s2907_s23 + $0x80] sm:$0xff]  ;;  %v2408_v25 = vld [vmem:[%s2907_s23 + $0x88] sm:$0xff] }
 0x372   : >> { %2385 = vst [vmem:[%s2903_s16 + $0x28] sm:$0xff] %v2384_v7  ;;  %v2410_v12 = vld [vmem:[%s2907_s23 + $0x90] sm:$0xff]  ;;  %v2412_v26 = vld [vmem:[%s2907_s23 + $0x98] sm:$0xff]  ;;  %v2414_v46 = vld [vmem:[%s2907_s23 + $0xa0] sm:$0xff] }
 0x373   : >> { %2387 = vst [vmem:[%s2903_s16 + $0x30] sm:$0xff] %v2386_v22  ;;  %v2416_v61 = vld [vmem:[%s2907_s23 + $0xa8] sm:$0xff]  ;;  %v2418_v27 = vld [vmem:[%s2907_s23 + $0xb0] sm:$0xff]  ;;  %v2420_v28 = vld [vmem:[%s2907_s23 + $0xb8] sm:$0xff] }
 0x374   : >> { %2389 = vst [vmem:[%s2903_s16 + $0x38] sm:$0xff] %v2388_v32  ;;  %v2422_v36 = vld [vmem:[%s2907_s23 + $0xc0] sm:$0xff]  ;;  %v2424_v17 = vld [vmem:[%s2907_s23 + $0xc8] sm:$0xff]  ;;  %v2426_v49 = vld [vmem:[%s2907_s23 + $0xd0] sm:$0xff] }
 0x375   : >> { %2391 = vst [vmem:[%s2903_s16 + $0x40] sm:$0xff] %v2390_v45  ;;  %v2428_v20 = vld [vmem:[%s2907_s23 + $0xd8] sm:$0xff]  ;;  %v2430_v23 = vld [vmem:[%s2907_s23 + $0xe0] sm:$0xff]  ;;  %v2432_v54 = vld [vmem:[%s2907_s23 + $0xe8] sm:$0xff] }
 0x376   : >> { %2393 = vst [vmem:[%s2903_s16 + $0x48] sm:$0xff] %v2392_v42  ;;  %v2434_v51 = vld [vmem:[%s2907_s23 + $0xf0] sm:$0xff]  ;;  %v2436_v38 = vld [vmem:[%s2907_s23 + $0xf8] sm:$0xff]  ;;  %s4346_s23 = smov %s4180_s15 }
 0x377   : >> { %2395 = vst [vmem:[%s2903_s16 + $0x50] sm:$0xff] %v2394_v47 }
 0x378   : >> { %2397 = vst [vmem:[%s2903_s16 + $0x58] sm:$0xff] %v2396_v6 }
 0x379   : >> { %2399 = vst [vmem:[%s2903_s16 + $0x60] sm:$0xff] %v2398_v18 }
 0x37a   : >> { %2401 = vst [vmem:[%s2903_s16 + $0x68] sm:$0xff] %v2400_v63 }
 0x37b   : >> { %2403 = vst [vmem:[%s2903_s16 + $0x70] sm:$0xff] %v2402_v1 }
 0x37c   : >> { %2405 = vst [vmem:[%s2903_s16 + $0x78] sm:$0xff] %v2404_v16 }
 0x37d   : >> { %2407 = vst [vmem:[%s2903_s16 + $0x80] sm:$0xff] %v2406_v35 }
 0x37e   : >> { %2409 = vst [vmem:[%s2903_s16 + $0x88] sm:$0xff] %v2408_v25 }
 0x37f   : >> { %2411 = vst [vmem:[%s2903_s16 + $0x90] sm:$0xff] %v2410_v12 }
 0x380   : >> { %2413 = vst [vmem:[%s2903_s16 + $0x98] sm:$0xff] %v2412_v26 }
 0x381   : >> { %2415 = vst [vmem:[%s2903_s16 + $0xa0] sm:$0xff] %v2414_v46 }
 0x382   : >> { %2417 = vst [vmem:[%s2903_s16 + $0xa8] sm:$0xff] %v2416_v61 }
 0x383   : >> { %2419 = vst [vmem:[%s2903_s16 + $0xb0] sm:$0xff] %v2418_v27 }
 0x384   : >> { %2421 = vst [vmem:[%s2903_s16 + $0xb8] sm:$0xff] %v2420_v28 }
 0x385   : >> { %2423 = vst [vmem:[%s2903_s16 + $0xc0] sm:$0xff] %v2422_v36 }
 0x386   : >> { %2425 = vst [vmem:[%s2903_s16 + $0xc8] sm:$0xff] %v2424_v17 }
 0x387   : >> { %2427 = vst [vmem:[%s2903_s16 + $0xd0] sm:$0xff] %v2426_v49 }
 0x388   : >> { %2429 = vst [vmem:[%s2903_s16 + $0xd8] sm:$0xff] %v2428_v20  ;;  %2370 = sbr.rel (!%p2367_p9) target bundleno = 876 (0x36c), region = 139 }
 0x389   : >> { %2431 = vst [vmem:[%s2903_s16 + $0xe0] sm:$0xff] %v2430_v23 }
 0x38a   : >> { %2433 = vst [vmem:[%s2903_s16 + $0xe8] sm:$0xff] %v2432_v54 }
 0x38b   : >> { %2435 = vst [vmem:[%s2903_s16 + $0xf0] sm:$0xff] %v2434_v51 }
 0x38c   : >> { %2437 = vst [vmem:[%s2903_s16 + $0xf8] sm:$0xff] %v2436_v38  ;;  %s4345_s16 = smov %s4183_s7 }
 0x38d PF: > { %s4248_s22 = sand.u32 31, %s4355_s10   ;;  %s2646_s24 = sshll.u32 %s4137_s26, 8 }
 0x38e   : > { %s2449_s8 = scalar_lea.vmem %s3776_s9, %s2646_s24 [#allocation6]   ;;  %s2451_s12 = scalar_lea.vmem %s4131_s21, %s2646_s24  }
 0x38f   : > { %p2637_p12 = scmp.le.s32.totalorder %s4248_s22, 0 }
 0x390   : > { %s2917_s19 = smov (!%p2637_p12), %s2451_s12   ;;  %s2921_s28 = smov (!%p2637_p12), %s2449_s8  }
 0x391   : > { %2557 = sbr.rel (%p2637_p12) target bundleno = 926 (0x39e), region = 144  ;;  %s2925_s29 = smov (!%p2637_p12), 0  }
 0x392   : > { %s2929_s30 = smov (!%p2637_p12), 0  }
 0x396 LB: >> { %v2461_v29 = vld [vmem:[%s2923_s28] sm:$0xff]  ;;  %s2463_s10 = sadd.s32 1, %s2927_s29  ;;  %s2455_s30 = sadd.s32 1, %s2931_s30   ;;  %s2931_s30 = sphi %s2929_s30, %s2455_s30   ;;  %s2927_s29 = sphi %s2925_s29, %s2926_s29   ;;  %s2923_s28 = sphi %s2921_s28, %s2468_s28   ;;  %s2919_s19 = sphi %s2917_s19, %s2469_s19  }
 0x397   : >> { %2462 = vst [vmem:[%s2919_s19] sm:$0xff] %v2461_v29  ;;  %p2464_p13 = scmp.ge.s32.totalorder %s2463_s10, %s4248_s22  ;;  %p2454_p0 = scmp.ge.s32.totalorder %s2455_s30, %s4248_s22 }
 0x399   : >> { %s4359_s10 = smov (%p2464_p13, %s2463_s10), 0  ;;  %2457 = sbr.rel (!%p2454_p0) target bundleno = 918 (0x396), region = 150 }
 0x39a   : >> { %s2638_s9 = sshll.u32 %s4359_s10, 3  ;;  %s2926_s29 = smov %s4359_s10  }
 0x39b   : >> { %s2468_s28 = scalar_lea.vmem %s2449_s8, %s2638_s9 [#allocation6]   ;;  %s2469_s19 = scalar_lea.vmem %s2451_s12, %s2638_s9  }
 0x39e PF: > { %p14_p1 = scmp.ge.s32.totalorder %s2981_s17, 4   ;;  %s4348_s12 = smov %s2891_s13 }
 0x39f   : > { %s4349_s13 = smov %s2895_s14  ;;  %s4350_s14 = smov %s2991_s20 }
 0x3a0   : > { %s4351_s15 = smov %s2981_s17  ;;  %16 = sbr.rel (!%p14_p1) target bundleno = 4 (0x4), region = 161 }
 0x3a5   :  { %2485 = vsyncpa [#allocation3], 1 }
 0x3a6   :  { %2487 = vsyncpa [#allocation3 + $0x1], 1 }
 0x3a7   :  { %2488 = vsyncpa [#allocation5], 1 }

</bundles_post_ra>
